<compile_context>
chip_gen: v5e
topology: v5e:2x2
jax: 0.10.0
libtpu: 0.0.40
codegen_flags: <defaults>
</compile_context>

<pallas_src>
import functools

import numpy as np
import jax
import jax.numpy as jnp
from jax import lax
from jax.experimental import pallas as pl
from jax.experimental.pallas import tpu as pltpu


def _round8(n):
    return -(-n // 8) * 8


# ----------------------------------------------------------------------------
# Fused kernel: in-kernel embedding + four attention-pool levels + final fc,
# one batch row per grid step.
# ----------------------------------------------------------------------------
def _fused_han_kernel(ids_ref, p_ref, o_ref, *, cfg):
    offs = cfg["offs"]

    def get(name, f32=False):
        r0, nr, nc = offs[name]                      # static python ints
        v = p_ref[r0:r0 + nr, 0:nc]                  # static slice load (bf16)
        return v.astype(jnp.float32) if f32 else v

    def attn_pool(x_bf16, name, n_groups, l_valid, l_pad):
        # projection: bf16 MXU matmul, f32 accumulate; tanh stays f32 (EUP).
        h = jnp.tanh(
            jnp.dot(x_bf16, get("w_" + name),
                    preferred_element_type=jnp.float32) + get("b_" + name, True))
        # per-head logits broadcast onto the feature axis; u is folded into the
        # block-diagonal head mask wrapper-side, so a single matmul suffices.
        s = jnp.dot(h.astype(jnp.bfloat16), get("mmu_" + name),
                    preferred_element_type=jnp.float32)
        dout = h.shape[-1]
        # l_pad is a multiple of 8 -> these reshapes are sublane-tile aligned.
        h3 = h.reshape(n_groups, l_pad, dout)
        s3 = s.reshape(n_groups, l_pad, dout)
        if l_valid < l_pad:
            # precomputed additive {0, -1e30} mask (f32 logits -> safe)
            s3 = s3 + get("mask_" + name, True)[None, :, :]
        s3 = s3 - jnp.max(s3, axis=1, keepdims=True)
        e = jnp.exp(s3)
        num = jnp.sum(e * h3, axis=1)                # (n_groups, dout)
        den = jnp.sum(e, axis=1)                     # (n_groups, dout)
        return num * pl.reciprocal(den, approx=True)

    # --- word embedding lookup folded into the word projection --------------
    ids = ids_ref[0]                                               # (M_w, 1) int32
    m_w = ids.shape[0]
    eq = ids == lax.broadcasted_iota(jnp.int32, (m_w, cfg["Vp"]), 1)
    x = jnp.where(eq, 1.0, 0.0).astype(jnp.bfloat16)               # (M_w, Vp)

    levels = cfg["levels"]
    pooled = None
    for i, (name, n_groups, l_valid, l_pad) in enumerate(levels):
        pooled = attn_pool(x, name, n_groups, l_valid, l_pad)      # (n_groups, dout)
        if i + 1 < len(levels):
            # re-group into the NEXT level's zero-padded (G*Lp, dout) layout via
            # a tiny 0/1 scatter matmul (exact; zeros land on masked positions).
            nxt = levels[i + 1][0]
            x = jnp.dot(get("scat_" + nxt), pooled.astype(jnp.bfloat16),
                        preferred_element_type=jnp.float32).astype(jnp.bfloat16)

    # final fc; classes are pre-padded to 128 lanes -> dense unmasked store.
    logits = jnp.dot(pooled.astype(jnp.bfloat16), get("w_fc"),
                     preferred_element_type=jnp.float32) + get("b_fc", True)
    o_ref[0] = logits


# ----------------------------------------------------------------------------
# Parameter packing: all small 2-D blocks into one (rows, 128) bf16 slab.
# ----------------------------------------------------------------------------
def _pack_params(entries):
    offs, rows, off = {}, [], 0
    for name, a in entries:
        a = jnp.asarray(a, jnp.float32)
        r, c = a.shape
        if c > 128:
            # TODO(synk): production shapes (wide scatter mats / huge vocab)
            # need multi-column packing or separate inputs.
            raise ValueError(f"packed param {name!r} wider than 128 lanes")
        rp = _round8(r)
        rows.append(jnp.pad(a, ((0, rp - r), (0, 128 - c))))
        offs[name] = (off, r, c)
        off += rp
    return jnp.concatenate(rows, axis=0).astype(jnp.bfloat16), offs


# ----------------------------------------------------------------------------
# Forward pass wrapper
# ----------------------------------------------------------------------------
def muil_han_forward(params, days_newses_input, head_num):
    """days_newses_input: int32 word ids, shape [B, days, news, sents, words]."""
    B, D, Nn, S, W = days_newses_input.shape
    V, _E = params['emb'].shape
    nh2 = params['w_word'].shape[1]          # 2 * news_hidden_size
    dh2 = params['w_days'].shape[1]          # 2 * days_hidden_size
    C = params['w_fc'].shape[1]

    Wp = _round8(W)
    Lp_s, Lp_n, Lp_d = _round8(S), _round8(Nn), _round8(D)
    G_w, G_s, G_n, G_d = D * Nn * S, D * Nn, D, 1
    M_w = G_w * Wp
    Vp = _round8(V)
    Cp = 128                                  # lane-dense output width

    # pad ONLY the words axis; sentinel id == V maps to an all-zero one-hot row.
    ids = jnp.pad(days_newses_input.astype(jnp.int32),
                  ((0, 0), (0, 0), (0, 0), (0, 0), (0, Wp - W)),
                  constant_values=V)
    ids = ids.reshape(B, M_w, 1)

    # fold the embedding into the word projection: (Vp, nh2)
    wt_word = jnp.dot(params['emb'], params['w_word'])
    wt_word = jnp.pad(wt_word, ((0, Vp - V), (0, 0)))

    def head_mask(dout):                      # block-diagonal head membership
        hid = np.arange(dout) // (dout // head_num)
        return (hid[:, None] == hid[None, :]).astype(np.float32)

    def mmu(u, dout):                         # fold u into the head mask
        return u[:, None] * jnp.asarray(head_mask(dout))

    def scatter_mat(G, L, Lp):                # (G*Lp, G*L) 0/1 re-grouping matrix
        m = np.zeros((G * Lp, G * L), np.float32)
        for g in range(G):
            m[g * Lp:g * Lp + L, g * L:g * L + L] = np.eye(L, dtype=np.float32)
        return m

    def pad_mask(L, Lp, dout):                # additive softmax mask
        m = np.zeros((Lp, dout), np.float32)
        m[L:, :] = -1e30
        return m

    entries = [
        ('w_word', wt_word),
        ('b_word', params['b_word'].reshape(1, -1)),
        ('mmu_word', mmu(params['u_word'], nh2)),
        ('w_sent', params['w_sent']),
        ('b_sent', params['b_sent'].reshape(1, -1)),
        ('mmu_sent', mmu(params['u_sent'], nh2)),
        ('w_news', params['w_news']),
        ('b_news', params['b_news'].reshape(1, -1)),
        ('mmu_news', mmu(params['u_news'], nh2)),
        ('w_days', params['w_days']),
        ('b_days', params['b_days'].reshape(1, -1)),
        ('mmu_days', mmu(params['u_days'], dh2)),
        ('w_fc', jnp.pad(params['w_fc'], ((0, 0), (0, Cp - C)))),
        ('b_fc', jnp.pad(params['b_fc'].reshape(1, -1), ((0, 0), (0, Cp - C)))),
        ('scat_sent', scatter_mat(G_s, S, Lp_s)),
        ('scat_news', scatter_mat(G_n, Nn, Lp_n)),
        ('scat_days', scatter_mat(G_d, D, Lp_d)),
    ]
    if W < Wp:
        entries.append(('mask_word', pad_mask(W, Wp, nh2)))
    if S < Lp_s:
        entries.append(('mask_sent', pad_mask(S, Lp_s, nh2)))
    if Nn < Lp_n:
        entries.append(('mask_news', pad_mask(Nn, Lp_n, nh2)))
    if D < Lp_d:
        entries.append(('mask_days', pad_mask(D, Lp_d, dh2)))

    packed, offs = _pack_params(entries)
    Rtot = packed.shape[0]

    cfg = dict(
        offs=offs,
        Vp=Vp,
        levels=(('word', G_w, W, Wp),
                ('sent', G_s, S, Lp_s),
                ('news', G_n, Nn, Lp_n),
                ('days', G_d, D, Lp_d)),
    )

    out = pl.pallas_call(
        functools.partial(_fused_han_kernel, cfg=cfg),
        out_shape=jax.ShapeDtypeStruct((B, 1, Cp), jnp.float32),
        grid=(B,),
        in_specs=[
            pl.BlockSpec((1, M_w, 1), lambda b: (b, 0, 0)),   # word ids (per row)
            pl.BlockSpec((Rtot, 128), lambda b: (0, 0)),      # packed params (shared)
        ],
        out_specs=pl.BlockSpec((1, 1, Cp), lambda b: (b, 0, 0)),
        compiler_params=pltpu.CompilerParams(
            dimension_semantics=("parallel",),                # both v7x TCs get rows
            vmem_limit_bytes=32 * 1024 * 1024,
        ),
    )(ids, packed)
    return out.reshape(B, Cp)[:, :C]


# ----------------------------------------------------------------------------
# Deterministic parameter init
# ----------------------------------------------------------------------------
def init_params(key, vocab, emb_dim, news_hidden, days_hidden, num_classes):
    nh2 = 2 * news_hidden
    dh2 = 2 * days_hidden
    ks = jax.random.split(key, 15)

    def nrm(k, shape, s=0.1):
        return (s * jax.random.normal(k, shape)).astype(jnp.float32)

    return {
        'emb': nrm(ks[0], (vocab, emb_dim)),
        'w_word': nrm(ks[1], (emb_dim, nh2)), 'b_word': nrm(ks[2], (nh2,)),
        'u_word': nrm(ks[3], (nh2,)),
        'w_sent': nrm(ks[4], (nh2, nh2)), 'b_sent': nrm(ks[5], (nh2,)),
        'u_sent': nrm(ks[6], (nh2,)),
        'w_news': nrm(ks[7], (nh2, nh2)), 'b_news': nrm(ks[8], (nh2,)),
        'u_news': nrm(ks[9], (nh2,)),
        'w_days': nrm(ks[10], (nh2, dh2)), 'b_days': nrm(ks[11], (dh2,)),
        'u_days': nrm(ks[12], (dh2,)),
        'w_fc': nrm(ks[13], (dh2, num_classes)), 'b_fc': nrm(ks[14], (num_classes,)),
    }


# ----------------------------------------------------------------------------
if __name__ == "__main__":
    head_num = 2
    days_num = 3
    days_hidden_size = 8
    news_hidden_size = 8
    num_classes = 3
    vocab = 50
    emb_dim = 16
    B, NEWS, SENT, WORD = 2, 4, 3, 8

    key = jax.random.PRNGKey(0)
    k_ids, k_params = jax.random.split(key)
    days_newses_input = jax.random.randint(
        k_ids, (B, days_num, NEWS, SENT, WORD), 0, vocab, dtype=jnp.int32)
    params = init_params(k_params, vocab, emb_dim, news_hidden_size,
                         days_hidden_size, num_classes)

    fwd = jax.jit(functools.partial(muil_han_forward, head_num=head_num))
    out = fwd(params, days_newses_input)
    out = jax.block_until_ready(out)

    assert out.shape == (B, num_classes), out.shape
    assert bool(jnp.all(jnp.isfinite(out)))
    print("KERNEL_OK")
</pallas_src>

<mosaic_0001>
module attributes {stable_mosaic.version = 11 : i64} {
  func.func @_fused_han_kernel(%arg0: i32, %arg1: memref<1x288x1xi32, #tpu.memory_space<vmem>>, %arg2: memref<376x128xbf16, #tpu.memory_space<vmem>>, %arg3: memref<1x1x128xf32, #tpu.memory_space<vmem>>) attributes {dimension_semantics = [#tpu.dimension_semantics<parallel>], iteration_bounds = array<i64: 2>, scalar_prefetch = 0 : i64, scratch_operands = 0 : i64, tpu.core_type = #tpu.core_type<tc>, window_params = [{transform_indices = @transform_0, window_bounds = array<i64: 1, 288, 1>}, {pipeline_mode = #tpu.pipeline_mode<synchronous>, transform_indices = @transform_1, window_bounds = array<i64: 376, 128>}, {transform_indices = @transform_2, window_bounds = array<i64: 1, 1, 128>}]} {
    %c0 = arith.constant 0 : index
    %c0_0 = arith.constant 0 : index
    %c0_1 = arith.constant 0 : index
    %0 = vector.load %arg1[%c0, %c0_0, %c0_1] : memref<1x288x1xi32, #tpu.memory_space<vmem>>, vector<1x288x1xi32>
    %1 = vector.shape_cast %0 : vector<1x288x1xi32> to vector<288x1xi32>
    %2 = tpu.iota {dimensions = array<i32: 1>} : vector<288x56xi32>
    %3 = vector.broadcast %1 : vector<288x1xi32> to vector<288x56xi32>
    %4 = arith.cmpi eq, %3, %2 : vector<288x56xi32>
    %cst = arith.constant 1.000000e+00 : f32
    %cst_2 = arith.constant 0.000000e+00 : f32
    %5 = vector.broadcast %cst : f32 to vector<288x56xf32>
    %6 = vector.broadcast %cst_2 : f32 to vector<288x56xf32>
    %7 = arith.select %4, %5, %6 : vector<288x56xi1>, vector<288x56xf32>
    %8 = arith.truncf %7 : vector<288x56xf32> to vector<288x56xbf16>
    %c0_3 = arith.constant 0 : index
    %c0_4 = arith.constant 0 : index
    %9 = vector.load %arg2[%c0_3, %c0_4] : memref<376x128xbf16, #tpu.memory_space<vmem>>, vector<56x16xbf16>
    %cst_5 = arith.constant dense<0.000000e+00> : vector<288x16xf32>
    %10 = tpu.matmul %8, %9, %cst_5 {dimension_numbers = #tpu.dot_dimension_numbers<[1], [0], [0], [1], [0, 0, 1, 1], [], []>} : vector<288x56xbf16>, vector<56x16xbf16>, vector<288x16xf32> -> vector<288x16xf32>
    %c56 = arith.constant 56 : index
    %c0_6 = arith.constant 0 : index
    %11 = vector.load %arg2[%c56, %c0_6] : memref<376x128xbf16, #tpu.memory_space<vmem>>, vector<1x16xbf16>
    %12 = arith.extf %11 : vector<1x16xbf16> to vector<1x16xf32>
    %13 = vector.broadcast %12 : vector<1x16xf32> to vector<288x16xf32>
    %14 = arith.addf %10, %13 : vector<288x16xf32>
    %15 = math.tanh %14 : vector<288x16xf32>
    %16 = arith.truncf %15 : vector<288x16xf32> to vector<288x16xbf16>
    %c64 = arith.constant 64 : index
    %c0_7 = arith.constant 0 : index
    %17 = vector.load %arg2[%c64, %c0_7] : memref<376x128xbf16, #tpu.memory_space<vmem>>, vector<16x16xbf16>
    %cst_8 = arith.constant dense<0.000000e+00> : vector<288x16xf32>
    %18 = tpu.matmul %16, %17, %cst_8 {dimension_numbers = #tpu.dot_dimension_numbers<[1], [0], [0], [1], [0, 0, 1, 1], [], []>} : vector<288x16xbf16>, vector<16x16xbf16>, vector<288x16xf32> -> vector<288x16xf32>
    %19 = vector.shape_cast %15 : vector<288x16xf32> to vector<36x8x16xf32>
    %20 = vector.shape_cast %18 : vector<288x16xf32> to vector<36x8x16xf32>
    %cst_9 = arith.constant dense<0xFF800000> : vector<36x16xf32>
    %21 = vector.multi_reduction <maximumf>, %20, %cst_9 [1] : vector<36x8x16xf32> to vector<36x16xf32>
    %22 = vector.shape_cast %21 : vector<36x16xf32> to vector<36x1x16xf32>
    %23 = vector.broadcast %22 : vector<36x1x16xf32> to vector<36x8x16xf32>
    %24 = arith.subf %20, %23 : vector<36x8x16xf32>
    %25 = math.exp %24 : vector<36x8x16xf32>
    %26 = arith.mulf %25, %19 : vector<36x8x16xf32>
    %cst_10 = arith.constant dense<0.000000e+00> : vector<36x16xf32>
    %27 = vector.multi_reduction <add>, %26, %cst_10 [1] : vector<36x8x16xf32> to vector<36x16xf32>
    %cst_11 = arith.constant dense<0.000000e+00> : vector<36x16xf32>
    %28 = vector.multi_reduction <add>, %25, %cst_11 [1] : vector<36x8x16xf32> to vector<36x16xf32>
    %29 = tpu.reciprocal %28 {approx = true} : vector<36x16xf32> -> vector<36x16xf32>
    %30 = arith.mulf %27, %29 : vector<36x16xf32>
    %c224 = arith.constant 224 : index
    %c0_12 = arith.constant 0 : index
    %31 = vector.load %arg2[%c224, %c0_12] : memref<376x128xbf16, #tpu.memory_space<vmem>>, vector<96x36xbf16>
    %32 = arith.truncf %30 : vector<36x16xf32> to vector<36x16xbf16>
    %cst_13 = arith.constant dense<0.000000e+00> : vector<96x16xf32>
    %33 = tpu.matmul %31, %32, %cst_13 {dimension_numbers = #tpu.dot_dimension_numbers<[1], [0], [0], [1], [0, 0, 1, 1], [], []>} : vector<96x36xbf16>, vector<36x16xbf16>, vector<96x16xf32> -> vector<96x16xf32>
    %34 = arith.truncf %33 : vector<96x16xf32> to vector<96x16xbf16>
    %c80 = arith.constant 80 : index
    %c0_14 = arith.constant 0 : index
    %35 = vector.load %arg2[%c80, %c0_14] : memref<376x128xbf16, #tpu.memory_space<vmem>>, vector<16x16xbf16>
    %cst_15 = arith.constant dense<0.000000e+00> : vector<96x16xf32>
    %36 = tpu.matmul %34, %35, %cst_15 {dimension_numbers = #tpu.dot_dimension_numbers<[1], [0], [0], [1], [0, 0, 1, 1], [], []>} : vector<96x16xbf16>, vector<16x16xbf16>, vector<96x16xf32> -> vector<96x16xf32>
    %c96 = arith.constant 96 : index
    %c0_16 = arith.constant 0 : index
    %37 = vector.load %arg2[%c96, %c0_16] : memref<376x128xbf16, #tpu.memory_space<vmem>>, vector<1x16xbf16>
    %38 = arith.extf %37 : vector<1x16xbf16> to vector<1x16xf32>
    %39 = vector.broadcast %38 : vector<1x16xf32> to vector<96x16xf32>
    %40 = arith.addf %36, %39 : vector<96x16xf32>
    %41 = math.tanh %40 : vector<96x16xf32>
    %42 = arith.truncf %41 : vector<96x16xf32> to vector<96x16xbf16>
    %c104 = arith.constant 104 : index
    %c0_17 = arith.constant 0 : index
    %43 = vector.load %arg2[%c104, %c0_17] : memref<376x128xbf16, #tpu.memory_space<vmem>>, vector<16x16xbf16>
    %cst_18 = arith.constant dense<0.000000e+00> : vector<96x16xf32>
    %44 = tpu.matmul %42, %43, %cst_18 {dimension_numbers = #tpu.dot_dimension_numbers<[1], [0], [0], [1], [0, 0, 1, 1], [], []>} : vector<96x16xbf16>, vector<16x16xbf16>, vector<96x16xf32> -> vector<96x16xf32>
    %45 = vector.shape_cast %41 : vector<96x16xf32> to vector<12x8x16xf32>
    %46 = vector.shape_cast %44 : vector<96x16xf32> to vector<12x8x16xf32>
    %c352 = arith.constant 352 : index
    %c0_19 = arith.constant 0 : index
    %47 = vector.load %arg2[%c352, %c0_19] : memref<376x128xbf16, #tpu.memory_space<vmem>>, vector<8x16xbf16>
    %48 = arith.extf %47 : vector<8x16xbf16> to vector<8x16xf32>
    %49 = vector.shape_cast %48 : vector<8x16xf32> to vector<1x8x16xf32>
    %50 = vector.broadcast %49 : vector<1x8x16xf32> to vector<12x8x16xf32>
    %51 = arith.addf %46, %50 : vector<12x8x16xf32>
    %cst_20 = arith.constant dense<0xFF800000> : vector<12x16xf32>
    %52 = vector.multi_reduction <maximumf>, %51, %cst_20 [1] : vector<12x8x16xf32> to vector<12x16xf32>
    %53 = vector.shape_cast %52 : vector<12x16xf32> to vector<12x1x16xf32>
    %54 = vector.broadcast %53 : vector<12x1x16xf32> to vector<12x8x16xf32>
    %55 = arith.subf %51, %54 : vector<12x8x16xf32>
    %56 = math.exp %55 : vector<12x8x16xf32>
    %57 = arith.mulf %56, %45 : vector<12x8x16xf32>
    %cst_21 = arith.constant dense<0.000000e+00> : vector<12x16xf32>
    %58 = vector.multi_reduction <add>, %57, %cst_21 [1] : vector<12x8x16xf32> to vector<12x16xf32>
    %cst_22 = arith.constant dense<0.000000e+00> : vector<12x16xf32>
    %59 = vector.multi_reduction <add>, %56, %cst_22 [1] : vector<12x8x16xf32> to vector<12x16xf32>
    %60 = tpu.reciprocal %59 {approx = true} : vector<12x16xf32> -> vector<12x16xf32>
    %61 = arith.mulf %58, %60 : vector<12x16xf32>
    %c320 = arith.constant 320 : index
    %c0_23 = arith.constant 0 : index
    %62 = vector.load %arg2[%c320, %c0_23] : memref<376x128xbf16, #tpu.memory_space<vmem>>, vector<24x12xbf16>
    %63 = arith.truncf %61 : vector<12x16xf32> to vector<12x16xbf16>
    %cst_24 = arith.constant dense<0.000000e+00> : vector<24x16xf32>
    %64 = tpu.matmul %62, %63, %cst_24 {dimension_numbers = #tpu.dot_dimension_numbers<[1], [0], [0], [1], [0, 0, 1, 1], [], []>} : vector<24x12xbf16>, vector<12x16xbf16>, vector<24x16xf32> -> vector<24x16xf32>
    %65 = arith.truncf %64 : vector<24x16xf32> to vector<24x16xbf16>
    %c120 = arith.constant 120 : index
    %c0_25 = arith.constant 0 : index
    %66 = vector.load %arg2[%c120, %c0_25] : memref<376x128xbf16, #tpu.memory_space<vmem>>, vector<16x16xbf16>
    %cst_26 = arith.constant dense<0.000000e+00> : vector<24x16xf32>
    %67 = tpu.matmul %65, %66, %cst_26 {dimension_numbers = #tpu.dot_dimension_numbers<[1], [0], [0], [1], [0, 0, 1, 1], [], []>} : vector<24x16xbf16>, vector<16x16xbf16>, vector<24x16xf32> -> vector<24x16xf32>
    %c136 = arith.constant 136 : index
    %c0_27 = arith.constant 0 : index
    %68 = vector.load %arg2[%c136, %c0_27] : memref<376x128xbf16, #tpu.memory_space<vmem>>, vector<1x16xbf16>
    %69 = arith.extf %68 : vector<1x16xbf16> to vector<1x16xf32>
    %70 = vector.broadcast %69 : vector<1x16xf32> to vector<24x16xf32>
    %71 = arith.addf %67, %70 : vector<24x16xf32>
    %72 = math.tanh %71 : vector<24x16xf32>
    %73 = arith.truncf %72 : vector<24x16xf32> to vector<24x16xbf16>
    %c144 = arith.constant 144 : index
    %c0_28 = arith.constant 0 : index
    %74 = vector.load %arg2[%c144, %c0_28] : memref<376x128xbf16, #tpu.memory_space<vmem>>, vector<16x16xbf16>
    %cst_29 = arith.constant dense<0.000000e+00> : vector<24x16xf32>
    %75 = tpu.matmul %73, %74, %cst_29 {dimension_numbers = #tpu.dot_dimension_numbers<[1], [0], [0], [1], [0, 0, 1, 1], [], []>} : vector<24x16xbf16>, vector<16x16xbf16>, vector<24x16xf32> -> vector<24x16xf32>
    %76 = vector.shape_cast %72 : vector<24x16xf32> to vector<3x8x16xf32>
    %77 = vector.shape_cast %75 : vector<24x16xf32> to vector<3x8x16xf32>
    %c360 = arith.constant 360 : index
    %c0_30 = arith.constant 0 : index
    %78 = vector.load %arg2[%c360, %c0_30] : memref<376x128xbf16, #tpu.memory_space<vmem>>, vector<8x16xbf16>
    %79 = arith.extf %78 : vector<8x16xbf16> to vector<8x16xf32>
    %80 = vector.shape_cast %79 : vector<8x16xf32> to vector<1x8x16xf32>
    %81 = vector.broadcast %80 : vector<1x8x16xf32> to vector<3x8x16xf32>
    %82 = arith.addf %77, %81 : vector<3x8x16xf32>
    %cst_31 = arith.constant dense<0xFF800000> : vector<3x16xf32>
    %83 = vector.multi_reduction <maximumf>, %82, %cst_31 [1] : vector<3x8x16xf32> to vector<3x16xf32>
    %84 = vector.shape_cast %83 : vector<3x16xf32> to vector<3x1x16xf32>
    %85 = vector.broadcast %84 : vector<3x1x16xf32> to vector<3x8x16xf32>
    %86 = arith.subf %82, %85 : vector<3x8x16xf32>
    %87 = math.exp %86 : vector<3x8x16xf32>
    %88 = arith.mulf %87, %76 : vector<3x8x16xf32>
    %cst_32 = arith.constant dense<0.000000e+00> : vector<3x16xf32>
    %89 = vector.multi_reduction <add>, %88, %cst_32 [1] : vector<3x8x16xf32> to vector<3x16xf32>
    %cst_33 = arith.constant dense<0.000000e+00> : vector<3x16xf32>
    %90 = vector.multi_reduction <add>, %87, %cst_33 [1] : vector<3x8x16xf32> to vector<3x16xf32>
    %91 = tpu.reciprocal %90 {approx = true} : vector<3x16xf32> -> vector<3x16xf32>
    %92 = arith.mulf %89, %91 : vector<3x16xf32>
    %c344 = arith.constant 344 : index
    %c0_34 = arith.constant 0 : index
    %93 = vector.load %arg2[%c344, %c0_34] : memref<376x128xbf16, #tpu.memory_space<vmem>>, vector<8x3xbf16>
    %94 = arith.truncf %92 : vector<3x16xf32> to vector<3x16xbf16>
    %cst_35 = arith.constant dense<0.000000e+00> : vector<8x16xf32>
    %95 = tpu.matmul %93, %94, %cst_35 {dimension_numbers = #tpu.dot_dimension_numbers<[1], [0], [0], [1], [0, 0, 1, 1], [], []>} : vector<8x3xbf16>, vector<3x16xbf16>, vector<8x16xf32> -> vector<8x16xf32>
    %96 = arith.truncf %95 : vector<8x16xf32> to vector<8x16xbf16>
    %c160 = arith.constant 160 : index
    %c0_36 = arith.constant 0 : index
    %97 = vector.load %arg2[%c160, %c0_36] : memref<376x128xbf16, #tpu.memory_space<vmem>>, vector<16x16xbf16>
    %cst_37 = arith.constant dense<0.000000e+00> : vector<8x16xf32>
    %98 = tpu.matmul %96, %97, %cst_37 {dimension_numbers = #tpu.dot_dimension_numbers<[1], [0], [0], [1], [0, 0, 1, 1], [], []>} : vector<8x16xbf16>, vector<16x16xbf16>, vector<8x16xf32> -> vector<8x16xf32>
    %c176 = arith.constant 176 : index
    %c0_38 = arith.constant 0 : index
    %99 = vector.load %arg2[%c176, %c0_38] : memref<376x128xbf16, #tpu.memory_space<vmem>>, vector<1x16xbf16>
    %100 = arith.extf %99 : vector<1x16xbf16> to vector<1x16xf32>
    %101 = vector.broadcast %100 : vector<1x16xf32> to vector<8x16xf32>
    %102 = arith.addf %98, %101 : vector<8x16xf32>
    %103 = math.tanh %102 : vector<8x16xf32>
    %104 = arith.truncf %103 : vector<8x16xf32> to vector<8x16xbf16>
    %c184 = arith.constant 184 : index
    %c0_39 = arith.constant 0 : index
    %105 = vector.load %arg2[%c184, %c0_39] : memref<376x128xbf16, #tpu.memory_space<vmem>>, vector<16x16xbf16>
    %cst_40 = arith.constant dense<0.000000e+00> : vector<8x16xf32>
    %106 = tpu.matmul %104, %105, %cst_40 {dimension_numbers = #tpu.dot_dimension_numbers<[1], [0], [0], [1], [0, 0, 1, 1], [], []>} : vector<8x16xbf16>, vector<16x16xbf16>, vector<8x16xf32> -> vector<8x16xf32>
    %107 = vector.shape_cast %103 : vector<8x16xf32> to vector<1x8x16xf32>
    %108 = vector.shape_cast %106 : vector<8x16xf32> to vector<1x8x16xf32>
    %c368 = arith.constant 368 : index
    %c0_41 = arith.constant 0 : index
    %109 = vector.load %arg2[%c368, %c0_41] : memref<376x128xbf16, #tpu.memory_space<vmem>>, vector<8x16xbf16>
    %110 = arith.extf %109 : vector<8x16xbf16> to vector<8x16xf32>
    %111 = vector.shape_cast %110 : vector<8x16xf32> to vector<1x8x16xf32>
    %112 = arith.addf %108, %111 : vector<1x8x16xf32>
    %cst_42 = arith.constant dense<0xFF800000> : vector<1x16xf32>
    %113 = vector.multi_reduction <maximumf>, %112, %cst_42 [1] : vector<1x8x16xf32> to vector<1x16xf32>
    %114 = vector.shape_cast %113 : vector<1x16xf32> to vector<1x1x16xf32>
    %115 = vector.broadcast %114 : vector<1x1x16xf32> to vector<1x8x16xf32>
    %116 = arith.subf %112, %115 : vector<1x8x16xf32>
    %117 = math.exp %116 : vector<1x8x16xf32>
    %118 = arith.mulf %117, %107 : vector<1x8x16xf32>
    %cst_43 = arith.constant dense<0.000000e+00> : vector<1x16xf32>
    %119 = vector.multi_reduction <add>, %118, %cst_43 [1] : vector<1x8x16xf32> to vector<1x16xf32>
    %cst_44 = arith.constant dense<0.000000e+00> : vector<1x16xf32>
    %120 = vector.multi_reduction <add>, %117, %cst_44 [1] : vector<1x8x16xf32> to vector<1x16xf32>
    %121 = tpu.reciprocal %120 {approx = true} : vector<1x16xf32> -> vector<1x16xf32>
    %122 = arith.mulf %119, %121 : vector<1x16xf32>
    %123 = arith.truncf %122 : vector<1x16xf32> to vector<1x16xbf16>
    %c200 = arith.constant 200 : index
    %c0_45 = arith.constant 0 : index
    %124 = vector.load %arg2[%c200, %c0_45] : memref<376x128xbf16, #tpu.memory_space<vmem>>, vector<16x128xbf16>
    %cst_46 = arith.constant dense<0.000000e+00> : vector<1x128xf32>
    %125 = tpu.matmul %123, %124, %cst_46 {dimension_numbers = #tpu.dot_dimension_numbers<[1], [0], [0], [1], [0, 0, 1, 1], [], []>} : vector<1x16xbf16>, vector<16x128xbf16>, vector<1x128xf32> -> vector<1x128xf32>
    %c216 = arith.constant 216 : index
    %c0_47 = arith.constant 0 : index
    %126 = vector.load %arg2[%c216, %c0_47] : memref<376x128xbf16, #tpu.memory_space<vmem>>, vector<1x128xbf16>
    %127 = arith.extf %126 : vector<1x128xbf16> to vector<1x128xf32>
    %128 = arith.addf %125, %127 : vector<1x128xf32>
    %c0_48 = arith.constant 0 : index
    %c0_49 = arith.constant 0 : index
    %c0_50 = arith.constant 0 : index
    %129 = vector.load %arg3[%c0_48, %c0_49, %c0_50] : memref<1x1x128xf32, #tpu.memory_space<vmem>>, vector<1x1x128xf32>
    %130 = vector.shape_cast %129 : vector<1x1x128xf32> to vector<1x128xf32>
    %131 = vector.shape_cast %128 : vector<1x128xf32> to vector<1x1x128xf32>
    tpu.vector_store %arg3[%c0_48, %c0_49, %c0_50], %131 {strides = array<i32>} : memref<1x1x128xf32, #tpu.memory_space<vmem>>, vector<1x1x128xf32>,
    return
  }
  func.func @transform_0(%arg0: i32) -> (i32, i32, i32) {
    %c0_i32 = arith.constant 0 : i32
    %c0_i32_0 = arith.constant 0 : i32
    %c0_i32_1 = arith.constant 0 : i32
    return %arg0, %c0_i32, %c0_i32_0 : i32, i32, i32
  }
  func.func @transform_1(%arg0: i32) -> (i32, i32) {
    %c0_i32 = arith.constant 0 : i32
    %c0_i32_0 = arith.constant 0 : i32
    %c0_i32_1 = arith.constant 0 : i32
    return %c0_i32, %c0_i32_0 : i32, i32
  }
  func.func @transform_2(%arg0: i32) -> (i32, i32, i32) {
    %c0_i32 = arith.constant 0 : i32
    %c0_i32_0 = arith.constant 0 : i32
    %c0_i32_1 = arith.constant 0 : i32
    return %arg0, %c0_i32, %c0_i32_0 : i32, i32, i32
  }
}

</mosaic_0001>

<bundles_post_ra>
// kernel: muil_han_forward.1
= control target key start
LH: loop header
LB: loop body
LE: loop exit
PB: predicated region body
PF: predicated region fallthrough
CT: control target
= control target key end

     0   :  { %7 = vsyncpa [#allocation3], 0  ;;  %s4830_s0 = inlined_call_operand.vmem [shape: s32[2,288,1], index: 0, kind: input, shape index: {}]   ;;  %s4831_s1 = inlined_call_operand.vmem [shape: bf16[376,128], index: 1, kind: input, shape index: {}]   ;;  %s4832_s2 = inlined_call_operand.hbm [shape: f32[2,1,128], index: 2, kind: output, shape index: {}]  }
   0x1   :  { %9 = vsyncpa [#allocation3 + $0x1], 0  ;;  %s3574_s9 = smov 0   ;;  %s3576_s10 = smov 0  }
   0x2   :  { %s3578_s11 = smov 0   ;;  %s3580_s12 = smov 0  }
   0x3 LB: > { %s3595_s13 = sadd.s32 4294967295, %s3554_s12   ;;  %s2968_s14 = sadd.s32 4294967294, %s3554_s12   ;;  %s3554_s12 = sphi %s3580_s12, %s4879_s12   ;;  %s3550_s11 = sphi %s3578_s11, %s4878_s11   ;;  %s3546_s10 = sphi %s3576_s10, %s4877_s10   ;;  %s3542_s9 = sphi %s3574_s9, %s4876_s9  }
   0x4   : > { %s3599_s15 = sadd.s32 1, %s3554_s12   ;;  %s69_s16 = sadd.s32 1, %s3550_s11 }
   0x5   : > { %s66_s17 = ssub.s32 %s3554_s12, %s3599_s15  ;;  %p79_p0 = scmp.ne.s32.totalorder %s3550_s11, %s3546_s10 }
   0x6   : > { %p67_p1 = scmp.eq.s32.totalorder %s66_s17, 0  ;;  %p80_p2 = scmp.eq.s32.totalorder %s3595_s13, 1 }
   0x7   : > { %p85_p3 = scmp.ne.s32.totalorder %s3546_s10, %s3542_s9  ;;  %p86_p4 = scmp.eq.s32.totalorder %s2968_s14, 1 }
   0x8   : > { %s3610_s18 = scalar_select %p67_p1, %s3550_s11, %s69_s16  }
   0x9   : > { %p3612_p5 = por %p80_p2, %p79_p0  ;;  %p3616_p6 = por %p86_p4, %p85_p3 }
   0xa   : > { %p2971_p7 = scmp.ge.s32.totalorder %s3554_s12, 1  ;;  %p115_p8 = scmp.lt.s32.totalorder %s3554_s12, 3 }
   0xc   : > { %p116_p9 = pnand %p2971_p7, %p115_p8 }
   0xe   : > { %119 = sbr.rel (%p116_p9) target bundleno = 2434 (0x982), region = 28 }
  0x13   : > { %p136_p10 = scmp.lt.s32.totalorder %s3595_s13, 1  ;;  %v3556_v0 = vmov 0   ;;  %v384_v31 = vld [vmem:[%s4831_s1 + $0x18] sm:$0xf]  ;;  %vm464_vm0 = vcmask 1043456   ;;  %v3113_v38 = vld [vmem:[%s4831_s1 + $0x10] sm:$0xff]  ;;  %v178_v47 = vlaneseq  ;;  %s2909_s28 = scalar_lea.hbm %s4832_s2, %s3595_s13 }
  0x14   : > { %3179 = vset.pattern.permute.xlu2 %v3556_v0  ;;  %3178 = vset.pattern.permute.xlu1 %v3556_v0  ;;  %v401_v32 = vunpack.c.l.b16 %v384_v31  ;;  %v3112_v41 = vld [vmem:[%s4831_s1 + $0x8] sm:$0xff]  ;;  %v3111_v43 = vld [vmem:[%s4831_s1] sm:$0xff]  ;;  %v3557_v54 = vmov 0.0   ;;  %vm409_vm3 = vcmask 457728   ;;  %s134_s23 = sand.u32 1, %s3546_s10   ;;  %s2913_s3 = sshll.u32 %s2909_s28, 4  ;;  %s2914_s3 = int_to_ptr.hbm [resolvable:$true] %s2913_s3 }
  0x15   : > { %3177 = vset.pattern.permute.xlu0 %v3556_v0  ;;  %s137_s21 = scalar_select %p136_p10, %s3595_s13, 1  ;;  %v3679_v50 = vand.u32 127, %v178_v47 }
  0x16   : > { %v405_v36 = vpack.c.b16 %v401_v32, %v401_v32  ;;  %s135_s29 = scalar_lea.vmem [#allocation2], %s134_s23  ;;  %s2901_s4 = scalar_lea.sflag [#allocation3], %s134_s23 }
  0x17   : > { %s3134_s22 = smul.u32 288, %s137_s21  ;;  %s2911_s30 = sshll.u32 %s135_s29, 4  ;;  %s2912_s30 = int_to_ptr.vmem [resolvable:$true] %s2911_s30 }
  0x18   : > { %v466_v37 = vsel %vm464_vm0, %v405_v36, 0  ;;  %s3506_s5 = sshra.s32 %s2914_s3, 4  ;;  %s3512_s13 = scalar_lea.hbm %s4832_s2, 2  ;;  %s3507_s5 = int_to_ptr.hbm [resolvable:$true] %s3506_s5 }
  0x19   : > { %s3627_s25 = scalar_lea.vmem %s4830_s0, %s3134_s22  ;;  %472 = vmatpush.bf16.msra.mxu0 %v466_v37  ;;  %3129 = vmatpush.bf16.msra.mxu3 %v466_v37  ;;  %s3508_s6 = scalar_lea.hbm %s3507_s5, 1 }
  0x1a   : > { %v146_v1 = vld [vmem:[%s3627_s25 + $0x20] sm:$0xff]  ;;  %v144_v2 = vld [vmem:[%s3627_s25 + $0x10] sm:$0xff]  ;;  %v147_v4 = vld [vmem:[%s3627_s25 + $0x28] sm:$0xff]  ;;  %p3509_p11 = scmp.ne.s32.totalorder %s3507_s5, %s3508_s6  ;;  %p3513_p0 = scmp.lt.s32.totalorder %s3507_s5, %s4832_s2 }
  0x1b   : > { %v142_v3 = vld [vmem:[%s3627_s25] sm:$0xff]  ;;  %193 = vperm.xlu2 %3179, %v146_v1   ;;  %187 = vperm.xlu1 %3178, %v144_v2   ;;  %v145_v5 = vld [vmem:[%s3627_s25 + $0x18] sm:$0xff]  ;;  %v143_v6 = vld [vmem:[%s3627_s25 + $0x8] sm:$0xff]  ;;  %p3514_p1 = scmp.lt.s32.totalorder %s3512_s13, %s3508_s6 }
  0x1c   : > { %181 = vperm.xlu0 %3177, %v142_v3   ;;  %v150_v7 = vld [vmem:[%s3627_s25 + $0x40] sm:$0xff]  ;;  %v149_v8 = vld [vmem:[%s3627_s25 + $0x38] sm:$0xff]  ;;  %v148_v9 = vld [vmem:[%s3627_s25 + $0x30] sm:$0xff]  ;;  %p3510_p12 = pnand %p3509_p11, %p3612_p5 }
  0x1d   : > { %v153_v10 = vld [vmem:[%s3627_s25 + $0x58] sm:$0xff]  ;;  %v152_v11 = vld [vmem:[%s3627_s25 + $0x50] sm:$0xff]  ;;  %v151_v12 = vld [vmem:[%s3627_s25 + $0x48] sm:$0xff]  ;;  %473 = vmatpush.bf16.msra.mxu0 %v3113_v38  ;;  %3130 = vmatpush.bf16.msra.mxu3 %v3113_v38  ;;  %p3515_p2 = por %p3514_p1, %p3513_p0 }
  0x1e   : > { %v156_v13 = vld [vmem:[%s3627_s25 + $0x70] sm:$0xff]  ;;  %v155_v14 = vld [vmem:[%s3627_s25 + $0x68] sm:$0xff]  ;;  %v154_v15 = vld [vmem:[%s3627_s25 + $0x60] sm:$0xff]  ;;  %p3511_p13 = pneg %p3510_p12 }
  0x1f   : > { %v159_v16 = vld [vmem:[%s3627_s25 + $0x88] sm:$0xff]  ;;  %v158_v17 = vld [vmem:[%s3627_s25 + $0x80] sm:$0xff]  ;;  %v157_v18 = vld [vmem:[%s3627_s25 + $0x78] sm:$0xff] }
  0x20   : > { %v162_v19 = vld [vmem:[%s3627_s25 + $0xa0] sm:$0xff]  ;;  %v161_v20 = vld [vmem:[%s3627_s25 + $0x98] sm:$0xff]  ;;  %v160_v21 = vld [vmem:[%s3627_s25 + $0x90] sm:$0xff]  ;;  %p3516_p3 = pnand %p3515_p2, %p3511_p13 }
  0x21   : > { %v165_v22 = vld [vmem:[%s3627_s25 + $0xb8] sm:$0xff]  ;;  %v164_v23 = vld [vmem:[%s3627_s25 + $0xb0] sm:$0xff]  ;;  %v163_v24 = vld [vmem:[%s3627_s25 + $0xa8] sm:$0xff]  ;;  %474 = vmatpush.bf16.msra.mxu0 %v3112_v41  ;;  %3131 = vmatpush.bf16.msra.mxu3 %v3112_v41 }
  0x22   : > { %v168_v25 = vld [vmem:[%s3627_s25 + $0xd0] sm:$0xff]  ;;  %v167_v26 = vld [vmem:[%s3627_s25 + $0xc8] sm:$0xff]  ;;  %v166_v27 = vld [vmem:[%s3627_s25 + $0xc0] sm:$0xff] }
  0x23   : > { %196 = vperm.xlu2 %3179, %v147_v4   ;;  %190 = vperm.xlu1 %3178, %v145_v5   ;;  %v171_v28 = vld [vmem:[%s3627_s25 + $0xe8] sm:$0xff]  ;;  %v170_v29 = vld [vmem:[%s3627_s25 + $0xe0] sm:$0xff]  ;;  %v169_v30 = vld [vmem:[%s3627_s25 + $0xd8] sm:$0xff] }
  0x24   : > { %184 = vperm.xlu0 %3177, %v143_v6   ;;  %v172_v33 = vld [vmem:[%s3627_s25 + $0xf0] sm:$0xff]  ;;  %v175_v34 = vld [vmem:[%s3627_s25 + $0x108] sm:$0xff]  ;;  %v174_v35 = vld [vmem:[%s3627_s25 + $0x100] sm:$0xff] }
  0x25   : > { %v177_v39 = vld [vmem:[%s3627_s25 + $0x118] sm:$0xff]  ;;  %v176_v40 = vld [vmem:[%s3627_s25 + $0x110] sm:$0xff]  ;;  %475 = vmatpush.bf16.msra.mxu0 %v3111_v43  ;;  %3132 = vmatpush.bf16.msra.mxu3 %v3111_v43 }
  0x26   : > { %v173_v42 = vld [vmem:[%s3627_s25 + $0xf8] sm:$0xff] }
  0x2b   : > { %205 = vperm.xlu2 %3179, %v150_v7   ;;  %202 = vperm.xlu1 %3178, %v149_v8  }
  0x2c   : > { %199 = vperm.xlu0 %3177, %v148_v9  }
  0x33   : > { %214 = vperm.xlu2 %3179, %v153_v10   ;;  %211 = vperm.xlu1 %3178, %v152_v11  }
  0x34   : > { %208 = vperm.xlu0 %3177, %v151_v12  }
  0x3b   : > { %223 = vperm.xlu2 %3179, %v156_v13   ;;  %220 = vperm.xlu1 %3178, %v155_v14  }
  0x3c   : > { %217 = vperm.xlu0 %3177, %v154_v15  }
  0x43   : > { %232 = vperm.xlu2 %3179, %v159_v16   ;;  %229 = vperm.xlu1 %3178, %v158_v17  }
  0x44   : > { %226 = vperm.xlu0 %3177, %v157_v18  }
  0x4b   : > { %241 = vperm.xlu2 %3179, %v162_v19   ;;  %238 = vperm.xlu1 %3178, %v161_v20  }
  0x4c   : > { %235 = vperm.xlu0 %3177, %v160_v21  }
  0x53   : > { %250 = vperm.xlu2 %3179, %v165_v22   ;;  %247 = vperm.xlu1 %3178, %v164_v23  }
  0x54   : > { %244 = vperm.xlu0 %3177, %v163_v24  }
  0x5b   : > { %259 = vperm.xlu2 %3179, %v168_v25   ;;  %256 = vperm.xlu1 %3178, %v167_v26  }
  0x5c   : > { %253 = vperm.xlu0 %3177, %v166_v27  }
  0x63   : > { %268 = vperm.xlu2 %3179, %v171_v28   ;;  %265 = vperm.xlu1 %3178, %v170_v29  }
  0x64   : > { %262 = vperm.xlu0 %3177, %v169_v30  }
  0x6b   : > { %271 = vperm.xlu2 %3179, %v172_v33   ;;  %280 = vperm.xlu1 %3178, %v175_v34  }
  0x6c   : > { %277 = vperm.xlu0 %3177, %v174_v35  }
  0x73   : > { %286 = vperm.xlu2 %3179, %v177_v39   ;;  %283 = vperm.xlu1 %3178, %v176_v40  }
  0x74   : > { %274 = vperm.xlu0 %3177, %v173_v42  }
  0x75   : > { %v194_v44 = vpop.permute.xlu2 %193 }
  0x76   : > { %vm292_vm8 = vcmp.eq.s32.totalorder %v194_v44, %v3679_v50 }
  0x77   : > { %v328_v10 = vsel %vm292_vm8, 1.0, %v3557_v54 }
  0x7d   : > { %v197_v45 = vpop.permute.xlu2 %196 }
  0x7e   : > { %vm293_vm9 = vcmp.eq.s32.totalorder %v197_v45, %v3679_v50 }
  0x7f   : > { %v329_v11 = vsel %vm293_vm9, 1.0, %v3557_v54 }
  0x80   : > { %v362_v18 = vpack.c.bf16 %v329_v11, %v328_v10  ;;  %v3114_v10 = vld [vmem:[%s4831_s1 + $0x20] sm:$0xff]  ;;  %v385_v11 = vld [vmem:[%s4831_s1 + $0x1c] sm:$0x1] }
  0x81   : > { %691 = vmatpush.bf16.msra.mxu1 %v3114_v10  ;;  %3133 = vmatpush.bf16.msra.mxu2 %v3114_v10 }
  0x85   : > { %v3677_v46 = vpop.permute.xlu2 %205 }
  0x86   : > { %vm296_vm9 = vcmp.eq.s32.totalorder %v3677_v46, %v3679_v50 }
  0x87   : > { %v332_v45 = vsel %vm296_vm9, 1.0, %v3557_v54  ;;  %vm1907_vm9 = vcmask 1042434  }
  0x8d   : > { %v188_v48 = vpop.permute.xlu1 %187  ;;  %v3681_v51 = vpop.permute.xlu2 %214 }
  0x8e   : > { %v182_v49 = vpop.permute.xlu0 %181  ;;  %vm290_vm4 = vcmp.eq.s32.totalorder %v188_v48, %v3679_v50 }
  0x8f   : > { %vm288_vm1 = vcmp.eq.s32.totalorder %v182_v49, %v3679_v50  ;;  %v326_v62 = vsel %vm290_vm4, 1.0, %v3557_v54 }
  0x90   : > { %v324_v55 = vsel %vm288_vm1, 1.0, %v3557_v54 }
  0x95   : > { %v191_v52 = vpop.permute.xlu1 %190  ;;  %v224_v60 = vpop.permute.xlu2 %223 }
  0x96   : > { %v185_v53 = vpop.permute.xlu0 %184  ;;  %vm291_vm5 = vcmp.eq.s32.totalorder %v191_v52, %v3679_v50  ;;  %vm302_vm11 = vcmp.eq.s32.totalorder %v224_v60, %v3679_v50 }
  0x97   : > { %vm289_vm2 = vcmp.eq.s32.totalorder %v185_v53, %v3679_v50  ;;  %v327_v63 = vsel %vm291_vm5, 1.0, %v3557_v54  ;;  %v3722_v15 = vsel %vm302_vm11, 1.0, %v3557_v54 }
  0x98   : > { %v325_v56 = vsel %vm289_vm2, 1.0, %v3557_v54  ;;  %v361_v1 = vpack.c.bf16 %v327_v63, %v326_v62 }
  0x99   : > { %v360_v57 = vpack.c.bf16 %v325_v56, %v324_v55 }
  0x9b   : > { %2985 = vmatmul.msk.bf16.vlgmr.msra.gmra.mxu0 %vm409_vm3, %v360_v57 }
  0x9d   : > { %v203_v58 = vpop.permute.xlu1 %202  ;;  %v233_v2 = vpop.permute.xlu2 %232 }
  0x9e   : > { %v200_v59 = vpop.permute.xlu0 %199  ;;  %vm305_vm10 = vcmp.eq.s32.totalorder %v233_v2, %v3679_v50  ;;  %vm295_vm0 = vcmp.eq.s32.totalorder %v203_v58, %v3679_v50 }
  0x9f   : > { %v3715_v13 = vsel %vm305_vm10, 1.0, %v3557_v54  ;;  %vm294_vm1 = vcmp.eq.s32.totalorder %v200_v59, %v3679_v50  ;;  %v331_v27 = vsel %vm295_vm0, 1.0, %v3557_v54 }
  0xa0   : > { %v330_v28 = vsel %vm294_vm1, 1.0, %v3557_v54  ;;  %vm299_vm1 = vcmp.eq.s32.totalorder %v3681_v51, %v3679_v50 }
  0xa1   : > { %v363_v36 = vpack.c.bf16 %v331_v27, %v330_v28 }
  0xa5   : > { %v3690_v61 = vpop.permute.xlu1 %211  ;;  %v242_v8 = vpop.permute.xlu2 %241 }
  0xa6   : > { %v3694_v0 = vpop.permute.xlu0 %208  ;;  %vm308_vm4 = vcmp.eq.s32.totalorder %v242_v8, %v3679_v50 }
  0xa7   : > { %v3757_v33 = vsel %vm308_vm4, 1.0, %v3557_v54  ;;  %vm297_vm10 = vcmp.eq.s32.totalorder %v3694_v0, %v3679_v50 }
  0xa8   : > { %v333_v47 = vsel %vm297_vm10, 1.0, %v3557_v54  ;;  %vm1909_vm10 = vcmask 1043459  }
  0xa9   : > { %v364_v56 = vpack.c.bf16 %v333_v47, %v332_v45 }
  0xab   : > { %2986 = vmatmul.msk.bf16.gmra.mxu0 %vm409_vm3, %v361_v1  ;;  %v335_v1 = vsel %vm299_vm1, 1.0, %v3557_v54  ;;  %vm2570_vm1 = vcmask 1045504  }
  0xad   : > { %v221_v3 = vpop.permute.xlu1 %220  ;;  %v251_v20 = vpop.permute.xlu2 %250 }
  0xae   : > { %vm301_vm6 = vcmp.eq.s32.totalorder %v221_v3, %v3679_v50  ;;  %v218_v4 = vpop.permute.xlu0 %217  ;;  %vm311_vm2 = vcmp.eq.s32.totalorder %v251_v20, %v3679_v50 }
  0xaf   : > { %v3699_v5 = vsel %vm301_vm6, 1.0, %v3557_v54  ;;  %vm300_vm7 = vcmp.eq.s32.totalorder %v218_v4, %v3679_v50  ;;  %v3750_v30 = vsel %vm311_vm2, 1.0, %v3557_v54  ;;  %vm298_vm2 = vcmp.eq.s32.totalorder %v3690_v61, %v3679_v50 }
  0xb0   : > { %v3703_v6 = vsel %vm300_vm7, 1.0, %v3557_v54  ;;  %v334_v2 = vsel %vm298_vm2, 1.0, %v3557_v54  ;;  %vm2563_vm2 = vcmask 97280  }
  0xb1   : > { %v366_v7 = vpack.c.bf16 %v3699_v5, %v3703_v6  ;;  %v365_v4 = vpack.c.bf16 %v335_v1, %v334_v2 }
  0xb5   : > { %v230_v9 = vpop.permute.xlu1 %229  ;;  %v260_v31 = vpop.permute.xlu2 %259 }
  0xb6   : > { %vm304_vm12 = vcmp.eq.s32.totalorder %v230_v9, %v3679_v50  ;;  %v227_v12 = vpop.permute.xlu0 %226 }
  0xb7   : > { %v3718_v14 = vsel %vm304_vm12, 1.0, %v3557_v54  ;;  %vm303_vm13 = vcmp.eq.s32.totalorder %v227_v12, %v3679_v50  ;;  %vm314_vm12 = vcmp.eq.s32.totalorder %v260_v31, %v3679_v50  ;;  %v386_v12 = vunpack.c.l.bf16 %v385_v11 }
  0xb8   : > { %v368_v16 = vpack.c.bf16 %v3715_v13, %v3718_v14  ;;  %v3727_v17 = vsel %vm303_vm13, 1.0, %v3557_v54  ;;  %v3794_v52 = vsel %vm314_vm12, 1.0, %v3557_v54  ;;  %vm1913_vm12 = vcmask 1045509  }
  0xb9   : > { %v367_v19 = vpack.c.bf16 %v3727_v17, %v3722_v15  ;;  %v3837_v5 = vperm.slane %v386_v12, 0 }
  0xbb   : > { %2987 = vmatmul.msk.bf16.gmra.mxu0 %vm409_vm3, %v362_v18 }
  0xbd   : > { %v239_v21 = vpop.permute.xlu1 %238  ;;  %v269_v42 = vpop.permute.xlu2 %268 }
  0xbe   : > { %vm307_vm14 = vcmp.eq.s32.totalorder %v239_v21, %v3679_v50  ;;  %v236_v22 = vpop.permute.xlu0 %235  ;;  %vm317_vm11 = vcmp.eq.s32.totalorder %v269_v42, %v3679_v50 }
  0xbf   : > { %v3734_v23 = vsel %vm307_vm14, 1.0, %v3557_v54  ;;  %vm306_vm15 = vcmp.eq.s32.totalorder %v236_v22, %v3679_v50  ;;  %v3787_v49 = vsel %vm317_vm11, 1.0, %v3557_v54  ;;  %vm1911_vm11 = vcmask 1044484  }
  0xc0   : > { %v3738_v24 = vsel %vm306_vm15, 1.0, %v3557_v54 }
  0xc1   : > { %v369_v25 = vpack.c.bf16 %v3734_v23, %v3738_v24 }
  0xc5   : > { %v248_v26 = vpop.permute.xlu1 %247  ;;  %v3807_v62 = vpop.permute.xlu2 %271 }
  0xc6   : > { %vm310_vm5 = vcmp.eq.s32.totalorder %v248_v26, %v3679_v50  ;;  %v245_v29 = vpop.permute.xlu0 %244 }
  0xc7   : > { %v3753_v32 = vsel %vm310_vm5, 1.0, %v3557_v54  ;;  %vm309_vm6 = vcmp.eq.s32.totalorder %v245_v29, %v3679_v50 }
  0xc8   : > { %v371_v34 = vpack.c.bf16 %v3750_v30, %v3753_v32  ;;  %v3762_v35 = vsel %vm309_vm6, 1.0, %v3557_v54  ;;  %vm629_vm6 = vcmask 130048  }
  0xc9   : > { %v370_v37 = vpack.c.bf16 %v3762_v35, %v3757_v33 }
  0xcb   : > { %2988 = vmatmul.msk.bf16.gmra.mxu0 %vm409_vm3, %v363_v36 }
  0xcd   : > { %v257_v38 = vpop.permute.xlu1 %256  ;;  %v287_v8 = vpop.permute.xlu2 %286 }
  0xce   : > { %vm313_vm7 = vcmp.eq.s32.totalorder %v257_v38, %v3679_v50  ;;  %v254_v39 = vpop.permute.xlu0 %253  ;;  %vm323_vm5 = vcmp.eq.s32.totalorder %v287_v8, %v3679_v50 }
  0xcf   : > { %v3769_v40 = vsel %vm313_vm7, 1.0, %v3557_v54  ;;  %vm312_vm8 = vcmp.eq.s32.totalorder %v254_v39, %v3679_v50  ;;  %v359_v9 = vsel %vm323_vm5, 1.0, %v3557_v54  ;;  %vm2765_vm5 = vcmask 23552  }
  0xd0   : > { %v3773_v41 = vsel %vm312_vm8, 1.0, %v3557_v54  ;;  %vm318_vm8 = vcmp.eq.s32.totalorder %v3807_v62, %v3679_v50 }
  0xd1   : > { %v372_v43 = vpack.c.bf16 %v3769_v40, %v3773_v41  ;;  %v354_v10 = vsel %vm318_vm8, 1.0, %v3557_v54 }
  0xd5   : > { %v266_v44 = vpop.permute.xlu1 %265 }
  0xd6   : > { %vm316_vm13 = vcmp.eq.s32.totalorder %v266_v44, %v3679_v50  ;;  %v263_v48 = vpop.permute.xlu0 %262 }
  0xd7   : > { %v3790_v46 = vsel %vm316_vm13, 1.0, %v3557_v54  ;;  %vm315_vm14 = vcmp.eq.s32.totalorder %v263_v48, %v3679_v50  ;;  %vm1915_vm13 = vcmask 1046534  }
  0xd8   : > { %v374_v53 = vpack.c.bf16 %v3787_v49, %v3790_v46  ;;  %v3799_v55 = vsel %vm315_vm14, 1.0, %v3557_v54  ;;  %vm1917_vm14 = vcmask 1047559  }
  0xd9   : > { %v373_v57 = vpack.c.bf16 %v3799_v55, %v3794_v52 }
  0xdb   : > { %2989 = vmatmul.msk.bf16.gmra.mxu0 %vm409_vm3, %v364_v56 }
  0xdd   : > { %v281_v58 = vpop.permute.xlu1 %280 }
  0xde   : > { %vm321_vm15 = vcmp.eq.s32.totalorder %v281_v58, %v3679_v50  ;;  %v278_v59 = vpop.permute.xlu0 %277 }
  0xdf   : > { %v357_v60 = vsel %vm321_vm15, 1.0, %v3557_v54  ;;  %vm320_vm0 = vcmp.eq.s32.totalorder %v278_v59, %v3679_v50  ;;  %vm1967_vm15 = vcmask 1041408  }
  0xe0   : > { %v356_v63 = vsel %vm320_vm0, 1.0, %v3557_v54  ;;  %vm1948_vm0 = vcmask 293888  }
  0xe1   : > { %v376_v0 = vpack.c.bf16 %v357_v60, %v356_v63 }
  0xe3   : > { %3001 = vmatmul.msk.bf16.vlgmr.msra.gmra.mxu3 %vm409_vm3, %v376_v0 }
  0xe5   : > { %v284_v3 = vpop.permute.xlu1 %283 }
  0xe6   : > { %vm322_vm4 = vcmp.eq.s32.totalorder %v284_v3, %v3679_v50  ;;  %v275_v8 = vpop.permute.xlu0 %274 }
  0xe7   : > { %v358_v51 = vsel %vm322_vm4, 1.0, %v3557_v54  ;;  %vm319_vm7 = vcmp.eq.s32.totalorder %v275_v8, %v3679_v50  ;;  %vm2769_vm4 = vcmask 1040384  }
  0xe8   : > { %v377_v61 = vpack.c.bf16 %v359_v9, %v358_v51  ;;  %v355_v46 = vsel %vm319_vm7, 1.0, %v3557_v54 }
  0xeb   : > { %2990 = vmatmul.msk.bf16.gmra.mxu0 %vm409_vm3, %v365_v4 }
  0xf3   : > { %3002 = vmatmul.msk.bf16.gmra.mxu3 %vm409_vm3, %v377_v61 }
  0xfb   : > { %2991 = vmatmul.msk.bf16.gmra.mxu0 %vm409_vm3, %v366_v7 }
 0x10b   : > { %2992 = vmatmul.msk.bf16.gmra.mxu0 %vm409_vm3, %v367_v19 }
 0x118   : > { %v477_v18 = vpop.f32.mrf.mxu0 }
 0x119   : > { %v478_v6 = vadd.f32 %v477_v18, %v3837_v5 }
 0x11b   : > { %2993 = vmatmul.msk.bf16.gmra.mxu0 %vm409_vm3, %v368_v16  ;;  %3180 = vtanh.f32 %v478_v6  ;;  %v375_v6 = vpack.c.bf16 %v355_v46, %v354_v10 }
 0x120   : > { %v479_v7 = vpop.f32.mrf.mxu0 }
 0x121   : > { %v480_v15 = vadd.f32 %v479_v7, %v3837_v5  ;;  %v3845_v17 = vpop.eup %3180 }
 0x123   : > { %3182 = vtanh.f32 %v480_v15 }
 0x128   : > { %v482_v19 = vpop.f32.mrf.mxu0 }
 0x129   : > { %v3847_v20 = vpop.eup %3182  ;;  %v483_v13 = vadd.f32 %v482_v19, %v3837_v5 }
 0x12a   : > { %v603_v21 = vpack.c.bf16 %v3847_v20, %v3845_v17 }
 0x12b   : > { %2994 = vmatmul.msk.bf16.gmra.mxu0 %vm409_vm3, %v369_v25  ;;  %3184 = vtanh.f32 %v483_v13 }
 0x12c   : > { %3007 = vmatmul.msk.bf16.vlgmr.msra.gmra.mxu1 %vm629_vm6, %v603_v21 }
 0x130   : > { %v484_v14 = vpop.f32.mrf.mxu0 }
 0x131   : > { %v485_v16 = vadd.f32 %v484_v14, %v3837_v5  ;;  %v3858_v22 = vpop.eup %3184 }
 0x133   : > { %3186 = vtanh.f32 %v485_v16 }
 0x138   : > { %v487_v26 = vpop.f32.mrf.mxu0 }
 0x139   : > { %v3860_v27 = vpop.eup %3186  ;;  %v488_v23 = vadd.f32 %v487_v26, %v3837_v5 }
 0x13a   : > { %v604_v28 = vpack.c.bf16 %v3860_v27, %v3858_v22 }
 0x13b   : > { %2995 = vmatmul.msk.bf16.gmra.mxu0 %vm409_vm3, %v370_v37  ;;  %3188 = vtanh.f32 %v488_v23 }
 0x13c   : > { %3008 = vmatmul.msk.bf16.gmra.mxu1 %vm629_vm6, %v604_v28 }
 0x140   : > { %v489_v24 = vpop.f32.mrf.mxu0 }
 0x141   : > { %v490_v25 = vadd.f32 %v489_v24, %v3837_v5  ;;  %v3871_v29 = vpop.eup %3188 }
 0x143   : > { %3190 = vtanh.f32 %v490_v25 }
 0x148   : > { %v492_v31 = vpop.f32.mrf.mxu0 }
 0x149   : > { %v3873_v36 = vpop.eup %3190  ;;  %v493_v33 = vadd.f32 %v492_v31, %v3837_v5 }
 0x14a   : > { %v605_v38 = vpack.c.bf16 %v3873_v36, %v3871_v29 }
 0x14b   : > { %2996 = vmatmul.msk.bf16.gmra.mxu0 %vm409_vm3, %v371_v34  ;;  %3192 = vtanh.f32 %v493_v33 }
 0x14c   : > { %3009 = vmatmul.msk.bf16.gmra.mxu1 %vm629_vm6, %v605_v38 }
 0x150   : > { %v494_v35 = vpop.f32.mrf.mxu0 }
 0x151   : > { %v495_v37 = vadd.f32 %v494_v35, %v3837_v5  ;;  %v3884_v39 = vpop.eup %3192 }
 0x153   : > { %3194 = vtanh.f32 %v495_v37 }
 0x158   : > { %v497_v42 = vpop.f32.mrf.mxu0 }
 0x159   : > { %v3886_v44 = vpop.eup %3194  ;;  %v498_v30 = vadd.f32 %v497_v42, %v3837_v5 }
 0x15a   : > { %v606_v45 = vpack.c.bf16 %v3886_v44, %v3884_v39 }
 0x15b   : > { %2997 = vmatmul.msk.bf16.gmra.mxu0 %vm409_vm3, %v372_v43  ;;  %3196 = vtanh.f32 %v498_v30 }
 0x15c   : > { %3010 = vmatmul.msk.bf16.gmra.mxu1 %vm629_vm6, %v606_v45 }
 0x160   : > { %v499_v32 = vpop.f32.mrf.mxu0 }
 0x161   : > { %v500_v34 = vadd.f32 %v499_v32, %v3837_v5  ;;  %v3899_v48 = vpop.eup %3196 }
 0x163   : > { %3198 = vtanh.f32 %v500_v34 }
 0x166   : > { %v3897_v47 = vpop.f32.mrf.mxu3 }
 0x168   : > { %v502_v56 = vpop.f32.mrf.mxu0 }
 0x169   : > { %v3901_v58 = vpop.eup %3198  ;;  %v503_v41 = vadd.f32 %v502_v56, %v3837_v5 }
 0x16a   : > { %v607_v40 = vpack.c.bf16 %v3901_v58, %v3899_v48 }
 0x16b   : > { %2998 = vmatmul.msk.bf16.gmra.mxu0 %vm409_vm3, %v373_v57  ;;  %3200 = vtanh.f32 %v503_v41 }
 0x16c   : > { %3011 = vmatmul.msk.bf16.gmra.mxu1 %vm629_vm6, %v607_v40 }
 0x16e   : > { %v3911_v43 = vpop.f32.mrf.mxu3 }
 0x170   : > { %v504_v59 = vpop.f32.mrf.mxu0 }
 0x171   : > { %v505_v60 = vadd.f32 %v504_v59, %v3837_v5  ;;  %v3914_v0 = vpop.eup %3200 }
 0x173   : > { %3202 = vtanh.f32 %v505_v60 }
 0x176   : > { %v562_v63 = vpop.f32.mrf.mxu3 }
 0x177   : > { %v563_v55 = vadd.f32 %v562_v63, %v3837_v5 }
 0x178   : > { %v507_v1 = vpop.f32.mrf.mxu0 }
 0x179   : > { %v3916_v2 = vpop.eup %3202  ;;  %v508_v57 = vadd.f32 %v507_v1, %v3837_v5  ;;  %3204 = vtanh.f32 %v563_v55 }
 0x17a   : > { %v608_v52 = vpack.c.bf16 %v3916_v2, %v3914_v0 }
 0x17b   : > { %2999 = vmatmul.msk.bf16.gmra.mxu0 %vm409_vm3, %v374_v53 }
 0x17c   : > { %3012 = vmatmul.msk.bf16.gmra.mxu1 %vm629_vm6, %v608_v52 }
 0x17e   : > { %v564_v3 = vpop.f32.mrf.mxu3 }
 0x17f   : > { %v565_v4 = vadd.f32 %v564_v3, %v3837_v5  ;;  %v3932_v49 = vpop.eup %3204 }
 0x180   : > { %v509_v51 = vpop.f32.mrf.mxu0 }
 0x181   : > { %3206 = vtanh.f32 %v565_v4  ;;  %v510_v9 = vadd.f32 %v509_v51, %v3837_v5 }
 0x182   : > { %3208 = vtanh.f32 %v508_v57 }
 0x183   : > { %3210 = vtanh.f32 %v510_v9 }
 0x187   : > { %v3935_v53 = vpop.eup %3206 }
 0x188   : > { %v3937_v61 = vpop.eup %3208  ;;  %v512_v11 = vpop.f32.mrf.mxu0  ;;  %v620_v12 = vpack.c.bf16 %v3935_v53, %v3932_v49 }
 0x189   : > { %v3942_v18 = vpop.eup %3210  ;;  %v513_v62 = vadd.f32 %v512_v11, %v3837_v5 }
 0x18a   : > { %3024 = vmatmul.msk.bf16.vlgmr.msra.gmra.mxu2 %vm629_vm6, %v620_v12  ;;  %v609_v50 = vpack.c.bf16 %v3942_v18, %v3937_v61 }
 0x18b   : > { %3000 = vmatmul.msk.bf16.gmra.mxu0 %vm409_vm3, %v375_v6  ;;  %3212 = vtanh.f32 %v513_v62  ;;  %vm1905_vm3 = vcmask 1041409  }
 0x18c   : > { %3013 = vmatmul.msk.bf16.gmra.mxu1 %vm629_vm6, %v609_v50 }
 0x190   : > { %v514_v7 = vpop.f32.mrf.mxu0 }
 0x191   : > { %v515_v54 = vadd.f32 %v514_v7, %v3837_v5  ;;  %v3951_v15 = vpop.eup %3212 }
 0x193   : > { %3214 = vtanh.f32 %v515_v54 }
 0x198   : > { %v517_v19 = vpop.f32.mrf.mxu0 }
 0x199   : > { %v3953_v21 = vpop.eup %3214  ;;  %v518_v14 = vadd.f32 %v517_v19, %v3837_v5 }
 0x19a   : > { %v610_v13 = vpack.c.bf16 %v3953_v21, %v3951_v15 }
 0x19b   : > { %3216 = vtanh.f32 %v518_v14 }
 0x19c   : > { %3014 = vmatmul.msk.bf16.gmra.mxu1 %vm629_vm6, %v610_v13 }
 0x1a0   : > { %v519_v16 = vpop.f32.mrf.mxu0 }
 0x1a1   : > { %v520_v26 = vadd.f32 %v519_v16, %v3837_v5  ;;  %v3960_v28 = vpop.eup %3216 }
 0x1a3   : > { %3218 = vtanh.f32 %v520_v26 }
 0x1a8   : > { %v522_v23 = vpop.f32.mrf.mxu0 }
 0x1a9   : > { %v3962_v24 = vpop.eup %3218  ;;  %v693_v25 = vpop.f32.mrf.mxu1  ;;  %v523_v37 = vadd.f32 %v522_v23, %v3837_v5 }
 0x1aa   : > { %v783_v31 = vsel %vm629_vm6, %v693_v25, -inf  ;;  %v611_v38 = vpack.c.bf16 %v3962_v24, %v3960_v28 }
 0x1ab   : > { %v784_v33 = vrot.slane %v783_v31, 4  ;;  %3220 = vtanh.f32 %v523_v37 }
 0x1ac   : > { %3015 = vmatmul.msk.bf16.gmra.mxu1 %vm629_vm6, %v611_v38 }
 0x1ad   : > { %v785_v35 = vmax.f32 %v783_v31, %v784_v33 }
 0x1af   : > { %v786_v42 = vrot.slane %v785_v35, 2 }
 0x1b0   : > { %v524_v45 = vpop.f32.mrf.mxu0 }
 0x1b1   : > { %v525_v30 = vadd.f32 %v524_v45, %v3837_v5  ;;  %v695_v32 = vpop.f32.mrf.mxu1  ;;  %v787_v34 = vmax.f32 %v785_v35, %v786_v42  ;;  %v3971_v60 = vpop.eup %3220 }
 0x1b2   : > { %v790_v56 = vsel %vm629_vm6, %v695_v32, -inf }
 0x1b3   : > { %3222 = vtanh.f32 %v525_v30  ;;  %v791_v40 = vrot.slane %v790_v56, 4  ;;  %v788_v59 = vrot.slane %v787_v34, 1 }
 0x1b5   : > { %v792_v41 = vmax.f32 %v790_v56, %v791_v40  ;;  %v789_v57 = vmax.f32 %v787_v34, %v788_v59 }
 0x1b7   : > { %v793_v63 = vrot.slane %v792_v41, 2  ;;  %v1035_v46 = vsub.f32 %v693_v25, %v789_v57 }
 0x1b8   : > { %v527_v1 = vpop.f32.mrf.mxu0 }
 0x1b9   : > { %v3973_v52 = vpop.eup %3222  ;;  %v698_v55 = vpop.f32.mrf.mxu1  ;;  %v794_v51 = vmax.f32 %v792_v41, %v793_v63  ;;  %v1071_v62 = vmul.f32 1.442695, %v1035_v46  ;;  %v528_v54 = vadd.f32 %v527_v1, %v3837_v5 }
 0x1ba   : > { %v797_v3 = vsel %vm629_vm6, %v698_v55, -inf  ;;  %v612_v4 = vpack.c.bf16 %v3973_v52, %v3971_v60 }
 0x1bb   : > { %v798_v8 = vrot.slane %v797_v3, 4  ;;  %v795_v10 = vrot.slane %v794_v51, 1 }
 0x1bc   : > { %3016 = vmatmul.msk.bf16.gmra.mxu1 %vm629_vm6, %v612_v4 }
 0x1bd   : > { %v799_v9 = vmax.f32 %v797_v3, %v798_v8  ;;  %v796_v13 = vmax.f32 %v794_v51, %v795_v10 }
 0x1bf   : > { %v800_v12 = vrot.slane %v799_v9, 2  ;;  %v1036_v23 = vsub.f32 %v695_v32, %v796_v13 }
 0x1c0   : > { %v529_v11 = vpop.f32.mrf.mxu0 }
 0x1c1   : > { %v530_v6 = vadd.f32 %v529_v11, %v3837_v5  ;;  %v700_v50 = vpop.f32.mrf.mxu1  ;;  %v801_v14 = vmax.f32 %v799_v9, %v800_v12  ;;  %v1073_v45 = vmul.f32 1.442695, %v1036_v23 }
 0x1c2   : > { %v804_v7 = vsel %vm629_vm6, %v700_v50, -inf }
 0x1c3   : > { %v805_v19 = vrot.slane %v804_v7, 4  ;;  %3224 = vtanh.f32 %v530_v6  ;;  %v802_v31 = vrot.slane %v801_v14, 1 }
 0x1c4   : > { %3226 = vpow2.f32 %v1071_v62 }
 0x1c5   : > { %v806_v16 = vmax.f32 %v804_v7, %v805_v19  ;;  %3228 = vtanh.f32 %v528_v54  ;;  %v803_v56 = vmax.f32 %v801_v14, %v802_v31 }
 0x1c6   : > { %3230 = vpow2.f32 %v1073_v45 }
 0x1c7   : > { %v807_v26 = vrot.slane %v806_v16, 2  ;;  %v1037_v57 = vsub.f32 %v698_v55, %v803_v56 }
 0x1c8   : > { %v532_v25 = vpop.f32.mrf.mxu0 }
 0x1c9   : > { %v703_v38 = vpop.f32.mrf.mxu1  ;;  %v808_v33 = vmax.f32 %v806_v16, %v807_v26  ;;  %v3983_v37 = vpop.eup %3224  ;;  %v533_v10 = vadd.f32 %v532_v25, %v3837_v5  ;;  %v1075_v6 = vmul.f32 1.442695, %v1037_v57 }
 0x1ca   : > { %v811_v35 = vsel %vm629_vm6, %v703_v38, -inf  ;;  %4847 = vst [vmem:[#allocation5_spill] sm:$0xff] %v3983_v37  ;;  %v3227_v42 = vpop.eup %3226 }
 0x1cb   : > { %v812_v30 = vrot.slane %v811_v35, 4  ;;  %v3985_v34 = vpop.eup %3228  ;;  %v809_v40 = vrot.slane %v808_v33, 1  ;;  %v1431_v32 = vsel %vm629_vm6, %v3227_v42, 0.0  ;;  %v1143_v9 = vmul.f32 %v3227_v42, %v3845_v17 }
 0x1cc   : > { %4848 = vst [vmem:[#allocation6_spill] sm:$0xff] %v3985_v34  ;;  %v613_v59 = vpack.c.bf16 %v3983_v37, %v3985_v34  ;;  %v1432_v46 = vrot.slane %v1431_v32, 4  ;;  %v3231_v62 = vpop.eup %3230 }
 0x1cd   : > { %v813_v41 = vmax.f32 %v811_v35, %v812_v30  ;;  %v810_v4 = vmax.f32 %v808_v33, %v809_v40  ;;  %v1179_v19 = vsel %vm629_vm6, %v1143_v9, 0.0  ;;  %v1144_v26 = vmul.f32 %v3231_v62, %v3847_v20 }
 0x1ce   : > { %3017 = vmatmul.msk.bf16.gmra.mxu1 %vm629_vm6, %v613_v59  ;;  %v1433_v13 = vadd.f32 %v1432_v46, %v1431_v32  ;;  %v1180_v25 = vrot.slane %v1179_v19, 4  ;;  %v1438_v40 = vsel %vm629_vm6, %v3231_v62, 0.0 }
 0x1cf   : > { %v814_v63 = vrot.slane %v813_v41, 2  ;;  %v1038_v7 = vsub.f32 %v700_v50, %v810_v4 }
 0x1d0   : > { %v534_v1 = vpop.f32.mrf.mxu0  ;;  %v1434_v35 = vrot.slane %v1433_v13, 2  ;;  %v1181_v59 = vadd.f32 %v1180_v25, %v1179_v19 }
 0x1d1   : > { %v3991_v3 = vpop.f32.mrf.mxu1  ;;  %v815_v8 = vmax.f32 %v813_v41, %v814_v63  ;;  %v535_v51 = vadd.f32 %v534_v1, %v3837_v5  ;;  %v1077_v31 = vmul.f32 1.442695, %v1038_v7  ;;  %v560_v41 = vadd.f32 %v3911_v43, %v3837_v5 }
 0x1d2   : > { %v818_v12 = vsel %vm629_vm6, %v3991_v3, -inf  ;;  %v1435_v1 = vadd.f32 %v1434_v35, %v1433_v13 }
 0x1d3   : > { %v816_v11 = vrot.slane %v815_v8, 1  ;;  %3232 = vtanh.f32 %v535_v51  ;;  %v819_v55 = vrot.slane %v818_v12, 4  ;;  %v1439_v51 = vrot.slane %v1438_v40, 4 }
 0x1d4   : > { %3234 = vtanh.f32 %v533_v10 }
 0x1d5   : > { %v817_v54 = vmax.f32 %v815_v8, %v816_v11  ;;  %v820_v16 = vmax.f32 %v818_v12, %v819_v55  ;;  %3236 = vpow2.f32 %v1075_v6  ;;  %v1182_v12 = vrot.slane %v1181_v59, 2 }
 0x1d6   : > { %3238 = vpow2.f32 %v1077_v31  ;;  %v1436_v55 = vrot.slane %v1435_v1, 1 }
 0x1d7   : > { %v1039_v14 = vsub.f32 %v703_v38, %v817_v54  ;;  %v821_v33 = vrot.slane %v820_v16, 2  ;;  %v1186_v38 = vsel %vm629_vm6, %v1144_v26, 0.0  ;;  %v558_v54 = vadd.f32 %v3897_v47, %v3837_v5 }
 0x1d8   : > { %v537_v17 = vpop.f32.mrf.mxu0  ;;  %v1187_v8 = vrot.slane %v1186_v38, 4  ;;  %v1183_v35 = vadd.f32 %v1182_v12, %v1181_v59 }
 0x1d9   : > { %v4000_v23 = vpop.f32.mrf.mxu1  ;;  %v1079_v42 = vmul.f32 1.442695, %v1039_v14  ;;  %v4004_v45 = vpop.eup %3232  ;;  %v822_v30 = vmax.f32 %v820_v16, %v821_v33  ;;  %v538_v62 = vadd.f32 %v537_v17, %v3837_v5  ;;  %v1440_v16 = vadd.f32 %v1439_v51, %v1438_v40 }
 0x1da   : > { %v825_v50 = vsel %vm629_vm6, %v4000_v23, -inf  ;;  %4849 = vst [vmem:[#allocation7_spill] sm:$0xff] %v4004_v45  ;;  %v4008_v20 = vpop.eup %3234  ;;  %v1188_v14 = vadd.f32 %v1187_v8, %v1186_v38 }
 0x1db   : > { %v826_v56 = vrot.slane %v825_v50, 4  ;;  %4850 = vst [vmem:[#allocation8_spill] sm:$0xff] %v4008_v20  ;;  %v823_v32 = vrot.slane %v822_v30, 1  ;;  %v3237_v63 = vpop.eup %3236  ;;  %3240 = vpow2.f32 %v1079_v42  ;;  %v614_v4 = vpack.c.bf16 %v4004_v45, %v4008_v20 }
 0x1dc   : > { %v1445_v6 = vsel %vm629_vm6, %v3237_v63, 0.0  ;;  %3242 = vtanh.f32 %v560_v41  ;;  %v3239_v13 = vpop.eup %3238  ;;  %v1145_v31 = vmul.f32 %v3237_v63, %v3858_v22  ;;  %v1437_v42 = vadd.f32 %v1436_v55, %v1435_v1 }
 0x1dd   : > { %v827_v57 = vmax.f32 %v825_v50, %v826_v56  ;;  %v824_v9 = vmax.f32 %v822_v30, %v823_v32  ;;  %v1446_v33 = vrot.slane %v1445_v6, 4  ;;  %v1452_v47 = vsel %vm629_vm6, %v3239_v13, 0.0 }
 0x1de   : > { %3018 = vmatmul.msk.bf16.gmra.mxu1 %vm629_vm6, %v614_v4  ;;  %v1441_v41 = vrot.slane %v1440_v16, 2  ;;  %v1193_v22 = vsel %vm629_vm6, %v1145_v31, 0.0  ;;  %v1146_v8 = vmul.f32 %v3239_v13, %v3860_v27  ;;  %v1453_v51 = vrot.slane %v1452_v47, 4 }
 0x1df   : > { %v828_v10 = vrot.slane %v827_v57, 2  ;;  %v1040_v26 = vsub.f32 %v3991_v3, %v824_v9  ;;  %v1447_v63 = vadd.f32 %v1446_v33, %v1445_v6  ;;  %v1194_v6 = vrot.slane %v1193_v22, 4 }
 0x1e0   : > { %v539_v46 = vpop.f32.mrf.mxu0  ;;  %v1454_v31 = vadd.f32 %v1453_v51, %v1452_v47 }
 0x1e1   : > { %v540_v11 = vadd.f32 %v539_v46, %v3837_v5  ;;  %v4016_v43 = vpop.f32.mrf.mxu1  ;;  %v829_v19 = vmax.f32 %v827_v57, %v828_v10  ;;  %v3241_v25 = vpop.eup %3240  ;;  %v1081_v40 = vmul.f32 1.442695, %v1040_v26  ;;  %v1189_v57 = vrot.slane %v1188_v14, 2 }
 0x1e2   : > { %v832_v7 = vsel %vm629_vm6, %v4016_v43, -inf  ;;  %v1459_v38 = vsel %vm629_vm6, %v3241_v25, 0.0  ;;  %v4028_v32 = vpop.eup %3242  ;;  %v1184_v46 = vrot.slane %v1183_v35, 1  ;;  %v1448_v55 = vrot.slane %v1447_v63, 2 }
 0x1e3   : > { %3244 = vtanh.f32 %v540_v11  ;;  %v830_v17 = vrot.slane %v829_v19, 1  ;;  %v833_v50 = vrot.slane %v832_v7, 4  ;;  %v1460_v10 = vrot.slane %v1459_v38, 4 }
 0x1e4   : > { %3246 = vtanh.f32 %v538_v62  ;;  %v1442_v62 = vadd.f32 %v1441_v41, %v1440_v16  ;;  %v1200_v26 = vsel %vm629_vm6, %v1146_v8, 0.0 }
 0x1e5   : > { %v831_v30 = vmax.f32 %v829_v19, %v830_v17  ;;  %v834_v56 = vmax.f32 %v832_v7, %v833_v50  ;;  %3248 = vtanh.f32 %v558_v54  ;;  %v1190_v54 = vadd.f32 %v1189_v57, %v1188_v14 }
 0x1e6   : > { %3250 = vrcp.f32 %v1437_v42  ;;  %v1185_v17 = vadd.f32 %v1184_v46, %v1183_v35  ;;  %v1443_v42 = vrot.slane %v1442_v62, 1  ;;  %v1147_v14 = vmul.f32 %v3241_v25, %v3871_v29 }
 0x1e7   : > { %v835_v4 = vrot.slane %v834_v56, 2  ;;  %v1041_v11 = vsub.f32 %v4000_v23, %v831_v30  ;;  %3252 = vpow2.f32 %v1081_v40  ;;  %v1461_v23 = vadd.f32 %v1460_v10, %v1459_v38 }
 0x1e8   : > { %v542_v3 = vpop.f32.mrf.mxu0  ;;  %v1195_v30 = vadd.f32 %v1194_v6, %v1193_v22  ;;  %v1191_v57 = vrot.slane %v1190_v54, 1  ;;  %v1455_v38 = vrot.slane %v1454_v31, 2  ;;  %v1207_v10 = vsel %vm629_vm6, %v1147_v14, 0.0 }
 0x1e9   : > { %v4031_v59 = vpop.f32.mrf.mxu1  ;;  %v4033_v1 = vpop.eup %3244  ;;  %v836_v19 = vmax.f32 %v834_v56, %v835_v4  ;;  %v1083_v50 = vmul.f32 1.442695, %v1041_v11  ;;  %v1449_v4 = vadd.f32 %v1448_v55, %v1447_v63  ;;  %v1462_v29 = vrot.slane %v1461_v23, 2 }
 0x1ea   : > { %4851 = vst [vmem:[#allocation9_spill] sm:$0xff] %v4033_v1  ;;  %v839_v9 = vsel %vm629_vm6, %v4031_v59, -inf  ;;  %v4039_v12 = vpop.eup %3246  ;;  %v543_v25 = vadd.f32 %v542_v3, %v3837_v5  ;;  %v1444_v63 = vadd.f32 %v1443_v42, %v1442_v62  ;;  %v1196_v46 = vrot.slane %v1195_v30, 2 }
 0x1eb   : > { %4852 = vst [vmem:[#allocation10_spill] sm:$0xff] %v4039_v12  ;;  %v840_v7 = vrot.slane %v839_v9, 4  ;;  %v615_v27 = vpack.c.bf16 %v4033_v1, %v4039_v12  ;;  %v4043_v13 = vpop.eup %3248  ;;  %v1201_v1 = vrot.slane %v1200_v26, 4  ;;  %v837_v12 = vrot.slane %v836_v19, 1 }
 0x1ec   : > { %v3251_v40 = vpop.eup %3250  ;;  %3254 = vpow2.f32 %v1083_v50  ;;  %v1450_v6 = vrot.slane %v1449_v4, 1  ;;  %v1208_v50 = vrot.slane %v1207_v10, 4  ;;  %v1463_v45 = vadd.f32 %v1462_v29, %v1461_v23 }
 0x1ed   : > { %v841_v33 = vmax.f32 %v839_v9, %v840_v7  ;;  %v3253_v35 = vpop.eup %3252  ;;  %v838_v55 = vmax.f32 %v836_v19, %v837_v12  ;;  %v1202_v16 = vadd.f32 %v1201_v1, %v1200_v26  ;;  %v1192_v3 = vadd.f32 %v1191_v57, %v1190_v54 }
 0x1ee   : > { %3019 = vmatmul.msk.bf16.gmra.mxu1 %vm629_vm6, %v615_v27  ;;  %v1466_v7 = vsel %vm629_vm6, %v3253_v35, 0.0  ;;  %v4058_v27 = vmul.f32 %v3251_v40, %v1185_v17  ;;  %v1197_v34 = vadd.f32 %v1196_v46, %v1195_v30  ;;  %v1451_v12 = vadd.f32 %v1450_v6, %v1449_v4 }
 0x1ef   : > { %v842_v56 = vrot.slane %v841_v33, 2  ;;  %v1467_v62 = vrot.slane %v1466_v7, 4  ;;  %v1042_v19 = vsub.f32 %v4016_v43, %v838_v55  ;;  %v1148_v1 = vmul.f32 %v3253_v35, %v3873_v36 }
 0x1f0   : > { %v544_v41 = vpop.f32.mrf.mxu0  ;;  %v1209_v40 = vadd.f32 %v1208_v50, %v1207_v10  ;;  %v1464_v57 = vrot.slane %v1463_v45, 1  ;;  %v1767_v36 = vpack.c.bf16 %v4058_v27, %v4058_v27  ;;  %v1198_v35 = vrot.slane %v1197_v34, 1 }
 0x1f1   : > { %v4050_v47 = vpop.f32.mrf.mxu1  ;;  %v843_v8 = vmax.f32 %v841_v33, %v842_v56  ;;  %v545_v51 = vadd.f32 %v544_v41, %v3837_v5  ;;  %v1456_v33 = vadd.f32 %v1455_v38, %v1454_v31 }
 0x1f2   : > { %v846_v22 = vsel %vm629_vm6, %v4050_v47, -inf  ;;  %v3255_v37 = vpop.eup %3254  ;;  %v1210_v55 = vrot.slane %v1209_v40, 2 }
 0x1f3   : > { %v847_v9 = vrot.slane %v846_v22, 4  ;;  %v844_v11 = vrot.slane %v843_v8, 1  ;;  %3256 = vtanh.f32 %v545_v51  ;;  %v1457_v31 = vrot.slane %v1456_v33, 1 }
 0x1f4   : > { %3258 = vtanh.f32 %v543_v25  ;;  %v1473_v30 = vsel %vm629_vm6, %v3255_v37, 0.0 }
 0x1f5   : > { %v845_v56 = vmax.f32 %v843_v8, %v844_v11  ;;  %v848_v41 = vmax.f32 %v846_v22, %v847_v9  ;;  %3260 = vrcp.f32 %v1444_v63  ;;  %v1468_v8 = vadd.f32 %v1467_v62, %v1466_v7 }
 0x1f6   : > { %v1085_v22 = vmul.f32 1.442695, %v1042_v19  ;;  %3262 = vrcp.f32 %v1451_v12  ;;  %v1458_v25 = vadd.f32 %v1457_v31, %v1456_v33  ;;  %v1214_v9 = vsel %vm629_vm6, %v1148_v1, 0.0 }
 0x1f7   : > { %v1043_v42 = vsub.f32 %v4031_v59, %v845_v56  ;;  %v849_v14 = vrot.slane %v848_v41, 2  ;;  %v1203_v59 = vrot.slane %v1202_v16, 2  ;;  %v1474_v11 = vrot.slane %v1473_v30, 4 }
 0x1f8   : > { %v547_v20 = vpop.f32.mrf.mxu0  ;;  %v1465_v56 = vadd.f32 %v1464_v57, %v1463_v45  ;;  %v1215_v50 = vrot.slane %v1214_v9, 4 }
 0x1f9   : > { %v4062_v17 = vpop.f32.mrf.mxu1  ;;  %v850_v26 = vmax.f32 %v848_v41, %v849_v14  ;;  %v4067_v23 = vpop.eup %3256  ;;  %v1087_v4 = vmul.f32 1.442695, %v1043_v42  ;;  %v1204_v10 = vadd.f32 %v1203_v59, %v1202_v16  ;;  %v1469_v41 = vrot.slane %v1468_v8, 2 }
 0x1fa   : > { %v853_v54 = vsel %vm629_vm6, %v4062_v17, -inf  ;;  %4853 = vst [vmem:[#allocation11_spill] sm:$0xff] %v4067_v23  ;;  %v4070_v51 = vpop.eup %3258  ;;  %v1149_v16 = vmul.f32 %v3255_v37, %v3884_v39  ;;  %v548_v14 = vadd.f32 %v547_v20, %v3837_v5  ;;  %v1475_v19 = vadd.f32 %v1474_v11, %v1473_v30 }
 0x1fb   : > { %v854_v38 = vrot.slane %v853_v54, 4  ;;  %v851_v43 = vrot.slane %v850_v26, 1  ;;  %4854 = vst [vmem:[#allocation12_spill] sm:$0xff] %v4070_v51  ;;  %v616_v63 = vpack.c.bf16 %v4067_v23, %v4070_v51  ;;  %v3261_v46 = vpop.eup %3260  ;;  %3264 = vpow2.f32 %v1087_v4 }
 0x1fc   : > { %3266 = vpow2.f32 %v1085_v22  ;;  %v1205_v12 = vrot.slane %v1204_v10, 1  ;;  %v1470_v59 = vadd.f32 %v1469_v41, %v1468_v8  ;;  %v1199_v4 = vadd.f32 %v1198_v35, %v1197_v34 }
 0x1fd   : > { %v855_v29 = vmax.f32 %v853_v54, %v854_v38  ;;  %v852_v6 = vmax.f32 %v850_v26, %v851_v43  ;;  %3268 = vrcp.f32 %v1458_v25  ;;  %v3263_v26 = vpop.eup %3262  ;;  %v1211_v54 = vadd.f32 %v1210_v55, %v1209_v40 }
 0x1fe   : > { %3020 = vmatmul.msk.bf16.gmra.mxu1 %vm629_vm6, %v616_v63  ;;  %3270 = vrcp.f32 %v1465_v56  ;;  %v4086_v38 = vmul.f32 %v3261_v46, %v1192_v3  ;;  %v1216_v43 = vadd.f32 %v1215_v50, %v1214_v9  ;;  %v1221_v37 = vsel %vm629_vm6, %v1149_v16, 0.0 }
 0x1ff   : > { %v856_v7 = vrot.slane %v855_v29, 2  ;;  %v1044_v31 = vsub.f32 %v4050_v47, %v852_v6  ;;  %v4091_v47 = vmul.f32 %v3263_v26, %v1199_v4  ;;  %v1476_v40 = vrot.slane %v1475_v19, 2 }
 0x200   : > { %v549_v27 = vpop.f32.mrf.mxu0  ;;  %v1206_v63 = vadd.f32 %v1205_v12, %v1204_v10  ;;  %v1212_v3 = vrot.slane %v1211_v54, 1  ;;  %v1471_v46 = vrot.slane %v1470_v59, 1  ;;  %v1217_v9 = vrot.slane %v1216_v43, 2 }
 0x201   : > { %v857_v62 = vmax.f32 %v855_v29, %v856_v7  ;;  %v550_v33 = vadd.f32 %v549_v27, %v3837_v5  ;;  %v4079_v42 = vpop.f32.mrf.mxu1  ;;  %v3265_v39 = vpop.eup %3264  ;;  %v4089_v29 = vunpack.c.l.b16 %v1767_v36  ;;  %v1089_v25 = vmul.f32 1.442695, %v1044_v31 }
 0x202   : > { %v860_v45 = vsel %vm629_vm6, %v4079_v42, -inf  ;;  %v3267_v30 = vpop.eup %3266  ;;  %v1222_v11 = vrot.slane %v1221_v37, 4  ;;  %v1487_v6 = vsel %vm629_vm6, %v3265_v39, 0.0 }
 0x203   : > { %v858_v1 = vrot.slane %v857_v62, 1  ;;  %v861_v57 = vrot.slane %v860_v45, 4  ;;  %3272 = vtanh.f32 %v550_v33  ;;  %v3269_v8 = vpop.eup %3268  ;;  %v1480_v56 = vsel %vm629_vm6, %v3267_v30, 0.0 }
 0x204   : > { %3274 = vtanh.f32 %v548_v14  ;;  %v3271_v55 = vpop.eup %3270  ;;  %v4106_v16 = vmul.f32 %v3269_v8, %v1206_v63  ;;  %v1488_v12 = vrot.slane %v1487_v6, 4  ;;  %v1481_v26 = vrot.slane %v1480_v56, 4 }
 0x205   : > { %v859_v20 = vmax.f32 %v857_v62, %v858_v1  ;;  %v862_v22 = vmax.f32 %v860_v45, %v861_v57  ;;  %v1477_v62 = vadd.f32 %v1476_v40, %v1475_v19  ;;  %3276 = vpow2.f32 %v1089_v25 }
 0x206   : > { %v1472_v45 = vadd.f32 %v1471_v46, %v1470_v59  ;;  %v1213_v1 = vadd.f32 %v1212_v3, %v1211_v54  ;;  %v1150_v19 = vmul.f32 %v3267_v30, %v3886_v44  ;;  %v1151_v3 = vmul.f32 %v3265_v39, %v3899_v48 }
 0x207   : > { %v863_v34 = vrot.slane %v862_v22, 2  ;;  %v1045_v41 = vsub.f32 %v4062_v17, %v859_v20  ;;  %v1218_v20 = vadd.f32 %v1217_v9, %v1216_v43  ;;  %v1478_v8 = vrot.slane %v1477_v62, 1 }
 0x208   : > { %v4093_v35 = vpop.f32.mrf.mxu0  ;;  %v4115_v25 = vmul.f32 %v3271_v55, %v1213_v1  ;;  %3278 = vrcp.f32 %v1472_v45  ;;  %v1489_v46 = vadd.f32 %v1488_v12, %v1487_v6 }
 0x209   : > { %v4096_v7 = vpop.f32.mrf.mxu1  ;;  %v864_v10 = vmax.f32 %v862_v22, %v863_v34  ;;  %v4104_v50 = vpop.eup %3272  ;;  %v1223_v22 = vadd.f32 %v1222_v11, %v1221_v37  ;;  %v1091_v40 = vmul.f32 1.442695, %v1045_v41  ;;  %v1482_v37 = vadd.f32 %v1481_v26, %v1480_v56 }
 0x20a   : > { %v867_v27 = vsel %vm629_vm6, %v4096_v7, -inf  ;;  %4855 = vst [vmem:[#allocation13_spill] sm:$0xff] %v4104_v50  ;;  %v4108_v14 = vpop.eup %3274  ;;  %v1219_v48 = vrot.slane %v1218_v20, 1  ;;  %v1479_v39 = vadd.f32 %v1478_v8, %v1477_v62  ;;  %v1235_v56 = vsel %vm629_vm6, %v1151_v3, 0.0 }
 0x20b   : > { %v868_v33 = vrot.slane %v867_v27, 4  ;;  %4856 = vst [vmem:[#allocation14_spill] sm:$0xff] %v4108_v14  ;;  %v865_v31 = vrot.slane %v864_v10, 1  ;;  %v617_v17 = vpack.c.bf16 %v4104_v50, %v4108_v14  ;;  %v3277_v43 = vpop.eup %3276  ;;  %v1224_v41 = vrot.slane %v1223_v22, 2 }
 0x20c   : > { %3280 = vpow2.f32 %v1091_v40  ;;  %v1490_v45 = vrot.slane %v1489_v46, 2  ;;  %v1483_v1 = vrot.slane %v1482_v37, 2  ;;  %v1152_v26 = vmul.f32 %v3277_v43, %v3901_v58 }
 0x20d   : > { %v869_v57 = vmax.f32 %v867_v27, %v868_v33  ;;  %v4112_v4 = vpop.f32.mrf.mxu2  ;;  %v866_v63 = vmax.f32 %v864_v10, %v865_v31  ;;  %v1228_v10 = vsel %vm629_vm6, %v1150_v19, 0.0  ;;  %v553_v62 = vadd.f32 %v4093_v35, %v3837_v5 }
 0x20e   : > { %v1021_v54 = vsel %vm629_vm6, %v4112_v4, -inf  ;;  %3021 = vmatmul.msk.bf16.gmra.mxu1 %vm629_vm6, %v617_v17  ;;  %v1229_v31 = vrot.slane %v1228_v10, 4  ;;  %v4131_v17 = vpop.eup %3278  ;;  %v1236_v8 = vrot.slane %v1235_v56, 4  ;;  %v4140_v3 = vadd.f32 %v1219_v48, %v1218_v20 }
 0x20f   : > { %v870_v59 = vrot.slane %v869_v57, 2  ;;  %v1046_v44 = vsub.f32 %v4079_v42, %v866_v63  ;;  %v1022_v9 = vrot.slane %v1021_v54, 4  ;;  %v1494_v42 = vsel %vm629_vm6, %v3277_v43, 0.0 }
 0x210   : > { %v554_v11 = vpop.f32.mrf.mxu0  ;;  %v1495_v63 = vrot.slane %v1494_v42, 4  ;;  %v1491_v43 = vadd.f32 %v1490_v45, %v1489_v46  ;;  %v1237_v20 = vadd.f32 %v1236_v8, %v1235_v56 }
 0x211   : > { %v871_v30 = vmax.f32 %v869_v57, %v870_v59  ;;  %v4124_v55 = vpop.f32.mrf.mxu1  ;;  %v1093_v6 = vmul.f32 1.442695, %v1046_v44  ;;  %v1023_v33 = vmax.f32 %v1021_v54, %v1022_v9  ;;  %v555_v12 = vadd.f32 %v554_v11, %v3837_v5 }
 0x212   : > { %v874_v40 = vsel %vm629_vm6, %v4124_v55, -inf  ;;  %v3281_v58 = vpop.eup %3280  ;;  %v1484_v9 = vadd.f32 %v1483_v1, %v1482_v37  ;;  %v1242_v5 = vsel %vm629_vm6, %v1152_v26, 0.0  ;;  %v1496_v48 = vadd.f32 %v1495_v63, %v1494_v42 }
 0x213   : > { %v872_v27 = vrot.slane %v871_v30, 1  ;;  %3282 = vpow2.f32 %v1093_v6  ;;  %v1024_v19 = vrot.slane %v1023_v33, 2  ;;  %v1225_v6 = vadd.f32 %v1224_v41, %v1223_v22 }
 0x214   : > { %3284 = vtanh.f32 %v555_v12  ;;  %v1501_v46 = vsel %vm629_vm6, %v3281_v58, 0.0  ;;  %v1492_v37 = vrot.slane %v1491_v43, 1  ;;  %v1243_v45 = vrot.slane %v1242_v5, 4 }
 0x215   : > { %v873_v57 = vmax.f32 %v871_v30, %v872_v27  ;;  %v4138_v54 = vpop.f32.mrf.mxu2  ;;  %v1025_v44 = vmax.f32 %v1023_v33, %v1024_v19  ;;  %v875_v30 = vrot.slane %v874_v40, 4  ;;  %3286 = vtanh.f32 %v553_v62 }
 0x216   : > { %v1226_v41 = vrot.slane %v1225_v6, 1  ;;  %v1485_v62 = vrot.slane %v1484_v9, 1  ;;  %v1502_v19 = vrot.slane %v1501_v46, 4  ;;  %v1230_v42 = vadd.f32 %v1229_v31, %v1228_v10 }
 0x217   : > { %v1047_v59 = vsub.f32 %v4096_v7, %v873_v57  ;;  %v1026_v27 = vrot.slane %v1025_v44, 1  ;;  %v876_v34 = vmax.f32 %v874_v40, %v875_v30  ;;  %v1028_v7 = vsel %vm629_vm6, %v4138_v54, -inf }
 0x218   : > { %v1029_v26 = vrot.slane %v1028_v7, 4  ;;  %v1238_v40 = vrot.slane %v1237_v20, 2  ;;  %v1497_v8 = vrot.slane %v1496_v48, 2  ;;  %v1244_v30 = vadd.f32 %v1243_v45, %v1242_v5 }
 0x219   : > { %v1095_v35 = vmul.f32 1.442695, %v1047_v59  ;;  %v4143_v11 = vpop.f32.mrf.mxu1  ;;  %v3283_v33 = vpop.eup %3282  ;;  %v1027_v12 = vmax.f32 %v1025_v44, %v1026_v27  ;;  %v877_v1 = vrot.slane %v876_v34, 2  ;;  %v1493_v44 = vadd.f32 %v1492_v37, %v1491_v43 }
 0x21a   : > { %v881_v22 = vsel %vm629_vm6, %v4143_v11, -inf  ;;  %v4150_v57 = vpop.eup %3284  ;;  %v1508_v63 = vsel %vm629_vm6, %v3283_v33, 0.0  ;;  %v1030_v14 = vmax.f32 %v1028_v7, %v1029_v26  ;;  %v1227_v31 = vadd.f32 %v1226_v41, %v1225_v6 }
 0x21b   : > { %3288 = vpow2.f32 %v1095_v35  ;;  %4857 = vst [vmem:[#allocation15_spill] sm:$0xff] %v4150_v57  ;;  %v1069_v56 = vsub.f32 %v4112_v4, %v1027_v12  ;;  %v4155_v59 = vpop.eup %3286  ;;  %v882_v35 = vrot.slane %v881_v22, 4  ;;  %v878_v50 = vmax.f32 %v876_v34, %v877_v1 }
 0x21c   : > { %3290 = vrcp.f32 %v1479_v39  ;;  %v1153_v39 = vmul.f32 %v3281_v58, %v3914_v0  ;;  %4858 = vst [vmem:[#allocation16_spill] sm:$0xff] %v4155_v59  ;;  %v618_v4 = vpack.c.bf16 %v4150_v57, %v4155_v59  ;;  %v1503_v58 = vadd.f32 %v1502_v19, %v1501_v46 }
 0x21d   : > { %v1509_v12 = vrot.slane %v1508_v63, 4  ;;  %v1139_v23 = vmul.f32 1.442695, %v1069_v56  ;;  %v1231_v51 = vrot.slane %v1230_v42, 2  ;;  %v1239_v43 = vadd.f32 %v1238_v40, %v1237_v20 }
 0x21e   : > { %v1498_v5 = vadd.f32 %v1497_v8, %v1496_v48  ;;  %v1249_v37 = vsel %vm629_vm6, %v1153_v39, 0.0  ;;  %3022 = vmatmul.msk.bf16.gmra.mxu1 %vm629_vm6, %v618_v4  ;;  %v1486_v45 = vadd.f32 %v1485_v62, %v1484_v9  ;;  %3292 = vrcp.f32 %v1493_v44 }
 0x21f   : > { %v1245_v34 = vrot.slane %v1244_v30, 2  ;;  %v883_v1 = vmax.f32 %v881_v22, %v882_v35  ;;  %v1154_v26 = vmul.f32 %v3283_v33, %v3916_v2  ;;  %v879_v46 = vrot.slane %v878_v50, 1 }
 0x220   : > { %v1031_v41 = vrot.slane %v1030_v14, 2  ;;  %v1250_v19 = vrot.slane %v1249_v37, 4  ;;  %v1504_v56 = vrot.slane %v1503_v58, 2  ;;  %v1510_v20 = vadd.f32 %v1509_v12, %v1508_v63 }
 0x221   : > { %v3289_v36 = vpop.eup %3288  ;;  %v4161_v10 = vpop.f32.mrf.mxu1  ;;  %3294 = vpow2.f32 %v1139_v23  ;;  %v1240_v48 = vrot.slane %v1239_v43, 1  ;;  %v1499_v40 = vrot.slane %v1498_v5, 1  ;;  %v4168_v39 = vadd.f32 %v1231_v51, %v1230_v42 }
 0x222   : > { %v3291_v0 = vpop.eup %3290  ;;  %v1515_v7 = vsel %vm629_vm6, %v3289_v36, 0.0  ;;  %v1155_v6 = vmul.f32 %v3289_v36, %v3937_v61  ;;  %v4170_v9 = vadd.f32 %v1245_v34, %v1244_v30  ;;  %v884_v62 = vrot.slane %v883_v1, 2 }
 0x223   : > { %v1516_v8 = vrot.slane %v1515_v7, 4  ;;  %v4174_v22 = vmul.f32 %v4131_v17, %v4140_v3  ;;  %v4176_v2 = vmul.f32 %v3291_v0, %v1227_v31  ;;  %v1256_v61 = vsel %vm629_vm6, %v1154_v26, 0.0 }
 0x224   : > { %v1263_v36 = vsel %vm629_vm6, %v1155_v6, 0.0  ;;  %v880_v33 = vmax.f32 %v878_v50, %v879_v46  ;;  %v1032_v23 = vmax.f32 %v1030_v14, %v1031_v41  ;;  %v3293_v44 = vpop.eup %3292  ;;  %v1251_v51 = vadd.f32 %v1250_v19, %v1249_v37 }
 0x225   : > { %v1505_v42 = vadd.f32 %v1504_v56, %v1503_v58  ;;  %v1511_v30 = vrot.slane %v1510_v20, 2  ;;  %3296 = vrcp.f32 %v1486_v45  ;;  %v1241_v35 = vadd.f32 %v1240_v48, %v1239_v43 }
 0x226   : > { %v1500_v4 = vadd.f32 %v1499_v40, %v1498_v5  ;;  %v1517_v12 = vadd.f32 %v1516_v8, %v1515_v7  ;;  %v1257_v31 = vrot.slane %v1256_v61, 4  ;;  %v1264_v0 = vrot.slane %v1263_v36, 4 }
 0x227   : > { %v3295_v3 = vpop.eup %3294  ;;  %v885_v34 = vmax.f32 %v883_v1, %v884_v62  ;;  %v888_v50 = vsel %vm629_vm6, %v4161_v10, -inf  ;;  %v1727_v14 = vmul.f32 %v3293_v44, %v1241_v35  ;;  %v1247_v26 = vrot.slane %v4170_v9, 1 }
 0x228   : > { %v1048_v37 = vsub.f32 %v4124_v55, %v880_v33  ;;  %v1033_v58 = vrot.slane %v1032_v23, 1  ;;  %v1252_v6 = vrot.slane %v1251_v51, 2  ;;  %v1506_v45 = vrot.slane %v1505_v42, 1 }
 0x229   : > { %v4180_v63 = vpop.f32.mrf.mxu1  ;;  %v1512_v43 = vadd.f32 %v1511_v30, %v1510_v20  ;;  %v1518_v7 = vrot.slane %v1517_v12, 2  ;;  %v1669_v46 = vsel %vm629_vm6, %v3295_v3, 0.0  ;;  %v889_v41 = vrot.slane %v888_v50, 4 }
 0x22a   : > { %v895_v5 = vsel %vm629_vm6, %v4180_v63, -inf  ;;  %3298 = vrcp.f32 %v1500_v4  ;;  %v1258_v56 = vadd.f32 %v1257_v31, %v1256_v61  ;;  %v1265_v48 = vadd.f32 %v1264_v0, %v1263_v36 }
 0x22b   : > { %v896_v1 = vrot.slane %v895_v5, 4  ;;  %v4190_v19 = vpop.eup %3296  ;;  %v886_v40 = vrot.slane %v885_v34, 1  ;;  %v1177_v55 = vmul.f32 %v3295_v3, %v3932_v49  ;;  %v1097_v8 = vmul.f32 1.442695, %v1048_v37 }
 0x22c   : > { %v1034_v62 = vmax.f32 %v1032_v23, %v1033_v58  ;;  %v1775_v44 = vpack.c.bf16 %v1727_v14, %v1727_v14  ;;  %v1253_v30 = vadd.f32 %v1252_v6, %v1251_v51  ;;  %v1670_v35 = vrot.slane %v1669_v46, 4 }
 0x22d   : > { %v897_v33 = vmax.f32 %v895_v5, %v896_v1  ;;  %v1507_v17 = vadd.f32 %v1506_v45, %v1505_v42  ;;  %v1513_v57 = vrot.slane %v1512_v43, 1  ;;  %v1519_v59 = vadd.f32 %v1518_v7, %v1517_v12 }
 0x22e   : > { %v890_v4 = vmax.f32 %v888_v50, %v889_v41  ;;  %v4859_v61 = vpack.c.bf16 %v4028_v32, %v4043_v13  ;;  %v1259_v49 = vrot.slane %v1258_v56, 2  ;;  %v1266_v36 = vrot.slane %v1265_v48, 2 }
 0x22f   : > { %v887_v23 = vmax.f32 %v885_v34, %v886_v40  ;;  %v898_v3 = vrot.slane %v897_v33, 2  ;;  %v1417_v31 = vsel %vm629_vm6, %v1177_v55, 0.0  ;;  %3300 = vpow2.f32 %v1097_v8 }
 0x230   : > { %3023 = vmatmul.msk.bf16.gmra.mxu1 %vm629_vm6, %v4859_v61  ;;  %v1070_v51 = vsub.f32 %v4138_v54, %v1034_v62  ;;  %v3299_v14 = vpop.eup %3298  ;;  %v1248_v42 = vadd.f32 %v1247_v26, %v4170_v9  ;;  %v1254_v12 = vrot.slane %v1253_v30, 1  ;;  %v1671_v50 = vadd.f32 %v1670_v35, %v1669_v46 }
 0x231   : > { %v4193_v20 = vpop.f32.mrf.mxu1  ;;  %v899_v37 = vmax.f32 %v897_v33, %v898_v3  ;;  %3302 = vrcp.f32 %v1507_v17  ;;  %v1514_v58 = vadd.f32 %v1513_v57, %v1512_v43  ;;  %v1520_v6 = vrot.slane %v1519_v59, 1 }
 0x232   : > { %v902_v27 = vsel %vm629_vm6, %v4193_v20, -inf  ;;  %v891_v45 = vrot.slane %v890_v4, 2  ;;  %v1260_v5 = vadd.f32 %v1259_v49, %v1258_v56  ;;  %v1267_v7 = vadd.f32 %v1266_v36, %v1265_v48 }
 0x233   : > { %v903_v0 = vrot.slane %v902_v27, 4  ;;  %v1418_v34 = vrot.slane %v1417_v31, 4  ;;  %v1049_v41 = vsub.f32 %v4143_v11, %v887_v23  ;;  %v4205_v1 = vunpack.c.l.b16 %v1775_v44 }
 0x234   : > { %v1141_v40 = vmul.f32 1.442695, %v1070_v51  ;;  %v900_v54 = vrot.slane %v899_v37, 1  ;;  %v4209_v9 = vmul.f32 %v3299_v14, %v1248_v42  ;;  %v1255_v26 = vadd.f32 %v1254_v12, %v1253_v30 }
 0x235   : > { %v904_v55 = vmax.f32 %v902_v27, %v903_v0  ;;  %v1672_v46 = vrot.slane %v1671_v50, 2  ;;  %v4860_v57 = vrot.slane %v4168_v39, 1  ;;  %v3301_v43 = vpop.eup %3300  ;;  %3304 = vrcp.f32 %v1514_v58 }
 0x236   : > { %v1521_v56 = vadd.f32 %v1520_v6, %v1519_v59  ;;  %v892_v48 = vmax.f32 %v890_v4, %v891_v45  ;;  %v901_v11 = vmax.f32 %v899_v37, %v900_v54  ;;  %v1261_v62 = vrot.slane %v1260_v5, 1 }
 0x237   : > { %v1234_v17 = vadd.f32 %v4860_v57, %v4168_v39  ;;  %v1268_v33 = vrot.slane %v1267_v7, 1  ;;  %v1419_v44 = vadd.f32 %v1418_v34, %v1417_v31  ;;  %v1099_v35 = vmul.f32 1.442695, %v1049_v41  ;;  %v3303_v27 = vpop.eup %3302 }
 0x238   : > { %3306 = vpow2.f32 %v1141_v40  ;;  %v1051_v61 = vsub.f32 %v4180_v63, %v901_v11  ;;  %v905_v49 = vrot.slane %v904_v55, 2  ;;  %v1673_v36 = vadd.f32 %v1672_v46, %v1671_v50 }
 0x239   : > { %v4207_v8 = vpop.f32.mrf.mxu1  ;;  %v1156_v39 = vmul.f32 %v3301_v43, %v3942_v18  ;;  %v1522_v23 = vsel %vm629_vm6, %v3301_v43, 0.0  ;;  %3308 = vrcp.f32 %v1521_v56  ;;  %v893_v4 = vrot.slane %v892_v48, 1 }
 0x23a   : > { %v909_v30 = vsel %vm629_vm6, %v4207_v8, -inf  ;;  %v1103_v3 = vmul.f32 1.442695, %v1051_v61  ;;  %v906_v51 = vmax.f32 %v904_v55, %v905_v49  ;;  %v4219_v31 = vmul.f32 %v3303_v27, %v1255_v26 }
 0x23b   : > { %v910_v59 = vrot.slane %v909_v30, 4  ;;  %v1420_v0 = vrot.slane %v1419_v44, 2  ;;  %3310 = vpow2.f32 %v1099_v35  ;;  %v3305_v63 = vpop.eup %3304  ;;  %v1262_v42 = vadd.f32 %v1261_v62, %v1260_v5 }
 0x23c   : > { %v1523_v12 = vrot.slane %v1522_v23, 4  ;;  %3312 = vpow2.f32 %v1103_v3  ;;  %v907_v37 = vrot.slane %v906_v51, 1  ;;  %v1674_v18 = vrot.slane %v1673_v36, 1 }
 0x23d   : > { %v911_v14 = vmax.f32 %v909_v30, %v910_v59  ;;  %v1270_v58 = vsel %vm629_vm6, %v1156_v39, 0.0  ;;  %v894_v41 = vmax.f32 %v892_v48, %v893_v4  ;;  %v4226_v55 = vadd.f32 %v1268_v33, %v1267_v7 }
 0x23e   : > { %v3307_v34 = vpop.eup %3306  ;;  %v908_v40 = vmax.f32 %v906_v51, %v907_v37  ;;  %v4228_v5 = vadd.f32 %v1420_v0, %v1419_v44  ;;  %v4231_v46 = vmul.f32 %v4190_v19, %v1234_v17  ;;  %v4233_v57 = vmul.f32 %v3305_v63, %v1262_v42 }
 0x23f   : > { %v912_v6 = vrot.slane %v911_v14, 2  ;;  %v4235_v43 = vpop.eup %3308  ;;  %v1271_v56 = vrot.slane %v1270_v58, 4  ;;  %v1524_v11 = vadd.f32 %v1523_v12, %v1522_v23  ;;  %v1771_v48 = vpack.c.bf16 %v4115_v25, %v4115_v25 }
 0x240   : > { %v1052_v62 = vsub.f32 %v4193_v20, %v908_v40  ;;  %v4240_v7 = vadd.f32 %v1674_v18, %v1673_v36  ;;  %v1772_v19 = vpack.c.bf16 %v4174_v22, %v4174_v22  ;;  %v1178_v27 = vmul.f32 %v3307_v34, %v3935_v53 }
 0x241   : > { %v4221_v50 = vpop.f32.mrf.mxu1  ;;  %v913_v26 = vmax.f32 %v911_v14, %v912_v6  ;;  %v3311_v35 = vpop.eup %3310  ;;  %v1676_v61 = vsel %vm629_vm6, %v3307_v34, 0.0  ;;  %v1050_v49 = vsub.f32 %v4161_v10, %v894_v41  ;;  %v1272_v59 = vadd.f32 %v1271_v56, %v1270_v58 }
 0x242   : > { %v916_v45 = vsel %vm629_vm6, %v4221_v50, -inf  ;;  %v3313_v17 = vpop.eup %3312  ;;  %v1105_v30 = vmul.f32 1.442695, %v1052_v62  ;;  %v1525_v4 = vrot.slane %v1524_v11, 2  ;;  %v1157_v51 = vmul.f32 %v3311_v35, %v3951_v15 }
 0x243   : > { %v917_v54 = vrot.slane %v916_v45, 4  ;;  %v914_v33 = vrot.slane %v913_v26, 1  ;;  %v1159_v20 = vmul.f32 %v3313_v17, %v3960_v28  ;;  %v1543_v39 = vsel %vm629_vm6, %v3313_v17, 0.0 }
 0x244   : > { %v1544_v3 = vrot.slane %v1543_v39, 4  ;;  %3314 = vpow2.f32 %v1105_v30  ;;  %v4253_v10 = vsel %vm629_vm6, %v1178_v27, 0.0  ;;  %v1101_v63 = vmul.f32 1.442695, %v1050_v49 }
 0x245   : > { %v918_v44 = vmax.f32 %v916_v45, %v917_v54  ;;  %v915_v23 = vmax.f32 %v913_v26, %v914_v33  ;;  %v1291_v0 = vsel %vm629_vm6, %v1159_v20, 0.0  ;;  %v1677_v12 = vrot.slane %v1676_v61, 4 }
 0x246   : > { %v1292_v28 = vrot.slane %v1291_v0, 4  ;;  %v1545_v42 = vadd.f32 %v1544_v3, %v1543_v39  ;;  %v1529_v37 = vsel %vm629_vm6, %v3311_v35, 0.0  ;;  %v1273_v6 = vrot.slane %v1272_v59, 2 }
 0x247   : > { %v919_v36 = vrot.slane %v918_v44, 2  ;;  %v1053_v53 = vsub.f32 %v4207_v8, %v915_v23  ;;  %v1526_v45 = vadd.f32 %v1525_v4, %v1524_v11  ;;  %v1425_v8 = vrot.slane %v4253_v10, 4 }
 0x248   : > { %v1293_v34 = vadd.f32 %v1292_v28, %v1291_v0  ;;  %v1546_v15 = vrot.slane %v1545_v42, 2  ;;  %v1277_v56 = vsel %vm629_vm6, %v1157_v51, 0.0  ;;  %v4265_v39 = vadd.f32 %v1677_v12, %v1676_v61 }
 0x249   : > { %v920_v14 = vmax.f32 %v918_v44, %v919_v36  ;;  %v1107_v18 = vmul.f32 1.442695, %v1053_v53  ;;  %v1527_v27 = vrot.slane %v1526_v45, 1  ;;  %v1530_v23 = vrot.slane %v1529_v37, 4 }
 0x24a   : > { %v3315_v26 = vpop.eup %3314  ;;  %v1547_v62 = vadd.f32 %v1546_v15, %v1545_v42  ;;  %v1294_v33 = vrot.slane %v1293_v34, 2  ;;  %v4268_v3 = vadd.f32 %v1273_v6, %v1272_v59  ;;  %v1874_v25 = vunpack.c.l.b16 %v1772_v19 }
 0x24b   : > { %v921_v58 = vrot.slane %v920_v14, 1  ;;  %v4256_v41 = vpop.f32.mrf.mxu1  ;;  %3316 = vpow2.f32 %v1107_v18  ;;  %v1160_v11 = vmul.f32 %v3315_v26, %v3962_v24  ;;  %v1550_v44 = vsel %vm629_vm6, %v3315_v26, 0.0 }
 0x24c   : > { %v923_v54 = vsel %vm629_vm6, %v4256_v41, -inf  ;;  %3318 = vpow2.f32 %v1101_v63  ;;  %v1548_v49 = vrot.slane %v1547_v62, 1  ;;  %v1551_v30 = vrot.slane %v1550_v44, 4 }
 0x24d   : > { %v922_v40 = vmax.f32 %v920_v14, %v921_v58  ;;  %v924_v35 = vrot.slane %v923_v54, 4  ;;  %v1298_v36 = vsel %vm629_vm6, %v1160_v11, 0.0  ;;  %v1278_v14 = vrot.slane %v1277_v56, 4 }
 0x24e   : > { %v1549_v51 = vadd.f32 %v1548_v49, %v1547_v62  ;;  %v1299_v0 = vrot.slane %v1298_v36, 4  ;;  %v1552_v53 = vadd.f32 %v1551_v30, %v1550_v44  ;;  %v1295_v63 = vadd.f32 %v1294_v33, %v1293_v34 }
 0x24f   : > { %v1054_v17 = vsub.f32 %v4221_v50, %v922_v40  ;;  %v925_v20 = vmax.f32 %v923_v54, %v924_v35  ;;  %v1528_v42 = vadd.f32 %v1527_v27, %v1526_v45  ;;  %v1531_v62 = vadd.f32 %v1530_v23, %v1529_v37 }
 0x250   : > { %v1300_v61 = vadd.f32 %v1299_v0, %v1298_v36  ;;  %v1553_v12 = vrot.slane %v1552_v53, 2  ;;  %v1296_v35 = vrot.slane %v1295_v63, 1  ;;  %v4279_v49 = vadd.f32 %v1278_v14, %v1277_v56 }
 0x251   : > { %v1109_v4 = vmul.f32 1.442695, %v1054_v17  ;;  %v3317_v24 = vpop.eup %3316  ;;  %v926_v50 = vrot.slane %v925_v20, 2 }
 0x252   : > { %v4270_v28 = vpop.eup %3318  ;;  %v1161_v58 = vmul.f32 %v3317_v24, %v3971_v60  ;;  %v1557_v59 = vsel %vm629_vm6, %v3317_v24, 0.0  ;;  %v1301_v40 = vrot.slane %v1300_v61, 2  ;;  %v1554_v34 = vadd.f32 %v1553_v12, %v1552_v53 }
 0x253   : > { %3320 = vpow2.f32 %v1109_v4  ;;  %v4272_v18 = vpop.f32.mrf.mxu1  ;;  %v927_v6 = vmax.f32 %v925_v20, %v926_v50  ;;  %v1558_v54 = vrot.slane %v1557_v59, 4  ;;  %v1536_v30 = vsel %vm629_vm6, %v4270_v28, 0.0 }
 0x254   : > { %3322 = vrcp.f32 %v1549_v51  ;;  %v930_v15 = vsel %vm629_vm6, %v4272_v18, -inf  ;;  %v1305_v45 = vsel %vm629_vm6, %v1161_v58, 0.0  ;;  %v1302_v11 = vadd.f32 %v1301_v40, %v1300_v61 }
 0x255   : > { %v931_v26 = vrot.slane %v930_v15, 4  ;;  %v928_v33 = vrot.slane %v927_v6, 1  ;;  %v1555_v44 = vrot.slane %v1554_v34, 1  ;;  %v1306_v17 = vrot.slane %v1305_v45, 4 }
 0x256   : > { %v1559_v27 = vadd.f32 %v1558_v54, %v1557_v59  ;;  %3324 = vrcp.f32 %v1528_v42  ;;  %v1297_v0 = vadd.f32 %v1296_v35, %v1295_v63  ;;  %v1303_v61 = vrot.slane %v1302_v11, 1 }
 0x257   : > { %v929_v20 = vmax.f32 %v927_v6, %v928_v33  ;;  %v1556_v4 = vadd.f32 %v1555_v44, %v1554_v34  ;;  %v1307_v51 = vadd.f32 %v1306_v17, %v1305_v45  ;;  %v932_v23 = vmax.f32 %v930_v15, %v931_v26 }
 0x258   : > { %v1560_v37 = vrot.slane %v1559_v27, 2  ;;  %v1532_v54 = vrot.slane %v1531_v62, 2  ;;  %v1537_v35 = vrot.slane %v1536_v30, 4 }
 0x259   : > { %v3321_v60 = vpop.eup %3320  ;;  %v1055_v50 = vsub.f32 %v4256_v41, %v929_v20  ;;  %3326 = vrcp.f32 %v1556_v4  ;;  %v1308_v56 = vrot.slane %v1307_v51, 2  ;;  %v933_v34 = vrot.slane %v932_v23, 2 }
 0x25a   : > { %v3323_v36 = vpop.eup %3322  ;;  %v1162_v53 = vmul.f32 %v3321_v60, %v3973_v52  ;;  %v1564_v24 = vsel %vm629_vm6, %v3321_v60, 0.0  ;;  %v1561_v14 = vadd.f32 %v1560_v37, %v1559_v27  ;;  %v1304_v27 = vadd.f32 %v1303_v61, %v1302_v11 }
 0x25b   : > { %v1735_v42 = vmul.f32 %v3323_v36, %v1297_v0  ;;  %v1565_v58 = vrot.slane %v1564_v24, 4  ;;  %v1111_v59 = vmul.f32 1.442695, %v1055_v50  ;;  %v4287_v6 = vpop.f32.mrf.mxu1  ;;  %v1309_v40 = vadd.f32 %v1308_v56, %v1307_v51 }
 0x25c   : > { %v1312_v12 = vsel %vm629_vm6, %v1162_v53, 0.0  ;;  %v1562_v15 = vrot.slane %v1561_v14, 1  ;;  %v4289_v52 = vpop.eup %3324  ;;  %v937_v41 = vsel %vm629_vm6, %v4287_v6, -inf  ;;  %v934_v44 = vmax.f32 %v932_v23, %v933_v34  ;;  %v4861_v34 = vld [vmem:[#allocation6_spill] sm:$0xff] }
 0x25d   : > { %v1313_v63 = vrot.slane %v1312_v12, 4  ;;  %v1566_v26 = vadd.f32 %v1565_v58, %v1564_v24  ;;  %3328 = vpow2.f32 %v1111_v59  ;;  %v1783_v17 = vpack.c.bf16 %v1735_v42, %v1735_v42 }
 0x25e   : > { %v1563_v45 = vadd.f32 %v1562_v15, %v1561_v14  ;;  %v938_v20 = vrot.slane %v937_v41, 4  ;;  %v1310_v4 = vrot.slane %v1309_v40, 1  ;;  %v935_v37 = vrot.slane %v934_v44, 1 }
 0x25f   : > { %v1314_v33 = vadd.f32 %v1313_v63, %v1312_v12  ;;  %v1567_v60 = vrot.slane %v1566_v26, 2  ;;  %v3327_v36 = vpop.eup %3326  ;;  %v4293_v0 = vadd.f32 %v1532_v54, %v1531_v62  ;;  %v1158_v56 = vmul.f32 %v4270_v28, %v3953_v21 }
 0x260   : > { %3330 = vrcp.f32 %v1563_v45  ;;  %v1736_v53 = vmul.f32 %v3327_v36, %v1304_v27  ;;  %v939_v50 = vmax.f32 %v937_v41, %v938_v20  ;;  %v1538_v14 = vadd.f32 %v1537_v35, %v1536_v30 }
 0x261   : > { %v1315_v51 = vrot.slane %v1314_v33, 2  ;;  %v1568_v24 = vadd.f32 %v1567_v60, %v1566_v26  ;;  %v936_v42 = vmax.f32 %v934_v44, %v935_v37  ;;  %v1885_v61 = vunpack.c.l.b16 %v1783_v17 }
 0x262   : > { %v1784_v12 = vpack.c.bf16 %v1736_v53, %v1736_v53  ;;  %v940_v59 = vrot.slane %v939_v50, 2  ;;  %v1311_v63 = vadd.f32 %v1310_v4, %v1309_v40  ;;  %v1280_v4 = vrot.slane %v4279_v49, 2 }
 0x263   : > { %v1316_v23 = vadd.f32 %v1315_v51, %v1314_v33  ;;  %v3329_v11 = vpop.eup %3328  ;;  %v1569_v58 = vrot.slane %v1568_v24, 1  ;;  %v4297_v15 = vpop.f32.mrf.mxu1  ;;  %v1056_v26 = vsub.f32 %v4272_v18, %v936_v42 }
 0x264   : > { %v1163_v62 = vmul.f32 %v3329_v11, %v4861_v34  ;;  %v1571_v54 = vsel %vm629_vm6, %v3329_v11, 0.0  ;;  %v1886_v41 = vunpack.c.l.b16 %v1784_v12  ;;  %v941_v30 = vmax.f32 %v939_v50, %v940_v59 }
 0x265   : > { %v1570_v21 = vadd.f32 %v1569_v58, %v1568_v24  ;;  %v1572_v28 = vrot.slane %v1571_v54, 4  ;;  %v1317_v45 = vrot.slane %v1316_v23, 1  ;;  %v1113_v44 = vmul.f32 1.442695, %v1056_v26 }
 0x266   : > { %v3331_v35 = vpop.eup %3330  ;;  %v1319_v33 = vsel %vm629_vm6, %v1163_v62, 0.0  ;;  %v944_v17 = vsel %vm629_vm6, %v4297_v15, -inf  ;;  %v942_v20 = vrot.slane %v941_v30, 1  ;;  %v1926_v36 = vsel %vm1905_vm3, %v1886_v41, %v1885_v61 }
 0x267   : > { %v1737_v40 = vmul.f32 %v3331_v35, %v1311_v63  ;;  %3332 = vrcp.f32 %v1570_v21  ;;  %v1320_v27 = vrot.slane %v1319_v33, 4  ;;  %v1573_v60 = vadd.f32 %v1572_v28, %v1571_v54 }
 0x268   : > { %3334 = vpow2.f32 %v1113_v44  ;;  %v945_v18 = vrot.slane %v944_v17, 4  ;;  %v1534_v24 = vrot.slane %v4293_v0, 1  ;;  %v1284_v50 = vsel %vm629_vm6, %v1158_v56, 0.0 }
 0x269   : > { %v1321_v51 = vadd.f32 %v1320_v27, %v1319_v33  ;;  %v1574_v37 = vrot.slane %v1573_v60, 2  ;;  %v1785_v53 = vpack.c.bf16 %v1737_v40, %v1737_v40  ;;  %v943_v42 = vmax.f32 %v941_v30, %v942_v20 }
 0x26a   : > { %v946_v11 = vmax.f32 %v944_v17, %v945_v18  ;;  %v1539_v12 = vrot.slane %v1538_v14, 2  ;;  %v1318_v62 = vadd.f32 %v1317_v45, %v1316_v23  ;;  %v1285_v33 = vrot.slane %v1284_v50, 4 }
 0x26b   : > { %v1322_v58 = vrot.slane %v1321_v51, 2  ;;  %v1575_v59 = vadd.f32 %v1574_v37, %v1573_v60  ;;  %v4309_v63 = vpop.f32.mrf.mxu1  ;;  %v1887_v34 = vunpack.c.l.b16 %v1785_v53  ;;  %v1057_v61 = vsub.f32 %v4287_v6, %v943_v42  ;;  %v4862_v6 = vld [vmem:[#allocation5_spill] sm:$0xff] }
 0x26c   : > { %v947_v54 = vrot.slane %v946_v11, 2  ;;  %v951_v26 = vsel %vm629_vm6, %v4309_v63, -inf  ;;  %v4315_v27 = vadd.f32 %v1539_v12, %v1538_v14  ;;  %v4321_v14 = vadd.f32 %v1534_v24, %v4293_v0 }
 0x26d   : > { %v3333_v41 = vpop.eup %3332  ;;  %v1323_v21 = vadd.f32 %v1322_v58, %v1321_v51  ;;  %v1576_v28 = vrot.slane %v1575_v59, 1  ;;  %v952_v56 = vrot.slane %v951_v26, 4  ;;  %v1927_v30 = vsel %vm1907_vm9, %v1887_v34, %v1926_v36 }
 0x26e   : > { %v3335_v35 = vpop.eup %3334  ;;  %v1115_v44 = vmul.f32 1.442695, %v1057_v61  ;;  %v948_v17 = vmax.f32 %v946_v11, %v947_v54  ;;  %v1738_v40 = vmul.f32 %v3333_v41, %v1318_v62  ;;  %v4323_v12 = vadd.f32 %v1285_v33, %v1284_v50 }
 0x26f   : > { %v1577_v23 = vadd.f32 %v1576_v28, %v1575_v59  ;;  %v1164_v45 = vmul.f32 %v3335_v35, %v4862_v6  ;;  %v1578_v60 = vsel %vm629_vm6, %v3335_v35, 0.0  ;;  %v953_v51 = vmax.f32 %v951_v26, %v952_v56  ;;  %v4864_v6 = vld [vmem:[#allocation8_spill] sm:$0xff] }
 0x270   : > { %v1579_v20 = vrot.slane %v1578_v60, 4  ;;  %3336 = vpow2.f32 %v1115_v44  ;;  %v949_v18 = vrot.slane %v948_v17, 1  ;;  %v1324_v37 = vrot.slane %v1323_v21, 1 }
 0x271   : > { %3338 = vrcp.f32 %v1577_v23  ;;  %v1326_v36 = vsel %vm629_vm6, %v1164_v45, 0.0  ;;  %v1786_v53 = vpack.c.bf16 %v1738_v40, %v1738_v40  ;;  %v954_v34 = vrot.slane %v953_v51, 2 }
 0x272   : > { %v1327_v42 = vrot.slane %v1326_v36, 4  ;;  %v1580_v58 = vadd.f32 %v1579_v20, %v1578_v60  ;;  %v950_v11 = vmax.f32 %v948_v17, %v949_v18  ;;  %v4863_v61 = vpack.c.bf16 %v4086_v38, %v4086_v38 }
 0x273   : > { %v4325_v59 = vpop.f32.mrf.mxu1  ;;  %v1888_v62 = vunpack.c.l.b16 %v1786_v53  ;;  %v955_v56 = vmax.f32 %v953_v51, %v954_v34  ;;  %v1541_v35 = vrot.slane %v4315_v27, 1  ;;  %v1325_v24 = vadd.f32 %v1324_v37, %v1323_v21 }
 0x274   : > { %v1870_v54 = vunpack.c.l.b16 %v4863_v61  ;;  %v1328_v26 = vadd.f32 %v1327_v42, %v1326_v36  ;;  %v1581_v41 = vrot.slane %v1580_v58, 2  ;;  %v1058_v28 = vsub.f32 %v4297_v15, %v950_v11 }
 0x275   : > { %v958_v0 = vsel %vm629_vm6, %v4325_v59, -inf  ;;  %v1928_v50 = vsel %vm1909_vm10, %v1888_v62, %v1927_v30  ;;  %v956_v23 = vrot.slane %v955_v56, 1 }
 0x276   : > { %v3337_v33 = vpop.eup %3336  ;;  %v1329_v44 = vrot.slane %v1328_v26, 2  ;;  %v1582_v17 = vadd.f32 %v1581_v41, %v1580_v58  ;;  %v1117_v40 = vmul.f32 1.442695, %v1058_v28  ;;  %v959_v15 = vrot.slane %v958_v0, 4 }
 0x277   : > { %v3339_v38 = vpop.eup %3338  ;;  %v1165_v45 = vmul.f32 %v3337_v33, %v4864_v6  ;;  %v1585_v60 = vsel %vm629_vm6, %v3337_v33, 0.0  ;;  %v1906_v20 = vsel %vm1905_vm3, %v1870_v54, %v4089_v29  ;;  %v957_v30 = vmax.f32 %v955_v56, %v956_v23 }
 0x278   : > { %v1330_v18 = vadd.f32 %v1329_v44, %v1328_v26  ;;  %v1583_v51 = vrot.slane %v1582_v17, 1  ;;  %v1586_v36 = vrot.slane %v1585_v60, 4  ;;  %3340 = vpow2.f32 %v1117_v40 }
 0x279   : > { %v1333_v21 = vsel %vm629_vm6, %v1165_v45, 0.0  ;;  %v960_v37 = vmax.f32 %v958_v0, %v959_v15  ;;  %v1739_v53 = vmul.f32 %v3339_v38, %v1325_v24  ;;  %v1059_v62 = vsub.f32 %v4309_v63, %v957_v30  ;;  %v4866_v45 = vld [vmem:[#allocation7_spill] sm:$0xff] }
 0x27a   : > { %v1584_v42 = vadd.f32 %v1583_v51, %v1582_v17  ;;  %v1334_v58 = vrot.slane %v1333_v21, 4  ;;  %v1587_v11 = vadd.f32 %v1586_v36, %v1585_v60  ;;  %v1331_v34 = vrot.slane %v1330_v18, 1 }
 0x27b   : > { %v961_v61 = vrot.slane %v960_v37, 2  ;;  %v4341_v41 = vpop.f32.mrf.mxu1  ;;  %v1787_v29 = vpack.c.bf16 %v1739_v53, %v1739_v53  ;;  %v1275_v54 = vrot.slane %v4268_v3, 1  ;;  %v1119_v0 = vmul.f32 1.442695, %v1059_v62 }
 0x27c   : > { %3342 = vrcp.f32 %v1584_v42  ;;  %v1335_v26 = vadd.f32 %v1334_v58, %v1333_v21  ;;  %v1588_v28 = vrot.slane %v1587_v11, 2  ;;  %v965_v56 = vsel %vm629_vm6, %v4341_v41, -inf }
 0x27d   : > { %v962_v24 = vmax.f32 %v960_v37, %v961_v61  ;;  %v966_v33 = vrot.slane %v965_v56, 4  ;;  %v4865_v44 = vpack.c.bf16 %v4091_v47, %v4091_v47  ;;  %v1332_v38 = vadd.f32 %v1331_v34, %v1330_v18 }
 0x27e   : > { %v3341_v63 = vpop.eup %3340  ;;  %v1336_v40 = vrot.slane %v1335_v26, 2  ;;  %v1589_v23 = vadd.f32 %v1588_v28, %v1587_v11  ;;  %v1889_v6 = vunpack.c.l.b16 %v1787_v29  ;;  %3344 = vpow2.f32 %v1119_v0 }
 0x27f   : > { %v1871_v17 = vunpack.c.l.b16 %v4865_v44  ;;  %v1166_v60 = vmul.f32 %v3341_v63, %v4866_v45  ;;  %v1592_v15 = vsel %vm629_vm6, %v3341_v63, 0.0  ;;  %v963_v51 = vrot.slane %v962_v24, 1 }
 0x280   : > { %v1590_v36 = vrot.slane %v1589_v23, 1  ;;  %v1593_v21 = vrot.slane %v1592_v15, 4  ;;  %v967_v30 = vmax.f32 %v965_v56, %v966_v33  ;;  %v1337_v37 = vadd.f32 %v1336_v40, %v1335_v26 }
 0x281   : > { %v1340_v53 = vsel %vm629_vm6, %v1166_v60, 0.0  ;;  %v964_v42 = vmax.f32 %v962_v24, %v963_v51  ;;  %v1929_v47 = vsel %vm1911_vm11, %v1889_v6, %v1928_v50  ;;  %v1908_v58 = vsel %vm1907_vm9, %v1871_v17, %v1906_v20  ;;  %v4868_v6 = vld [vmem:[#allocation10_spill] sm:$0xff] }
 0x282   : > { %v3343_v18 = vpop.eup %3342  ;;  %v1591_v11 = vadd.f32 %v1590_v36, %v1589_v23  ;;  %v1341_v34 = vrot.slane %v1340_v53, 4  ;;  %v1594_v62 = vadd.f32 %v1593_v21, %v1592_v15  ;;  %v968_v61 = vrot.slane %v967_v30, 2 }
 0x283   : > { %v1060_v29 = vsub.f32 %v4325_v59, %v964_v42  ;;  %v4355_v28 = vpop.f32.mrf.mxu1  ;;  %v1338_v0 = vrot.slane %v1337_v37, 1  ;;  %v1740_v56 = vmul.f32 %v3343_v18, %v1332_v38  ;;  %v4867_v26 = vpack.c.bf16 %v4106_v16, %v4106_v16 }
 0x284   : > { %3346 = vrcp.f32 %v1591_v11  ;;  %v1342_v33 = vadd.f32 %v1341_v34, %v1340_v53  ;;  %v1595_v50 = vrot.slane %v1594_v62, 2  ;;  %v969_v44 = vmax.f32 %v967_v30, %v968_v61  ;;  %v3345_v20 = vpop.eup %3344 }
 0x285   : > { %v1872_v24 = vunpack.c.l.b16 %v4867_v26  ;;  %v1121_v17 = vmul.f32 1.442695, %v1060_v29  ;;  %v972_v63 = vsel %vm629_vm6, %v4355_v28, -inf  ;;  %v1339_v40 = vadd.f32 %v1338_v0, %v1337_v37 }
 0x286   : > { %v1788_v23 = vpack.c.bf16 %v1740_v56, %v1740_v56  ;;  %v1596_v59 = vadd.f32 %v1595_v50, %v1594_v62  ;;  %v1167_v45 = vmul.f32 %v3345_v20, %v4868_v6  ;;  %v1599_v38 = vsel %vm629_vm6, %v3345_v20, 0.0 }
 0x287   : > { %v970_v60 = vrot.slane %v969_v44, 1  ;;  %v1600_v15 = vrot.slane %v1599_v38, 4  ;;  %3348 = vpow2.f32 %v1121_v17  ;;  %v973_v16 = vrot.slane %v972_v63, 4 }
 0x288   : > { %v1343_v51 = vrot.slane %v1342_v33, 2  ;;  %v1597_v36 = vrot.slane %v1596_v59, 1  ;;  %v1347_v21 = vsel %vm629_vm6, %v1167_v45, 0.0  ;;  %v1890_v53 = vunpack.c.l.b16 %v1788_v23 }
 0x289   : > { %v971_v30 = vmax.f32 %v969_v44, %v970_v60  ;;  %v1348_v42 = vrot.slane %v1347_v21, 4  ;;  %v1601_v18 = vadd.f32 %v1600_v15, %v1599_v38  ;;  %v974_v11 = vmax.f32 %v972_v63, %v973_v16 }
 0x28a   : > { %v1344_v37 = vadd.f32 %v1343_v51, %v1342_v33  ;;  %v3347_v34 = vpop.eup %3346  ;;  %v1598_v62 = vadd.f32 %v1597_v36, %v1596_v59  ;;  %v4367_v29 = vsel %vm1913_vm12, %v1890_v53, %v1929_v47  ;;  %v4370_v0 = vsel %vm1909_vm10, %v1872_v24, %v1908_v58  ;;  %v4869_v59 = vld [vmem:[#allocation9_spill] sm:$0xff] }
 0x28b   : > { %v1061_v61 = vsub.f32 %v4341_v41, %v971_v30  ;;  %v4375_v56 = vadd.f32 %v1541_v35, %v4315_v27  ;;  %v1349_v26 = vadd.f32 %v1348_v42, %v1347_v21  ;;  %v1602_v50 = vrot.slane %v1601_v18, 2  ;;  %v4377_v20 = vpop.f32.mrf.mxu1 }
 0x28c   : > { %v975_v44 = vrot.slane %v974_v11, 2  ;;  %v979_v41 = vsel %vm629_vm6, %v4377_v20, -inf  ;;  %3350 = vrcp.f32 %v1598_v62  ;;  %v1741_v47 = vmul.f32 %v3347_v34, %v1339_v40 }
 0x28d   : > { %v1123_v33 = vmul.f32 1.442695, %v1061_v61  ;;  %v3349_v17 = vpop.eup %3348  ;;  %v1350_v63 = vrot.slane %v1349_v26, 2  ;;  %v1603_v58 = vadd.f32 %v1602_v50, %v1601_v18  ;;  %v980_v23 = vrot.slane %v979_v41, 4 }
 0x28e   : > { %v976_v24 = vmax.f32 %v974_v11, %v975_v44  ;;  %v1168_v6 = vmul.f32 %v3349_v17, %v4869_v59  ;;  %v1606_v27 = vsel %vm629_vm6, %v3349_v17, 0.0  ;;  %v1345_v35 = vrot.slane %v1344_v37, 1 }
 0x28f   : > { %3352 = vpow2.f32 %v1123_v33  ;;  %v1351_v45 = vadd.f32 %v1350_v63, %v1349_v26  ;;  %v1604_v38 = vrot.slane %v1603_v58, 1  ;;  %v1607_v60 = vrot.slane %v1606_v27, 4 }
 0x290   : > { %v977_v15 = vrot.slane %v976_v24, 1  ;;  %v1354_v16 = vsel %vm629_vm6, %v1168_v6, 0.0  ;;  %v981_v51 = vmax.f32 %v979_v41, %v980_v23  ;;  %v1789_v36 = vpack.c.bf16 %v1741_v47, %v1741_v47 }
 0x291   : > { %v4387_v40 = vadd.f32 %v1280_v4, %v4279_v49  ;;  %v1605_v21 = vadd.f32 %v1604_v38, %v1603_v58  ;;  %v1355_v30 = vrot.slane %v1354_v16, 4  ;;  %v1608_v53 = vadd.f32 %v1607_v60, %v1606_v27 }
 0x292   : > { %v1287_v42 = vrot.slane %v4323_v12, 2  ;;  %v3351_v18 = vpop.eup %3350  ;;  %v1352_v11 = vrot.slane %v1351_v45, 1  ;;  %v978_v34 = vmax.f32 %v976_v24, %v977_v15  ;;  %v982_v62 = vrot.slane %v981_v51, 2  ;;  %v4870_v24 = vld [vmem:[#allocation12_spill] sm:$0xff] }
 0x293   : > { %v1346_v61 = vadd.f32 %v1345_v35, %v1344_v37  ;;  %3354 = vrcp.f32 %v1605_v21  ;;  %v1356_v26 = vadd.f32 %v1355_v30, %v1354_v16  ;;  %v1609_v50 = vrot.slane %v1608_v53, 2  ;;  %v4390_v44 = vpop.f32.mrf.mxu1 }
 0x294   : > { %v1891_v33 = vunpack.c.l.b16 %v1789_v36  ;;  %v1062_v49 = vsub.f32 %v4355_v28, %v978_v34  ;;  %v983_v4 = vmax.f32 %v981_v51, %v982_v62  ;;  %v986_v47 = vsel %vm629_vm6, %v4390_v44, -inf }
 0x295   : > { %v3353_v41 = vpop.eup %3352  ;;  %v1742_v17 = vmul.f32 %v3351_v18, %v1346_v61  ;;  %v1357_v63 = vrot.slane %v1356_v26, 2  ;;  %v1610_v58 = vadd.f32 %v1609_v50, %v1608_v53  ;;  %v987_v35 = vrot.slane %v986_v47, 4 }
 0x296   : > { %v1169_v37 = vmul.f32 %v3353_v41, %v4870_v24  ;;  %v1613_v23 = vsel %vm629_vm6, %v3353_v41, 0.0  ;;  %v1125_v6 = vmul.f32 1.442695, %v1062_v49  ;;  %v984_v27 = vrot.slane %v983_v4, 1 }
 0x297   : > { %v1614_v59 = vrot.slane %v1613_v23, 4  ;;  %v1358_v38 = vadd.f32 %v1357_v63, %v1356_v26  ;;  %v1611_v60 = vrot.slane %v1610_v58, 1  ;;  %v1790_v15 = vpack.c.bf16 %v1742_v17, %v1742_v17 }
 0x298   : > { %v1361_v28 = vsel %vm629_vm6, %v1169_v37, 0.0  ;;  %3356 = vpow2.f32 %v1125_v6  ;;  %v985_v36 = vmax.f32 %v983_v4, %v984_v27  ;;  %v988_v53 = vmax.f32 %v986_v47, %v987_v35 }
 0x299   : > { %v1362_v16 = vrot.slane %v1361_v28, 4  ;;  %v1615_v51 = vadd.f32 %v1614_v59, %v1613_v23  ;;  %v3355_v21 = vpop.eup %3354  ;;  %v1612_v30 = vadd.f32 %v1611_v60, %v1610_v58  ;;  %v1892_v18 = vunpack.c.l.b16 %v1790_v15 }
 0x29a   : > { %v1773_v34 = vpack.c.bf16 %v4176_v2, %v4176_v2  ;;  %v1063_v50 = vsub.f32 %v4377_v20, %v985_v36  ;;  %v1873_v26 = vunpack.c.l.b16 %v1771_v48  ;;  %v1353_v41 = vadd.f32 %v1352_v11, %v1351_v45 }
 0x29b   : > { %v1363_v62 = vadd.f32 %v1362_v16, %v1361_v28  ;;  %v1616_v61 = vrot.slane %v1615_v51, 2  ;;  %3358 = vrcp.f32 %v1612_v30  ;;  %v989_v49 = vrot.slane %v988_v53, 2  ;;  %v4406_v37 = vpop.f32.mrf.mxu1 }
 0x29c   : > { %v1931_v4 = vsel %vm1915_vm13, %v1891_v33, %v4367_v29  ;;  %v1359_v17 = vrot.slane %v1358_v38, 1  ;;  %v1127_v58 = vmul.f32 1.442695, %v1063_v50  ;;  %v1743_v24 = vmul.f32 %v3355_v21, %v1353_v41  ;;  %v4871_v33 = vld [vmem:[#allocation11_spill] sm:$0xff] }
 0x29d   : > { %v1364_v47 = vrot.slane %v1363_v62, 2  ;;  %v1617_v63 = vadd.f32 %v1616_v61, %v1615_v51  ;;  %v990_v2 = vmax.f32 %v988_v53, %v989_v49  ;;  %v4409_v20 = vsel %vm1917_vm14, %v1892_v18, %v1931_v4 }
 0x29e   : > { %v3357_v48 = vpop.eup %3356  ;;  %3360 = vpow2.f32 %v1127_v58  ;;  %v1875_v29 = vunpack.c.l.b16 %v1773_v34  ;;  %v993_v27 = vsel %vm629_vm6, %v4406_v37, -inf  ;;  %v1360_v35 = vadd.f32 %v1359_v17, %v1358_v38 }
 0x29f   : > { %v1365_v45 = vadd.f32 %v1364_v47, %v1363_v62  ;;  %v1618_v11 = vrot.slane %v1617_v63, 1  ;;  %v1170_v23 = vmul.f32 %v3357_v48, %v4871_v33  ;;  %v1620_v59 = vsel %vm629_vm6, %v3357_v48, 0.0 }
 0x2a0   : > { %v991_v6 = vrot.slane %v990_v2, 1  ;;  %v1621_v28 = vrot.slane %v1620_v59, 4  ;;  %v994_v15 = vrot.slane %v993_v27, 4  ;;  %v1791_v22 = vpack.c.bf16 %v1743_v24, %v1743_v24 }
 0x2a1   : > { %v1619_v60 = vadd.f32 %v1618_v11, %v1617_v63  ;;  %v3359_v16 = vpop.eup %3358  ;;  %v1368_v19 = vsel %vm629_vm6, %v1170_v23, 0.0  ;;  %v1912_v36 = vsel %vm1911_vm11, %v1873_v26, %v4370_v0  ;;  %v1366_v30 = vrot.slane %v1365_v45, 1 }
 0x2a2   : > { %v992_v51 = vmax.f32 %v990_v2, %v991_v6  ;;  %v1744_v21 = vmul.f32 %v3359_v16, %v1360_v35  ;;  %v1369_v53 = vrot.slane %v1368_v19, 4  ;;  %v1622_v18 = vadd.f32 %v1621_v28, %v1620_v59 }
 0x2a3   : > { %3362 = vrcp.f32 %v1619_v60  ;;  %v995_v62 = vmax.f32 %v993_v27, %v994_v15  ;;  %v1914_v38 = vsel %vm1913_vm12, %v1874_v25, %v1912_v36  ;;  %v1288_v49 = vadd.f32 %v1287_v42, %v4323_v12  ;;  %v4430_v47 = vpop.f32.mrf.mxu1 }
 0x2a4   : > { %v1064_v34 = vsub.f32 %v4390_v44, %v992_v51  ;;  %v3361_v61 = vpop.eup %3360  ;;  %v1792_v50 = vpack.c.bf16 %v1744_v21, %v1744_v21  ;;  %v1370_v41 = vadd.f32 %v1369_v53, %v1368_v19  ;;  %v4427_v4 = vsel %vm1915_vm13, %v1875_v29, %v1914_v38 }
 0x2a5   : > { %v1623_v0 = vrot.slane %v1622_v18, 2  ;;  %v1627_v26 = vsel %vm629_vm6, %v3361_v61, 0.0  ;;  %v1282_v44 = vrot.slane %v4387_v40, 1  ;;  %v1893_v63 = vunpack.c.l.b16 %v1791_v22  ;;  %v4872_v22 = vld [vmem:[#allocation14_spill] sm:$0xff] }
 0x2a6   : > { %v1129_v17 = vmul.f32 1.442695, %v1064_v34  ;;  %v1894_v58 = vunpack.c.l.b16 %v1792_v50  ;;  %v1371_v24 = vrot.slane %v1370_v41, 2  ;;  %v996_v2 = vrot.slane %v995_v62, 2  ;;  %v4873_v34 = vld [vmem:[#allocation13_spill] sm:$0xff] }
 0x2a7   : > { %v1367_v25 = vadd.f32 %v1366_v30, %v1365_v45  ;;  %v1624_v48 = vadd.f32 %v1623_v0, %v1622_v18  ;;  %v1000_v12 = vsel %vm629_vm6, %v4430_v47, -inf  ;;  %v1628_v11 = vrot.slane %v1627_v26, 4 }
 0x2a8   : > { %3364 = vpow2.f32 %v1129_v17  ;;  %v997_v29 = vmax.f32 %v995_v62, %v996_v2  ;;  %v1289_v33 = vrot.slane %v1288_v49, 1  ;;  %v1001_v6 = vrot.slane %v1000_v12, 4 }
 0x2a9   : > { %v3363_v42 = vpop.eup %3362  ;;  %3366 = vrcp.f32 %v4321_v14  ;;  %v1625_v59 = vrot.slane %v1624_v48, 1  ;;  %v1933_v27 = vsel %vm1905_vm3, %v1894_v58, %v1893_v63  ;;  %v1372_v35 = vadd.f32 %v1371_v24, %v1370_v41 }
 0x2aa   : > { %v1745_v23 = vmul.f32 %v3363_v42, %v1367_v25  ;;  %v998_v60 = vrot.slane %v997_v29, 1  ;;  %v1276_v45 = vadd.f32 %v1275_v54, %v4268_v3  ;;  %v4441_v28 = vadd.f32 %v1282_v44, %v4387_v40 }
 0x2ab   : > { %v1626_v15 = vadd.f32 %v1625_v59, %v1624_v48  ;;  %v1002_v16 = vmax.f32 %v1000_v12, %v1001_v6  ;;  %3368 = vrcp.f32 %v4375_v56  ;;  %v1171_v19 = vmul.f32 %v3361_v61, %v4872_v22 }
 0x2ac   : > { %v1793_v14 = vpack.c.bf16 %v1745_v23, %v1745_v23  ;;  %v999_v51 = vmax.f32 %v997_v29, %v998_v60  ;;  %v1776_v36 = vpack.c.bf16 %v4209_v9, %v4209_v9  ;;  %v1777_v21 = vpack.c.bf16 %v4219_v31, %v4219_v31 }
 0x2ad   : > { %3370 = vrcp.f32 %v1626_v15  ;;  %v1629_v3 = vadd.f32 %v1628_v11, %v1627_v26  ;;  %v1003_v54 = vrot.slane %v1002_v16, 2  ;;  %v4449_v40 = vpop.f32.mrf.mxu1  ;;  %v4451_v53 = vadd.f32 %v1289_v33, %v1288_v49 }
 0x2ae   : > { %v3365_v30 = vpop.eup %3364  ;;  %v1373_v56 = vrot.slane %v1372_v35, 1  ;;  %v1895_v61 = vunpack.c.l.b16 %v1793_v14  ;;  %v1065_v50 = vsub.f32 %v4406_v37, %v999_v51  ;;  %v1007_v41 = vsel %vm629_vm6, %v4449_v40, -inf }
 0x2af   : > { %v4453_v18 = vpop.eup %3366  ;;  %v1172_v62 = vmul.f32 %v3365_v30, %v4873_v34  ;;  %v1634_v38 = vsel %vm629_vm6, %v3365_v30, 0.0  ;;  %v1004_v31 = vmax.f32 %v1002_v16, %v1003_v54  ;;  %v1375_v0 = vsel %vm629_vm6, %v1171_v19, 0.0 }
 0x2b0   : > { %v1635_v9 = vrot.slane %v1634_v38, 4  ;;  %v1008_v26 = vrot.slane %v1007_v41, 4  ;;  %v1878_v49 = vunpack.c.l.b16 %v1776_v36  ;;  %v1879_v17 = vunpack.c.l.b16 %v1777_v21 }
 0x2b1   : > { %v4461_v44 = vpop.eup %3368  ;;  %v1630_v63 = vrot.slane %v1629_v3, 2  ;;  %v1131_v24 = vmul.f32 1.442695, %v1065_v50  ;;  %v1005_v2 = vrot.slane %v1004_v31, 1  ;;  %v1374_v25 = vadd.f32 %v1373_v56, %v1372_v35 }
 0x2b2   : > { %v1636_v58 = vadd.f32 %v1635_v9, %v1634_v38  ;;  %v1009_v48 = vmax.f32 %v1007_v41, %v1008_v26  ;;  %v1934_v12 = vsel %vm1907_vm9, %v1895_v61, %v1933_v27  ;;  %v1731_v37 = vmul.f32 %v4235_v43, %v4226_v55  ;;  %v4874_v61 = vld [vmem:[#allocation16_spill] sm:$0xff] }
 0x2b3   : > { %v3371_v42 = vpop.eup %3370  ;;  %v1376_v11 = vrot.slane %v1375_v0, 4  ;;  %v1382_v29 = vsel %vm629_vm6, %v1172_v62, 0.0  ;;  %3372 = vpow2.f32 %v1131_v24  ;;  %v1006_v33 = vmax.f32 %v1004_v31, %v1005_v2 }
 0x2b4   : > { %v1637_v23 = vrot.slane %v1636_v58, 2  ;;  %v1010_v59 = vrot.slane %v1009_v48, 2  ;;  %v1746_v6 = vmul.f32 %v3371_v42, %v1374_v25  ;;  %v1919_v60 = vsel %vm1905_vm3, %v1878_v49, %v4205_v1 }
 0x2b5   : > { %v1631_v15 = vadd.f32 %v1630_v63, %v1629_v3  ;;  %v1066_v35 = vsub.f32 %v4430_v47, %v1006_v33  ;;  %v4470_v16 = vpop.f32.mrf.mxu1  ;;  %v1778_v55 = vpack.c.bf16 %v4233_v57, %v4233_v57  ;;  %v1920_v43 = vsel %vm1907_vm9, %v1879_v17, %v1919_v60 }
 0x2b6   : > { %v1383_v27 = vrot.slane %v1382_v29, 4  ;;  %v1011_v14 = vmax.f32 %v1009_v48, %v1010_v59  ;;  %v1014_v22 = vsel %vm629_vm6, %v4470_v16, -inf  ;;  %v1794_v19 = vpack.c.bf16 %v1746_v6, %v1746_v6 }
 0x2b7   : > { %v1377_v51 = vadd.f32 %v1376_v11, %v1375_v0  ;;  %v1133_v36 = vmul.f32 1.442695, %v1066_v35  ;;  %v1015_v21 = vrot.slane %v1014_v22, 4  ;;  %v1732_v1 = vmul.f32 %v4289_v52, %v1276_v45  ;;  %v4875_v35 = vld [vmem:[#allocation15_spill] sm:$0xff] }
 0x2b8   : > { %v1638_v30 = vadd.f32 %v1637_v23, %v1636_v58  ;;  %v1012_v47 = vrot.slane %v1011_v14, 1  ;;  %v1896_v3 = vunpack.c.l.b16 %v1794_v19  ;;  %v1779_v54 = vpack.c.bf16 %v1731_v37, %v1731_v37 }
 0x2b9   : > { %v3373_v56 = vpop.eup %3372  ;;  %v1632_v34 = vrot.slane %v1631_v15, 1  ;;  %3374 = vpow2.f32 %v1133_v36  ;;  %v1016_v57 = vmax.f32 %v1014_v22, %v1015_v21  ;;  %v1880_v62 = vunpack.c.l.b16 %v1778_v55 }
 0x2ba   : > { %v1384_v38 = vadd.f32 %v1383_v27, %v1382_v29  ;;  %v1173_v9 = vmul.f32 %v3373_v56, %v4874_v61  ;;  %v1641_v50 = vsel %vm629_vm6, %v3373_v56, 0.0  ;;  %v1013_v31 = vmax.f32 %v1011_v14, %v1012_v47 }
 0x2bb   : > { %v1378_v41 = vrot.slane %v1377_v51, 2  ;;  %v1642_v0 = vrot.slane %v1641_v50, 4  ;;  %v1017_v26 = vrot.slane %v1016_v57, 2  ;;  %v1780_v49 = vpack.c.bf16 %v1732_v1, %v1732_v1 }
 0x2bc   : > { %v1639_v52 = vrot.slane %v1638_v30, 1  ;;  %v1389_v45 = vsel %vm629_vm6, %v1173_v9, 0.0  ;;  %v1067_v17 = vsub.f32 %v4449_v40, %v1013_v31  ;;  %v4483_v63 = vsel %vm1909_vm10, %v1896_v3, %v1934_v12 }
 0x2bd   : > { %v1390_v58 = vrot.slane %v1389_v45, 4  ;;  %v1643_v24 = vadd.f32 %v1642_v0, %v1641_v50  ;;  %v1018_v2 = vmax.f32 %v1016_v57, %v1017_v26  ;;  %v1881_v25 = vunpack.c.l.b16 %v1779_v54 }
 0x2be   : > { %v1633_v48 = vadd.f32 %v1632_v34, %v1631_v15  ;;  %v1385_v37 = vrot.slane %v1384_v38, 2  ;;  %v1135_v42 = vmul.f32 1.442695, %v1067_v17  ;;  %v1921_v11 = vsel %vm1909_vm10, %v1880_v62, %v1920_v43 }
 0x2bf   : > { %v3375_v29 = vpop.eup %3374  ;;  %v1379_v33 = vadd.f32 %v1378_v41, %v1377_v51  ;;  %v1391_v23 = vadd.f32 %v1390_v58, %v1389_v45  ;;  %v1644_v59 = vrot.slane %v1643_v24, 2  ;;  %v1019_v6 = vrot.slane %v1018_v2, 1 }
 0x2c0   : > { %v1640_v60 = vadd.f32 %v1639_v52, %v1638_v30  ;;  %v1174_v40 = vmul.f32 %v3375_v29, %v4875_v35  ;;  %v1648_v12 = vsel %vm629_vm6, %v3375_v29, 0.0  ;;  %3376 = vpow2.f32 %v1135_v42 }
 0x2c1   : > { %v1392_v55 = vrot.slane %v1391_v23, 2  ;;  %v1645_v27 = vadd.f32 %v1644_v59, %v1643_v24  ;;  %v1649_v14 = vrot.slane %v1648_v12, 4  ;;  %v1020_v22 = vmax.f32 %v1018_v2, %v1019_v6 }
 0x2c2   : > { %3378 = vrcp.f32 %v1633_v48  ;;  %v1386_v15 = vadd.f32 %v1385_v37, %v1384_v38  ;;  %v1396_v19 = vsel %vm629_vm6, %v1174_v40, 0.0  ;;  %v1922_v43 = vsel %vm1911_vm11, %v1881_v25, %v1921_v11 }
 0x2c3   : > { %v1646_v51 = vrot.slane %v1645_v27, 1  ;;  %v1397_v36 = vrot.slane %v1396_v19, 4  ;;  %v1650_v21 = vadd.f32 %v1649_v14, %v1648_v12  ;;  %v1068_v1 = vsub.f32 %v4470_v16, %v1020_v22 }
 0x2c4   : > { %3380 = vrcp.f32 %v1640_v60  ;;  %v1393_v30 = vadd.f32 %v1392_v55, %v1391_v23  ;;  %v1733_v47 = vmul.f32 %v4453_v18, %v4441_v28  ;;  %v1882_v3 = vunpack.c.l.b16 %v1780_v49 }
 0x2c5   : > { %v1647_v54 = vadd.f32 %v1646_v51, %v1645_v27  ;;  %v1398_v56 = vadd.f32 %v1397_v36, %v1396_v19  ;;  %v1651_v34 = vrot.slane %v1650_v21, 2  ;;  %v1137_v57 = vmul.f32 1.442695, %v1068_v1 }
 0x2c6   : > { %v3377_v62 = vpop.eup %3376  ;;  %v1679_v38 = vrot.slane %v4265_v39, 2  ;;  %v1380_v61 = vrot.slane %v1379_v33, 1  ;;  %v1387_v9 = vrot.slane %v1386_v15, 1  ;;  %v1734_v50 = vmul.f32 %v4461_v44, %v4451_v53 }
 0x2c7   : > { %3382 = vrcp.f32 %v1647_v54  ;;  %v1652_v16 = vadd.f32 %v1651_v34, %v1650_v21  ;;  %v1175_v31 = vmul.f32 %v3377_v62, %v4043_v13  ;;  %v1655_v41 = vsel %vm629_vm6, %v3377_v62, 0.0 }
 0x2c8   : > { %v3379_v28 = vpop.eup %3378  ;;  %v1656_v18 = vrot.slane %v1655_v41, 4  ;;  %3384 = vpow2.f32 %v1137_v57  ;;  %v1394_v0 = vrot.slane %v1393_v30, 1  ;;  %v1399_v26 = vrot.slane %v1398_v56, 2 }
 0x2c9   : > { %v1653_v49 = vrot.slane %v1652_v16, 1  ;;  %v1403_v52 = vsel %vm629_vm6, %v1175_v31, 0.0  ;;  %v1781_v45 = vpack.c.bf16 %v1733_v47, %v1733_v47  ;;  %v1923_v17 = vsel %vm1913_vm12, %v1882_v3, %v1922_v43 }
 0x2ca   : > { %v3381_v58 = vpop.eup %3380  ;;  %v1680_v53 = vadd.f32 %v1679_v38, %v4265_v39  ;;  %v1404_v44 = vrot.slane %v1403_v52, 4  ;;  %v1657_v24 = vadd.f32 %v1656_v18, %v1655_v41  ;;  %v1381_v2 = vadd.f32 %v1380_v61, %v1379_v33 }
 0x2cb   : > { %v1654_v13 = vadd.f32 %v1653_v49, %v1652_v16  ;;  %v1388_v25 = vadd.f32 %v1387_v9, %v1386_v15  ;;  %v1400_v48 = vadd.f32 %v1399_v26, %v1398_v56  ;;  %v1782_v37 = vpack.c.bf16 %v1734_v50, %v1734_v50 }
 0x2cc   : > { %v1658_v42 = vrot.slane %v1657_v24, 2  ;;  %v1395_v11 = vadd.f32 %v1394_v0, %v1393_v30  ;;  %v1747_v29 = vmul.f32 %v3379_v28, %v1381_v2  ;;  %v1774_v23 = vpack.c.bf16 %v4231_v46, %v4231_v46 }
 0x2cd   : > { %v3383_v59 = vpop.eup %3382  ;;  %v1405_v6 = vadd.f32 %v1404_v44, %v1403_v52  ;;  %3386 = vrcp.f32 %v1654_v13  ;;  %v1748_v60 = vmul.f32 %v3381_v58, %v1388_v25  ;;  %v1883_v35 = vunpack.c.l.b16 %v1781_v45 }
 0x2ce   : > { %v3385_v40 = vpop.eup %3384  ;;  %v1681_v39 = vrot.slane %v1680_v53, 1  ;;  %v1659_v12 = vadd.f32 %v1658_v42, %v1657_v24  ;;  %v1426_v33 = vadd.f32 %v1425_v8, %v4253_v10  ;;  %v1749_v55 = vmul.f32 %v3383_v59, %v1395_v11 }
 0x2cf   : > { %v1176_v27 = vmul.f32 %v3385_v40, %v4028_v32  ;;  %v1662_v14 = vsel %vm629_vm6, %v3385_v40, 0.0  ;;  %v1401_v22 = vrot.slane %v1400_v48, 1  ;;  %v1884_v15 = vunpack.c.l.b16 %v1782_v37 }
 0x2d0   : > { %v1660_v46 = vrot.slane %v1659_v12, 1  ;;  %v1663_v19 = vrot.slane %v1662_v14, 4  ;;  %v1795_v43 = vpack.c.bf16 %v1747_v29, %v1747_v29  ;;  %v1876_v51 = vunpack.c.l.b16 %v1774_v23 }
 0x2d1   : > { %v1406_v36 = vrot.slane %v1405_v6, 2  ;;  %v1410_v21 = vsel %vm629_vm6, %v1176_v27, 0.0  ;;  %v1796_v1 = vpack.c.bf16 %v1748_v60, %v1748_v60  ;;  %v1924_v30 = vsel %vm1915_vm13, %v1883_v35, %v1923_v17 }
 0x2d2   : > { %v1661_v47 = vadd.f32 %v1660_v46, %v1659_v12  ;;  %v1411_v3 = vrot.slane %v1410_v21, 4  ;;  %v1664_v10 = vadd.f32 %v1663_v19, %v1662_v14  ;;  %v1797_v8 = vpack.c.bf16 %v1749_v55, %v1749_v55 }
 0x2d3   : > { %v3387_v54 = vpop.eup %3386  ;;  %v1427_v32 = vrot.slane %v1426_v33, 2  ;;  %v1682_v56 = vadd.f32 %v1681_v39, %v1680_v53  ;;  %v1402_v34 = vadd.f32 %v1401_v22, %v1400_v48  ;;  %v1925_v57 = vsel %vm1917_vm14, %v1884_v15, %v1924_v30  ;;  %v3118_v30 = vld [vmem:[%s4831_s1 + $0x88] sm:$0xff] }
 0x2d4   : > { %v1412_v62 = vadd.f32 %v1411_v3, %v1410_v21  ;;  %v1665_v38 = vrot.slane %v1664_v10, 2  ;;  %v1897_v61 = vunpack.c.l.b16 %v1795_v43  ;;  %v1918_v9 = vsel %vm1917_vm14, %v1876_v51, %v4427_v4  ;;  %v3116_v21 = vld [vmem:[%s4831_s1 + $0x78] sm:$0xff] }
 0x2d5   : > { %v1407_v50 = vadd.f32 %v1406_v36, %v1405_v6  ;;  %v1750_v16 = vmul.f32 %v3387_v54, %v1402_v34  ;;  %v1898_v31 = vunpack.c.l.b16 %v1796_v1  ;;  %v1943_v41 = vpack.c.b16 %v1925_v57, %v1918_v9  ;;  %v3115_v36 = vld [vmem:[%s4831_s1 + $0x70] sm:$0xff]  ;;  %v3117_v1 = vld [vmem:[%s4831_s1 + $0x80] sm:$0xff]  ;;  %v3120_v3 = vld [vmem:[%s4831_s1 + $0x98] sm:$0xff] }
 0x2d6   : > { %3388 = vrcp.f32 %v1661_v47  ;;  %v1413_v28 = vrot.slane %v1412_v62, 2  ;;  %v1666_v18 = vadd.f32 %v1665_v38, %v1664_v10  ;;  %v1899_v0 = vunpack.c.l.b16 %v1797_v8  ;;  %v3119_v47 = vld [vmem:[%s4831_s1 + $0x90] sm:$0xff]  ;;  %v3121_v10 = vld [vmem:[%s4831_s1 + $0x28] sm:$0xff] }
 0x2d7   : > { %3390 = vrcp.f32 %v4240_v7  ;;  %v1428_v26 = vadd.f32 %v1427_v32, %v1426_v33  ;;  %v1798_v49 = vpack.c.bf16 %v1750_v16, %v1750_v16  ;;  %v1936_v45 = vsel %vm1911_vm11, %v1897_v61, %v4483_v63  ;;  %2052 = vmatpush.bf16.msrb.mxu3 %v3121_v10 }
 0x2d8   : > { %v1667_v52 = vrot.slane %v1666_v18, 1  ;;  %3392 = vrcp.f32 %v1682_v56  ;;  %v1414_v17 = vadd.f32 %v1413_v28, %v1412_v62  ;;  %v1408_v58 = vrot.slane %v1407_v50, 1 }
 0x2d9   : > { %v1900_v4 = vunpack.c.l.b16 %v1798_v49  ;;  %v1937_v53 = vsel %vm1913_vm12, %v1898_v31, %v1936_v45  ;;  %v1422_v24 = vrot.slane %v4228_v5, 1  ;;  %v1429_v13 = vrot.slane %v1428_v26, 1  ;;  %v3122_v49 = vld [vmem:[%s4831_s1 + $0x34] sm:$0xff] }
 0x2da   : > { %v1668_v44 = vadd.f32 %v1667_v52, %v1666_v18  ;;  %v1938_v2 = vsel %vm1915_vm13, %v1899_v0, %v1937_v53  ;;  %v1415_v42 = vrot.slane %v1414_v17, 1  ;;  %v1409_v63 = vadd.f32 %v1408_v58, %v1407_v50  ;;  %v2018_v52 = vld [vmem:[%s4831_s1 + $0x30] sm:$0x1] }
 0x2db   : > { %v1939_v7 = vsel %vm1917_vm14, %v1900_v4, %v1938_v2  ;;  %v1423_v29 = vadd.f32 %v1422_v24, %v4228_v5  ;;  %v1430_v23 = vadd.f32 %v1429_v13, %v1428_v26  ;;  %2135 = vmatpush.bf16.msra.mxu3 %v3122_v49  ;;  %v2019_v45 = vunpack.c.l.bf16 %v2018_v52 }
 0x2dc   : > { %v3389_v25 = vpop.eup %3388  ;;  %3394 = vrcp.f32 %v1668_v44  ;;  %v1944_v48 = vpack.c.b16 %v1939_v7, %v4409_v20  ;;  %v1416_v60 = vadd.f32 %v1415_v42, %v1414_v17 }
 0x2dd   : > { %v3391_v37 = vpop.eup %3390  ;;  %v1751_v59 = vmul.f32 %v3389_v25, %v1409_v63  ;;  %v2020_v58 = vperm.slane %v2019_v45, 0 }
 0x2de   : > { %v3393_v11 = vpop.eup %3392  ;;  %v1753_v6 = vmul.f32 %v3391_v37, %v1423_v29 }
 0x2df   : > { %v1754_v35 = vmul.f32 %v3393_v11, %v1430_v23  ;;  %v1799_v12 = vpack.c.bf16 %v1751_v59, %v1751_v59 }
 0x2e0   : > { %v1801_v33 = vpack.c.bf16 %v1753_v6, %v1753_v6 }
 0x2e1   : > { %v1802_v27 = vpack.c.bf16 %v1754_v35, %v1754_v35  ;;  %v1901_v14 = vunpack.c.l.b16 %v1799_v12 }
 0x2e2   : > { %v3395_v40 = vpop.eup %3394  ;;  %v1903_v20 = vunpack.c.l.b16 %v1801_v33 }
 0x2e3   : > { %v1752_v39 = vmul.f32 %v3395_v40, %v1416_v60  ;;  %v1904_v15 = vunpack.c.l.b16 %v1802_v27 }
 0x2e5   : > { %v1800_v55 = vpack.c.bf16 %v1752_v39, %v1752_v39 }
 0x2e7   : > { %v1902_v22 = vunpack.c.l.b16 %v1800_v55 }
 0x2e9   : > { %v1940_v46 = vsel %vm1905_vm3, %v1902_v22, %v1901_v14 }
 0x2ea   : > { %v1941_v19 = vsel %vm1907_vm9, %v1903_v20, %v1940_v46 }
 0x2eb   : > { %v1942_v5 = vsel %vm1909_vm10, %v1904_v15, %v1941_v19 }
 0x2ec   : > { %v1945_v43 = vpack.c.b16 %v1942_v5, %v1942_v5 }
 0x2ee   : > { %v1969_v51 = vsel %vm1967_vm15, %v1945_v43, 0 }
 0x2ef   : > { %1976 = vmatpush.bf16.msrb.mxu2 %v1969_v51 }
 0x2f3   : > { %1977 = vmatpush.bf16.msrb.mxu2 %v1944_v48 }
 0x2f7   : > { %1978 = vmatpush.bf16.msrb.mxu2 %v1943_v41 }
 0x2fa   : > { %3049 = vmatmul.msk.bf16.vlgmr.msrb.gmra.mxu2 %vm1948_vm0, %v3115_v36 }
 0x30a   : > { %3050 = vmatmul.msk.bf16.gmra.mxu2 %vm1948_vm0, %v3116_v21 }
 0x31a   : > { %3051 = vmatmul.msk.bf16.gmra.mxu2 %vm1948_vm0, %v3117_v1 }
 0x32a   : > { %3052 = vmatmul.msk.bf16.gmra.mxu2 %vm1948_vm0, %v3118_v30 }
 0x33a   : > { %3053 = vmatmul.msk.bf16.gmra.mxu2 %vm1948_vm0, %v3119_v47 }
 0x34a   : > { %3054 = vmatmul.msk.bf16.gmra.mxu2 %vm1948_vm0, %v3120_v3 }
 0x37d   : > { %v1980_v8 = vpop.f32.mrf.mxu2 }
 0x385   : > { %v1982_v54 = vpop.f32.mrf.mxu2 }
 0x386   : > { %v2010_v32 = vpack.c.bf16 %v1982_v54, %v1980_v8 }
 0x388   : > { %3059 = vmatmul.msk.bf16.vlgmr.msrb.gmra.mxu3 %vm629_vm6, %v2010_v32  ;;  %v2167_v32 = vld [vmem:[%s4831_s1 + $0xb0] sm:$0xf] }
 0x38d   : > { %v1985_v56 = vpop.f32.mrf.mxu2 }
 0x395   : > { %v1987_v34 = vpop.f32.mrf.mxu2 }
 0x396   : > { %v2011_v57 = vpack.c.bf16 %v1987_v34, %v1985_v56  ;;  %v4604_v56 = vunpack.c.l.bf16 %v2167_v32 }
 0x398   : > { %3060 = vmatmul.msk.bf16.gmra.mxu3 %vm629_vm6, %v2011_v57 }
 0x39d   : > { %v1990_v62 = vpop.f32.mrf.mxu2 }
 0x3a5   : > { %v1992_v38 = vpop.f32.mrf.mxu2 }
 0x3a6   : > { %v2012_v61 = vpack.c.bf16 %v1992_v38, %v1990_v62 }
 0x3a8   : > { %3061 = vmatmul.msk.bf16.gmra.mxu3 %vm629_vm6, %v2012_v61 }
 0x3ad   : > { %v1995_v9 = vpop.f32.mrf.mxu2 }
 0x3b5   : > { %v1997_v50 = vpop.f32.mrf.mxu2 }
 0x3b6   : > { %v2013_v16 = vpack.c.bf16 %v1997_v50, %v1995_v9 }
 0x3b8   : > { %3062 = vmatmul.msk.bf16.gmra.mxu3 %vm629_vm6, %v2013_v16 }
 0x3bd   : > { %v2000_v31 = vpop.f32.mrf.mxu2 }
 0x3c5   : > { %v2002_v41 = vpop.f32.mrf.mxu2 }
 0x3c6   : > { %v2014_v28 = vpack.c.bf16 %v2002_v41, %v2000_v31 }
 0x3c8   : > { %3063 = vmatmul.msk.bf16.gmra.mxu3 %vm629_vm6, %v2014_v28 }
 0x3cd   : > { %v2005_v18 = vpop.f32.mrf.mxu2 }
 0x3d5   : > { %v2007_v0 = vpop.f32.mrf.mxu2 }
 0x3d6   : > { %v2015_v26 = vpack.c.bf16 %v2007_v0, %v2005_v18 }
 0x3d8   : > { %3064 = vmatmul.msk.bf16.gmra.mxu3 %vm629_vm6, %v2015_v26 }
 0x40b   : > { %v2054_v17 = vpop.f32.mrf.mxu3 }
 0x40c   : > { %v2055_v4 = vadd.f32 %v2054_v17, %v2020_v58 }
 0x40e   : > { %3396 = vtanh.f32 %v2055_v4 }
 0x413   : > { %v2056_v53 = vpop.f32.mrf.mxu3 }
 0x414   : > { %v2057_v44 = vadd.f32 %v2056_v53, %v2020_v58  ;;  %v4559_v24 = vpop.eup %3396 }
 0x416   : > { %3398 = vtanh.f32 %v2057_v44 }
 0x41b   : > { %v2059_v2 = vpop.f32.mrf.mxu3 }
 0x41c   : > { %v4561_v13 = vpop.eup %3398  ;;  %v2060_v25 = vadd.f32 %v2059_v2, %v2020_v58 }
 0x41d   : > { %v2096_v7 = vpack.c.bf16 %v4561_v13, %v4559_v24 }
 0x41e   : > { %3400 = vtanh.f32 %v2060_v25 }
 0x41f   : > { %3069 = vmatmul.msk.bf16.vlgmr.msra.gmra.mxu3 %vm629_vm6, %v2096_v7 }
 0x423   : > { %v2061_v48 = vpop.f32.mrf.mxu3 }
 0x424   : > { %v2062_v37 = vadd.f32 %v2061_v48, %v2020_v58  ;;  %v4566_v42 = vpop.eup %3400 }
 0x426   : > { %3402 = vtanh.f32 %v2062_v37 }
 0x42b   : > { %v2064_v63 = vpop.f32.mrf.mxu3 }
 0x42c   : > { %v4568_v11 = vpop.eup %3402  ;;  %v2065_v23 = vadd.f32 %v2064_v63, %v2020_v58 }
 0x42d   : > { %v2097_v29 = vpack.c.bf16 %v4568_v11, %v4566_v42 }
 0x42e   : > { %3404 = vtanh.f32 %v2065_v23 }
 0x42f   : > { %3070 = vmatmul.msk.bf16.gmra.mxu3 %vm629_vm6, %v2097_v29 }
 0x433   : > { %v2066_v59 = vpop.f32.mrf.mxu3 }
 0x434   : > { %v2067_v6 = vadd.f32 %v2066_v59, %v2020_v58  ;;  %v4573_v60 = vpop.eup %3404 }
 0x436   : > { %3406 = vtanh.f32 %v2067_v6 }
 0x43b   : > { %v2069_v35 = vpop.f32.mrf.mxu3 }
 0x43c   : > { %v4575_v40 = vpop.eup %3406  ;;  %v2070_v12 = vadd.f32 %v2069_v35, %v2020_v58 }
 0x43d   : > { %v2098_v39 = vpack.c.bf16 %v4575_v40, %v4573_v60 }
 0x43e   : > { %3408 = vtanh.f32 %v2070_v12 }
 0x43f   : > { %3071 = vmatmul.msk.bf16.gmra.mxu3 %vm629_vm6, %v2098_v39 }
 0x443   : > { %v2071_v33 = vpop.f32.mrf.mxu3 }
 0x444   : > { %v2072_v55 = vadd.f32 %v2071_v33, %v2020_v58  ;;  %v4580_v27 = vpop.eup %3408 }
 0x446   : > { %3410 = vtanh.f32 %v2072_v55 }
 0x44b   : > { %v2074_v14 = vpop.f32.mrf.mxu3 }
 0x44c   : > { %v4582_v22 = vpop.eup %3410  ;;  %v2075_v15 = vadd.f32 %v2074_v14, %v2020_v58 }
 0x44d   : > { %v2099_v20 = vpack.c.bf16 %v4582_v22, %v4580_v27 }
 0x44e   : > { %3412 = vtanh.f32 %v2075_v15 }
 0x44f   : > { %3072 = vmatmul.msk.bf16.gmra.mxu3 %vm629_vm6, %v2099_v20 }
 0x453   : > { %v2076_v46 = vpop.f32.mrf.mxu3 }
 0x454   : > { %v2077_v19 = vadd.f32 %v2076_v46, %v2020_v58  ;;  %v4587_v5 = vpop.eup %3412 }
 0x456   : > { %3414 = vtanh.f32 %v2077_v19 }
 0x45b   : > { %v2079_v43 = vpop.f32.mrf.mxu3 }
 0x45c   : > { %v4589_v51 = vpop.eup %3414  ;;  %v2080_v21 = vadd.f32 %v2079_v43, %v2020_v58 }
 0x45d   : > { %v2100_v36 = vpack.c.bf16 %v4589_v51, %v4587_v5 }
 0x45e   : > { %3416 = vtanh.f32 %v2080_v21 }
 0x45f   : > { %3073 = vmatmul.msk.bf16.gmra.mxu3 %vm629_vm6, %v2100_v36 }
 0x463   : > { %v2081_v1 = vpop.f32.mrf.mxu3 }
 0x464   : > { %v2082_v30 = vadd.f32 %v2081_v1, %v2020_v58  ;;  %v4594_v47 = vpop.eup %3416 }
 0x466   : > { %3418 = vtanh.f32 %v2082_v30 }
 0x46c   : > { %v4596_v3 = vpop.eup %3418 }
 0x46d   : > { %v2101_v10 = vpack.c.bf16 %v4596_v3, %v4594_v47 }
 0x46f   : > { %3074 = vmatmul.msk.bf16.gmra.mxu3 %vm629_vm6, %v2101_v10 }
 0x4a2   : > { %v2137_v8 = vpop.f32.mrf.mxu3 }
 0x4a3   : > { %v2169_v57 = vadd.f32 %v4604_v56, %v2137_v8 }
 0x4a5   : > { %v2181_v61 = vsel %vm629_vm6, %v2169_v57, -inf }
 0x4a6   : > { %v2182_v16 = vrot.slane %v2181_v61, 4 }
 0x4a8   : > { %v2183_v28 = vmax.f32 %v2181_v61, %v2182_v16 }
 0x4aa   : > { %v2139_v54 = vpop.f32.mrf.mxu3  ;;  %v2184_v26 = vrot.slane %v2183_v28, 2 }
 0x4ab   : > { %v2170_v62 = vadd.f32 %v4604_v56, %v2139_v54 }
 0x4ac   : > { %v2185_v17 = vmax.f32 %v2183_v28, %v2184_v26 }
 0x4ad   : > { %v2188_v9 = vsel %vm629_vm6, %v2170_v62, -inf }
 0x4ae   : > { %v2189_v31 = vrot.slane %v2188_v9, 4  ;;  %v2186_v53 = vrot.slane %v2185_v17, 1 }
 0x4b0   : > { %v2190_v18 = vmax.f32 %v2188_v9, %v2189_v31  ;;  %v2187_v25 = vmax.f32 %v2185_v17, %v2186_v53 }
 0x4b2   : > { %v2142_v34 = vpop.f32.mrf.mxu3  ;;  %v2191_v49 = vrot.slane %v2190_v18, 2  ;;  %v2265_v29 = vsub.f32 %v2169_v57, %v2187_v25 }
 0x4b3   : > { %v2171_v38 = vadd.f32 %v4604_v56, %v2142_v34 }
 0x4b4   : > { %v2192_v58 = vmax.f32 %v2190_v18, %v2191_v49  ;;  %v2277_v39 = vmul.f32 1.442695, %v2265_v29 }
 0x4b5   : > { %v2195_v50 = vsel %vm629_vm6, %v2171_v38, -inf }
 0x4b6   : > { %v2196_v41 = vrot.slane %v2195_v50, 4  ;;  %v2193_v44 = vrot.slane %v2192_v58, 1  ;;  %3420 = vpow2.f32 %v2277_v39 }
 0x4b8   : > { %v2197_v0 = vmax.f32 %v2195_v50, %v2196_v41  ;;  %v2194_v48 = vmax.f32 %v2192_v58, %v2193_v44 }
 0x4ba   : > { %v2144_v52 = vpop.f32.mrf.mxu3  ;;  %v2198_v45 = vrot.slane %v2197_v0, 2  ;;  %v2266_v23 = vsub.f32 %v2170_v62, %v2194_v48 }
 0x4bb   : > { %v4613_v63 = vadd.f32 %v4604_v56, %v2144_v52 }
 0x4bc   : > { %v2199_v4 = vmax.f32 %v2197_v0, %v2198_v45  ;;  %v2279_v12 = vmul.f32 1.442695, %v2266_v23  ;;  %v3421_v36 = vpop.eup %3420 }
 0x4bd   : > { %v2202_v6 = vsel %vm629_vm6, %v4613_v63, -inf  ;;  %v2397_v32 = vsel %vm629_vm6, %v3421_v36, 0.0  ;;  %v2301_v53 = vmul.f32 %v3421_v36, %v4559_v24 }
 0x4be   : > { %v2200_v2 = vrot.slane %v2199_v4, 1  ;;  %v2203_v55 = vrot.slane %v2202_v6, 4  ;;  %3422 = vpow2.f32 %v2279_v12  ;;  %v2398_v50 = vrot.slane %v2397_v32, 4 }
 0x4bf   : > { %v2313_v12 = vsel %vm629_vm6, %v2301_v53, 0.0 }
 0x4c0   : > { %v2201_v37 = vmax.f32 %v2199_v4, %v2200_v2  ;;  %v2204_v15 = vmax.f32 %v2202_v6, %v2203_v55  ;;  %v2399_v45 = vadd.f32 %v2398_v50, %v2397_v32  ;;  %v2314_v36 = vrot.slane %v2313_v12, 4 }
 0x4c2   : > { %v2147_v7 = vpop.f32.mrf.mxu3  ;;  %v2267_v59 = vsub.f32 %v2171_v38, %v2201_v37  ;;  %v2205_v21 = vrot.slane %v2204_v15, 2  ;;  %v2400_v37 = vrot.slane %v2399_v45, 2 }
 0x4c3   : > { %v4618_v14 = vadd.f32 %v4604_v56, %v2147_v7 }
 0x4c4   : > { %v2281_v33 = vmul.f32 1.442695, %v2267_v59  ;;  %v3423_v30 = vpop.eup %3422  ;;  %v2206_v57 = vmax.f32 %v2204_v15, %v2205_v21 }
 0x4c5   : > { %v2209_v19 = vsel %vm629_vm6, %v4618_v14, -inf  ;;  %v2404_v34 = vsel %vm629_vm6, %v3423_v30, 0.0  ;;  %v2302_v7 = vmul.f32 %v3423_v30, %v4561_v13 }
 0x4c6   : > { %3424 = vpow2.f32 %v2281_v33  ;;  %v2210_v10 = vrot.slane %v2209_v19, 4  ;;  %v2405_v41 = vrot.slane %v2404_v34, 4  ;;  %v2207_v0 = vrot.slane %v2206_v57, 1 }
 0x4c7   : > { %v2320_v55 = vsel %vm629_vm6, %v2302_v7, 0.0 }
 0x4c8   : > { %v2211_v61 = vmax.f32 %v2209_v19, %v2210_v10  ;;  %v2406_v58 = vadd.f32 %v2405_v41, %v2404_v34  ;;  %v2208_v2 = vmax.f32 %v2206_v57, %v2207_v0  ;;  %v2321_v10 = vrot.slane %v2320_v55, 4 }
 0x4ca   : > { %v2149_v35 = vpop.f32.mrf.mxu3  ;;  %v2212_v49 = vrot.slane %v2211_v61, 2  ;;  %v2407_v6 = vrot.slane %v2406_v58, 2  ;;  %v2268_v24 = vsub.f32 %v4613_v63, %v2208_v2  ;;  %v2322_v41 = vadd.f32 %v2321_v10, %v2320_v55 }
 0x4cb   : > { %v4621_v20 = vadd.f32 %v4604_v56, %v2149_v35 }
 0x4cc   : > { %v3425_v8 = vpop.eup %3424  ;;  %v2213_v25 = vmax.f32 %v2211_v61, %v2212_v49  ;;  %v2408_v21 = vadd.f32 %v2407_v6, %v2406_v58  ;;  %v2323_v7 = vrot.slane %v2322_v41, 2 }
 0x4cd   : > { %v2216_v43 = vsel %vm629_vm6, %v4621_v20, -inf  ;;  %v2411_v38 = vsel %vm629_vm6, %v3425_v8, 0.0  ;;  %v2303_v29 = vmul.f32 %v3425_v8, %v4566_v42 }
 0x4ce   : > { %v2217_v54 = vrot.slane %v2216_v43, 4  ;;  %v2412_v18 = vrot.slane %v2411_v38, 4  ;;  %v2214_v13 = vrot.slane %v2213_v25, 1  ;;  %v2409_v50 = vrot.slane %v2408_v21, 1 }
 0x4cf   : > { %v2327_v19 = vsel %vm629_vm6, %v2303_v29, 0.0 }
 0x4d0   : > { %v2218_v16 = vmax.f32 %v2216_v43, %v2217_v54  ;;  %v2413_v44 = vadd.f32 %v2412_v18, %v2411_v38  ;;  %v2283_v54 = vmul.f32 1.442695, %v2268_v24  ;;  %v2328_v34 = vrot.slane %v2327_v19, 4 }
 0x4d1   : > { %v2215_v63 = vmax.f32 %v2213_v25, %v2214_v13 }
 0x4d2   : > { %v2152_v46 = vpop.f32.mrf.mxu3  ;;  %v2219_v17 = vrot.slane %v2218_v16, 2  ;;  %v2414_v33 = vrot.slane %v2413_v44, 2  ;;  %3426 = vpow2.f32 %v2283_v54 }
 0x4d3   : > { %v4628_v1 = vadd.f32 %v4604_v56, %v2152_v46  ;;  %v2401_v46 = vadd.f32 %v2400_v37, %v2399_v45  ;;  %v2269_v49 = vsub.f32 %v4618_v14, %v2215_v63 }
 0x4d4   : > { %v2220_v23 = vmax.f32 %v2218_v16, %v2219_v17  ;;  %v2415_v8 = vadd.f32 %v2414_v33, %v2413_v44  ;;  %v2410_v44 = vadd.f32 %v2409_v50, %v2408_v21  ;;  %v2324_v33 = vadd.f32 %v2323_v7, %v2322_v41 }
 0x4d5   : > { %v2223_v62 = vsel %vm629_vm6, %v4628_v1, -inf }
 0x4d6   : > { %v2224_v28 = vrot.slane %v2223_v62, 4  ;;  %v2221_v42 = vrot.slane %v2220_v23, 1  ;;  %v2325_v54 = vrot.slane %v2324_v33, 1 }
 0x4d8   : > { %v2225_v4 = vmax.f32 %v2223_v62, %v2224_v28  ;;  %v2402_v62 = vrot.slane %v2401_v46, 1  ;;  %v2222_v38 = vmax.f32 %v2220_v23, %v2221_v42  ;;  %v2416_v28 = vrot.slane %v2415_v8, 1 }
 0x4d9   : > { %v2285_v23 = vmul.f32 1.442695, %v2269_v49 }
 0x4da   : > { %v2154_v9 = vpop.f32.mrf.mxu3  ;;  %v2226_v35 = vrot.slane %v2225_v4, 2  ;;  %v2403_v17 = vadd.f32 %v2402_v62, %v2401_v46  ;;  %v2270_v58 = vsub.f32 %v4621_v20, %v2222_v38  ;;  %v2417_v25 = vadd.f32 %v2416_v28, %v2415_v8 }
 0x4db   : > { %v4636_v31 = vadd.f32 %v4604_v56, %v2154_v9  ;;  %v2315_v9 = vadd.f32 %v2314_v36, %v2313_v12 }
 0x4dc   : > { %v2227_v30 = vmax.f32 %v2225_v4, %v2226_v35  ;;  %3428 = vrcp.f32 %v2403_v17  ;;  %v2287_v6 = vmul.f32 1.442695, %v2270_v58 }
 0x4dd   : > { %v2230_v26 = vsel %vm629_vm6, %v4636_v31, -inf  ;;  %v2316_v53 = vrot.slane %v2315_v9, 2  ;;  %3430 = vrcp.f32 %v2410_v44 }
 0x4de   : > { %v2231_v52 = vrot.slane %v2230_v26, 4  ;;  %v2228_v16 = vrot.slane %v2227_v30, 1  ;;  %3432 = vrcp.f32 %v2417_v25 }
 0x4df   : > { %v2317_v12 = vadd.f32 %v2316_v53, %v2315_v9  ;;  %3434 = vpow2.f32 %v2285_v23 }
 0x4e0   : > { %v2232_v48 = vmax.f32 %v2230_v26, %v2231_v52  ;;  %v2329_v26 = vadd.f32 %v2328_v34, %v2327_v19  ;;  %v2229_v2 = vmax.f32 %v2227_v30, %v2228_v16  ;;  %3436 = vpow2.f32 %v2287_v6 }
 0x4e1   : > { %v2318_v21 = vrot.slane %v2317_v12, 1 }
 0x4e2   : > { %v2157_v59 = vpop.f32.mrf.mxu3  ;;  %v2233_v15 = vrot.slane %v2232_v48, 2  ;;  %v2330_v29 = vrot.slane %v2329_v26, 2  ;;  %v2271_v20 = vsub.f32 %v4628_v1, %v2229_v2 }
 0x4e3   : > { %v4644_v39 = vadd.f32 %v4604_v56, %v2157_v59  ;;  %v3427_v59 = vpop.eup %3426  ;;  %v2319_v28 = vadd.f32 %v2318_v21, %v2317_v12 }
 0x4e4   : > { %v2234_v57 = vmax.f32 %v2232_v48, %v2233_v15  ;;  %v2331_v13 = vadd.f32 %v2330_v29, %v2329_v26  ;;  %v2418_v15 = vsel %vm629_vm6, %v3427_v59, 0.0  ;;  %v2289_v42 = vmul.f32 1.442695, %v2271_v20  ;;  %v3429_v36 = vpop.eup %3428 }
 0x4e5   : > { %v2237_v43 = vsel %vm629_vm6, %v4644_v39, -inf  ;;  %v2419_v30 = vrot.slane %v2418_v15, 4  ;;  %v3431_v8 = vpop.eup %3430  ;;  %v2493_v17 = vmul.f32 %v3429_v36, %v2319_v28 }
 0x4e6   : > { %v2238_v32 = vrot.slane %v2237_v43, 4  ;;  %v2235_v52 = vrot.slane %v2234_v57, 1  ;;  %3438 = vpow2.f32 %v2289_v42 }
 0x4e7   : > { %v2420_v50 = vadd.f32 %v2419_v30, %v2418_v15 }
 0x4e8   : > { %v2239_v61 = vmax.f32 %v2237_v43, %v2238_v32  ;;  %v2236_v14 = vmax.f32 %v2234_v57, %v2235_v52  ;;  %v2332_v32 = vrot.slane %v2331_v13, 1  ;;  %v3433_v57 = vpop.eup %3432 }
 0x4e9   : > { %v3435_v38 = vpop.eup %3434  ;;  %v2421_v44 = vrot.slane %v2420_v50, 2 }
 0x4ea   : > { %v2240_v18 = vrot.slane %v2239_v61, 2  ;;  %v2159_v0 = vpop.f32.mrf.mxu3  ;;  %v2272_v46 = vsub.f32 %v4636_v31, %v2236_v14  ;;  %v2304_v31 = vmul.f32 %v3427_v59, %v4568_v11  ;;  %v3437_v9 = vpop.eup %3436  ;;  %v2425_v49 = vsel %vm629_vm6, %v3435_v38, 0.0 }
 0x4eb   : > { %v4654_v45 = vadd.f32 %v4604_v56, %v2159_v0  ;;  %v2333_v0 = vadd.f32 %v2332_v32, %v2331_v13  ;;  %v2432_v53 = vsel %vm629_vm6, %v3437_v9, 0.0  ;;  %v2426_v29 = vrot.slane %v2425_v49, 4 }
 0x4ec   : > { %v2241_v4 = vmax.f32 %v2239_v61, %v2240_v18  ;;  %v2291_v34 = vmul.f32 1.442695, %v2272_v46  ;;  %v2326_v18 = vadd.f32 %v2325_v54, %v2324_v33  ;;  %v2334_v26 = vsel %vm629_vm6, %v2304_v31, 0.0  ;;  %v3439_v25 = vpop.eup %3438 }
 0x4ed   : > { %v2244_v37 = vsel %vm629_vm6, %v4654_v45, -inf  ;;  %v2433_v14 = vrot.slane %v2432_v53, 4  ;;  %v2422_v33 = vadd.f32 %v2421_v44, %v2420_v50  ;;  %v2306_v50 = vmul.f32 %v3437_v9, %v4575_v40 }
 0x4ee   : > { %v2242_v48 = vrot.slane %v2241_v4, 1  ;;  %v2245_v35 = vrot.slane %v2244_v37, 4  ;;  %3440 = vpow2.f32 %v2291_v34  ;;  %v2494_v58 = vmul.f32 %v3431_v8, %v2326_v18 }
 0x4ef   : > { %v2434_v42 = vadd.f32 %v2433_v14, %v2432_v53  ;;  %v2348_v44 = vsel %vm629_vm6, %v2306_v50, 0.0 }
 0x4f0   : > { %v2243_v24 = vmax.f32 %v2241_v4, %v2242_v48  ;;  %v2246_v55 = vmax.f32 %v2244_v37, %v2245_v35  ;;  %v2495_v4 = vmul.f32 %v3433_v57, %v2333_v0  ;;  %v2335_v48 = vrot.slane %v2334_v26, 4 }
 0x4f1   : > { %v2305_v37 = vmul.f32 %v3435_v38, %v4573_v60  ;;  %v2509_v35 = vpack.c.bf16 %v2494_v58, %v2494_v58  ;;  %v2427_v60 = vadd.f32 %v2426_v29, %v2425_v49  ;;  %v2307_v49 = vmul.f32 %v3439_v25, %v4580_v27 }
 0x4f2   : > { %v2247_v19 = vrot.slane %v2246_v55, 2  ;;  %v2162_v43 = vpop.f32.mrf.mxu3  ;;  %v2273_v10 = vsub.f32 %v4644_v39, %v2243_v24  ;;  %v2510_v20 = vpack.c.bf16 %v2495_v4, %v2495_v4  ;;  %v2439_v24 = vsel %vm629_vm6, %v3439_v25, 0.0 }
 0x4f3   : > { %v4664_v63 = vadd.f32 %v4604_v56, %v2162_v43  ;;  %v2336_v13 = vadd.f32 %v2335_v48, %v2334_v26  ;;  %v2341_v15 = vsel %vm629_vm6, %v2305_v37, 0.0  ;;  %v4684_v30 = vunpack.c.l.b16 %v2509_v35 }
 0x4f4   : > { %v2248_v1 = vmax.f32 %v2246_v55, %v2247_v19  ;;  %v2293_v39 = vmul.f32 1.442695, %v2273_v10  ;;  %v3441_v6 = vpop.eup %3440  ;;  %v2440_v10 = vrot.slane %v2439_v24, 4  ;;  %v2342_v8 = vrot.slane %v2341_v15, 4 }
 0x4f5   : > { %v2251_v61 = vsel %vm629_vm6, %v4664_v63, -inf  ;;  %v2446_v43 = vsel %vm629_vm6, %v3441_v6, 0.0  ;;  %v4687_v57 = vunpack.c.l.b16 %v2510_v20  ;;  %v2428_v31 = vrot.slane %v2427_v60, 2 }
 0x4f6   : > { %v2249_v62 = vrot.slane %v2248_v1, 1  ;;  %v2252_v41 = vrot.slane %v2251_v61, 4  ;;  %3442 = vpow2.f32 %v2293_v39  ;;  %v2435_v39 = vrot.slane %v2434_v42, 2 }
 0x4f7   : > { %v2355_v27 = vsel %vm629_vm6, %v2307_v49, 0.0 }
 0x4f8   : > { %v2250_v16 = vmax.f32 %v2248_v1, %v2249_v62  ;;  %v2253_v52 = vmax.f32 %v2251_v61, %v2252_v41  ;;  %v2423_v1 = vrot.slane %v2422_v33, 1  ;;  %v2447_v62 = vrot.slane %v2446_v43, 4 }
 0x4f9   : > { %v2337_v61 = vrot.slane %v2336_v13, 2  ;;  %v2441_v41 = vadd.f32 %v2440_v10, %v2439_v24  ;;  %v2436_v53 = vadd.f32 %v2435_v39, %v2434_v42  ;;  %v2356_v24 = vrot.slane %v2355_v27, 4 }
 0x4fa   : > { %v2274_v11 = vsub.f32 %v4654_v45, %v2250_v16  ;;  %v2254_v7 = vrot.slane %v2253_v52, 2  ;;  %v2164_v23 = vpop.f32.mrf.mxu3  ;;  %v2508_v45 = vpack.c.bf16 %v2493_v17, %v2493_v17  ;;  %v2424_v26 = vadd.f32 %v2423_v1, %v2422_v33 }
 0x4fb   : > { %v4675_v12 = vadd.f32 %v4604_v56, %v2164_v23  ;;  %v2448_v17 = vadd.f32 %v2447_v62, %v2446_v43  ;;  %v4693_v4 = vadd.f32 %v2337_v61, %v2336_v13  ;;  %v2437_v35 = vrot.slane %v2436_v53, 1 }
 0x4fc   : > { %v2295_v2 = vmul.f32 1.442695, %v2274_v11  ;;  %v2255_v59 = vmax.f32 %v2253_v52, %v2254_v7  ;;  %v3443_v19 = vpop.eup %3442  ;;  %v4682_v56 = vunpack.c.l.b16 %v2508_v45  ;;  %v2429_v52 = vadd.f32 %v2428_v31, %v2427_v60 }
 0x4fd   : > { %v2258_v46 = vsel %vm629_vm6, %v4675_v12, -inf  ;;  %v2453_v38 = vsel %vm629_vm6, %v3443_v19, 0.0  ;;  %v2308_v7 = vmul.f32 %v3441_v6, %v4582_v22  ;;  %v2309_v25 = vmul.f32 %v3443_v19, %v4587_v5 }
 0x4fe   : > { %3444 = vpow2.f32 %v2295_v2  ;;  %v2256_v55 = vrot.slane %v2255_v59, 1  ;;  %v2259_v21 = vrot.slane %v2258_v46, 4  ;;  %v2454_v11 = vrot.slane %v2453_v38, 4 }
 0x4ff   : > { %v2442_v2 = vrot.slane %v2441_v41, 2  ;;  %v2430_v23 = vrot.slane %v2429_v52, 1  ;;  %v2449_v14 = vrot.slane %v2448_v17, 2  ;;  %v2349_v45 = vrot.slane %v2348_v44, 4 }
 0x500   : > { %v2257_v36 = vmax.f32 %v2255_v59, %v2256_v55  ;;  %v2260_v32 = vmax.f32 %v2258_v46, %v2259_v21  ;;  %v2455_v37 = vadd.f32 %v2454_v11, %v2453_v38  ;;  %v2362_v22 = vsel %vm629_vm6, %v2308_v7, 0.0 }
 0x501   : > { %v2443_v55 = vadd.f32 %v2442_v2, %v2441_v41  ;;  %v2369_v13 = vsel %vm629_vm6, %v2309_v25, 0.0  ;;  %v2450_v46 = vadd.f32 %v2449_v14, %v2448_v17  ;;  %v2431_v21 = vadd.f32 %v2430_v23, %v2429_v52 }
 0x502   : > { %v2275_v54 = vsub.f32 %v4664_v63, %v2257_v36  ;;  %v2261_v0 = vrot.slane %v2260_v32, 2  ;;  %v2343_v63 = vadd.f32 %v2342_v8, %v2341_v15  ;;  %v2456_v5 = vrot.slane %v2455_v37, 2 }
 0x503   : > { %v2363_v10 = vrot.slane %v2362_v22, 4  ;;  %v2438_v31 = vadd.f32 %v2437_v35, %v2436_v53  ;;  %v2444_v62 = vrot.slane %v2443_v55, 1  ;;  %v2357_v38 = vadd.f32 %v2356_v24, %v2355_v27 }
 0x504   : > { %v3445_v34 = vpop.eup %3444  ;;  %v2297_v18 = vmul.f32 1.442695, %v2275_v54  ;;  %v2262_v58 = vmax.f32 %v2260_v32, %v2261_v0  ;;  %v2344_v29 = vrot.slane %v2343_v63, 2  ;;  %v2350_v54 = vadd.f32 %v2349_v45, %v2348_v44 }
 0x505   : > { %v2460_v16 = vsel %vm629_vm6, %v3445_v34, 0.0  ;;  %v2310_v40 = vmul.f32 %v3445_v34, %v4589_v51  ;;  %v2451_v61 = vrot.slane %v2450_v46, 1  ;;  %v2445_v17 = vadd.f32 %v2444_v62, %v2443_v55 }
 0x506   : > { %v2461_v28 = vrot.slane %v2460_v16, 4  ;;  %3446 = vpow2.f32 %v2297_v18  ;;  %v2263_v48 = vrot.slane %v2262_v58, 1  ;;  %v2552_v18 = vsel %vm1905_vm3, %v4684_v30, %v4682_v56 }
 0x507   : > { %3448 = vrcp.f32 %v2424_v26  ;;  %v2376_v51 = vsel %vm629_vm6, %v2310_v40, 0.0  ;;  %v2345_v0 = vadd.f32 %v2344_v29, %v2343_v63  ;;  %v4714_v11 = vsel %vm1907_vm9, %v4687_v57, %v2552_v18 }
 0x508   : > { %v2462_v9 = vadd.f32 %v2461_v28, %v2460_v16  ;;  %v2264_v59 = vmax.f32 %v2262_v58, %v2263_v48  ;;  %v2377_v19 = vrot.slane %v2376_v51, 4  ;;  %v2364_v16 = vadd.f32 %v2363_v10, %v2362_v22 }
 0x509   : > { %v2351_v52 = vrot.slane %v2350_v54, 2  ;;  %v2358_v53 = vrot.slane %v2357_v38, 2  ;;  %v2452_v40 = vadd.f32 %v2451_v61, %v2450_v46  ;;  %v2346_v22 = vrot.slane %v2345_v0, 1 }
 0x50a   : > { %v2463_v20 = vrot.slane %v2462_v9, 2  ;;  %v2276_v6 = vsub.f32 %v4675_v12, %v2264_v59  ;;  %v2370_v12 = vrot.slane %v2369_v13, 4  ;;  %v2378_v50 = vadd.f32 %v2377_v19, %v2376_v51 }
 0x50b   : > { %v2365_v7 = vrot.slane %v2364_v16, 2  ;;  %v2352_v25 = vadd.f32 %v2351_v52, %v2350_v54  ;;  %v2359_v23 = vadd.f32 %v2358_v53, %v2357_v38 }
 0x50c   : > { %v3447_v33 = vpop.eup %3446  ;;  %v2299_v43 = vmul.f32 1.442695, %v2276_v6  ;;  %v2464_v1 = vadd.f32 %v2463_v20, %v2462_v9  ;;  %v2371_v26 = vadd.f32 %v2370_v12, %v2369_v13  ;;  %v2379_v9 = vrot.slane %v2378_v50, 2 }
 0x50d   : > { %v2311_v15 = vmul.f32 %v3447_v33, %v4594_v47  ;;  %v2467_v60 = vsel %vm629_vm6, %v3447_v33, 0.0  ;;  %v4706_v36 = vpop.eup %3448  ;;  %v2457_v47 = vadd.f32 %v2456_v5, %v2455_v37  ;;  %v2339_v33 = vrot.slane %v4693_v4, 1 }
 0x50e   : > { %v2468_v42 = vrot.slane %v2467_v60, 4  ;;  %3450 = vpow2.f32 %v2299_v43  ;;  %v2465_v41 = vrot.slane %v2464_v1, 1  ;;  %v2372_v30 = vrot.slane %v2371_v26, 2 }
 0x50f   : > { %v2383_v8 = vsel %vm629_vm6, %v2311_v15, 0.0  ;;  %3452 = vrcp.f32 %v2431_v21  ;;  %v2458_v58 = vrot.slane %v2457_v47, 1  ;;  %v2380_v14 = vadd.f32 %v2379_v9, %v2378_v50 }
 0x510   : > { %v2384_v32 = vrot.slane %v2383_v8, 4  ;;  %v2469_v34 = vadd.f32 %v2468_v42, %v2467_v60  ;;  %3454 = vrcp.f32 %v2438_v31  ;;  %v2466_v48 = vadd.f32 %v2465_v41, %v2464_v1 }
 0x511   : > { %3456 = vrcp.f32 %v2445_v17  ;;  %v2459_v37 = vadd.f32 %v2458_v58, %v2457_v47  ;;  %v2366_v24 = vadd.f32 %v2365_v7, %v2364_v16  ;;  %v2353_v5 = vrot.slane %v2352_v25, 1 }
 0x512   : > { %v2470_v39 = vrot.slane %v2469_v34, 2  ;;  %v2385_v28 = vadd.f32 %v2384_v32, %v2383_v8  ;;  %3458 = vrcp.f32 %v2452_v40  ;;  %v2381_v15 = vrot.slane %v2380_v14, 1 }
 0x513   : > { %3460 = vrcp.f32 %v2466_v48  ;;  %v2360_v46 = vrot.slane %v2359_v23, 1  ;;  %v2340_v10 = vadd.f32 %v2339_v33, %v4693_v4  ;;  %v2367_v8 = vrot.slane %v2366_v24, 1 }
 0x514   : > { %v2471_v49 = vadd.f32 %v2470_v39, %v2469_v34  ;;  %v3451_v2 = vpop.eup %3450  ;;  %v2386_v56 = vrot.slane %v2385_v28, 2  ;;  %v2347_v12 = vadd.f32 %v2346_v22, %v2345_v0  ;;  %v2354_v62 = vadd.f32 %v2353_v5, %v2352_v25 }
 0x515   : > { %v2312_v27 = vmul.f32 %v3451_v2, %v4596_v3  ;;  %v2474_v57 = vsel %vm629_vm6, %v3451_v2, 0.0  ;;  %v3453_v45 = vpop.eup %3452  ;;  %v2373_v3 = vadd.f32 %v2372_v30, %v2371_v26  ;;  %v2496_v31 = vmul.f32 %v4706_v36, %v2340_v10 }
 0x516   : > { %v2472_v44 = vrot.slane %v2471_v49, 1  ;;  %v2475_v29 = vrot.slane %v2474_v57, 4  ;;  %v2387_v35 = vadd.f32 %v2386_v56, %v2385_v28  ;;  %v3455_v55 = vpop.eup %3454  ;;  %v2382_v47 = vadd.f32 %v2381_v15, %v2380_v14  ;;  %v2507_v15 = vld [vmem:[%s4831_s1 + $0xa8] sm:$0xf] }
 0x517   : > { %v2390_v59 = vsel %vm629_vm6, %v2312_v27, 0.0  ;;  %v3457_v60 = vpop.eup %3456  ;;  %v2374_v1 = vrot.slane %v2373_v3, 1  ;;  %v2361_v39 = vadd.f32 %v2360_v46, %v2359_v23  ;;  %v2497_v41 = vmul.f32 %v3453_v45, %v2347_v12  ;;  %v2596_v12 = vld [vmem:[%s4831_s1 + $0x44] sm:$0x1] }
 0x518   : > { %v2473_v63 = vadd.f32 %v2472_v44, %v2471_v49  ;;  %v2391_v51 = vrot.slane %v2390_v59, 4  ;;  %v2476_v20 = vadd.f32 %v2475_v29, %v2474_v57  ;;  %v2388_v19 = vrot.slane %v2387_v35, 1  ;;  %v3459_v21 = vpop.eup %3458 }
 0x519   : > { %v3461_v54 = vpop.eup %3460  ;;  %v2375_v28 = vadd.f32 %v2374_v1, %v2373_v3  ;;  %v2368_v18 = vadd.f32 %v2367_v8, %v2366_v24  ;;  %v2498_v26 = vmul.f32 %v3455_v55, %v2354_v62  ;;  %v2499_v49 = vmul.f32 %v3457_v60, %v2361_v39 }
 0x51a   : > { %3462 = vrcp.f32 %v2473_v63  ;;  %v2392_v6 = vadd.f32 %v2391_v51, %v2390_v59  ;;  %v2477_v13 = vrot.slane %v2476_v20, 2  ;;  %v2389_v16 = vadd.f32 %v2388_v19, %v2387_v35  ;;  %v3124_v19 = vld [vmem:[%s4831_s1 + $0x3c] sm:$0xff] }
 0x51b   : > { %3464 = vrcp.f32 %v2459_v37  ;;  %v2502_v4 = vmul.f32 %v3461_v54, %v2382_v47  ;;  %v2511_v0 = vpack.c.bf16 %v2496_v31, %v2496_v31  ;;  %v2500_v58 = vmul.f32 %v3459_v21, %v2368_v18  ;;  %v3125_v54 = vld [vmem:[%s4831_s1 + $0x48] sm:$0xff] }
 0x51c   : > { %v2393_v42 = vrot.slane %v2392_v6, 2  ;;  %v2478_v43 = vadd.f32 %v2477_v13, %v2476_v20  ;;  %v2512_v36 = vpack.c.bf16 %v2497_v41, %v2497_v41  ;;  %v2513_v40 = vpack.c.bf16 %v2498_v26, %v2498_v26 }
 0x51d   : > { %v2517_v9 = vpack.c.bf16 %v2502_v4, %v2502_v4  ;;  %v2514_v44 = vpack.c.bf16 %v2499_v49, %v2499_v49  ;;  %v2515_v48 = vpack.c.bf16 %v2500_v58, %v2500_v58  ;;  %v2543_v30 = vunpack.c.l.b16 %v2511_v0  ;;  %v4757_v4 = vld [vmem:[%s4831_s1 + $0xb4] sm:$0xff]  }
 0x51e   : > { %v2479_v32 = vrot.slane %v2478_v43, 1  ;;  %v2394_v38 = vadd.f32 %v2393_v42, %v2392_v6  ;;  %v2544_v27 = vunpack.c.l.b16 %v2512_v36  ;;  %v2545_v25 = vunpack.c.l.b16 %v2513_v40 }
 0x51f   : > { %v2549_v37 = vunpack.c.l.b16 %v2517_v9  ;;  %v2546_v29 = vunpack.c.l.b16 %v2514_v44  ;;  %v2547_v59 = vunpack.c.l.b16 %v2515_v48  ;;  %v2554_v35 = vsel %vm1909_vm10, %v2543_v30, %v4714_v11  ;;  %v3123_v11 = vld [vmem:[%s4831_s1 + $0xa0] sm:$0xff] }
 0x520   : > { %v3463_v34 = vpop.eup %3462  ;;  %v2480_v50 = vadd.f32 %v2479_v32, %v2478_v43  ;;  %v2395_v17 = vrot.slane %v2394_v38, 1  ;;  %v2555_v51 = vsel %vm1911_vm11, %v2544_v27, %v2554_v35  ;;  %v2525_v60 = vunpack.c.l.b16 %v2507_v15 }
 0x521   : > { %v3465_v61 = vpop.eup %3464  ;;  %v2503_v52 = vmul.f32 %v3463_v34, %v2389_v16  ;;  %v2556_v33 = vsel %vm1913_vm12, %v2545_v25, %v2555_v51  ;;  %v2597_v32 = vunpack.c.l.bf16 %v2596_v12  ;;  %v2667_v49 = vunpack.c.l.bf16 %v4757_v4 }
 0x522   : > { %3466 = vrcp.f32 %v2480_v50  ;;  %v2501_v53 = vmul.f32 %v3465_v61, %v2375_v28  ;;  %v2396_v7 = vadd.f32 %v2395_v17, %v2394_v38  ;;  %v2557_v3 = vsel %vm1915_vm13, %v2546_v29, %v2556_v33 }
 0x523   : > { %v2518_v2 = vpack.c.bf16 %v2503_v52, %v2503_v52  ;;  %v2558_v22 = vsel %vm1917_vm14, %v2547_v59, %v2557_v3  ;;  %v2527_v46 = vpack.c.b16 %v2525_v60, %v2525_v60  ;;  %v2598_v31 = vperm.slane %v2597_v32, 0 }
 0x524   : > { %v2516_v56 = vpack.c.bf16 %v2501_v53, %v2501_v53 }
 0x525   : > { %v2550_v23 = vunpack.c.l.b16 %v2518_v2 }
 0x526   : > { %v2548_v45 = vunpack.c.l.b16 %v2516_v56 }
 0x528   : > { %v3467_v63 = vpop.eup %3466  ;;  %v2559_v24 = vsel %vm1905_vm3, %v2549_v37, %v2548_v45 }
 0x529   : > { %v2504_v57 = vmul.f32 %v3467_v63, %v2396_v7  ;;  %v2560_v55 = vsel %vm1907_vm9, %v2550_v23, %v2559_v24 }
 0x52b   : > { %v2519_v14 = vpack.c.bf16 %v2504_v57, %v2504_v57 }
 0x52d   : > { %v2551_v20 = vunpack.c.l.b16 %v2519_v14 }
 0x52f   : > { %v2561_v6 = vsel %vm1909_vm10, %v2551_v20, %v2560_v55 }
 0x530   : > { %v2562_v13 = vpack.c.b16 %v2561_v6, %v2558_v22 }
 0x532   : > { %v2572_v5 = vsel %vm2570_vm1, %v2562_v13, 0 }
 0x533   : > { %2581 = vmatpush.bf16.msra.mxu2 %v2572_v5 }
 0x536   : > { %3079 = vmatmul.msk.bf16.vlgmr.msra.gmra.mxu2 %vm2563_vm2, %v3123_v11 }
 0x537   : > { %2618 = vmatpush.bf16.msrb.mxu2 %v3124_v19 }
 0x53b   : > { %2655 = vmatpush.bf16.msra.mxu2 %v3125_v54 }
 0x546   : > { %3080 = vmatmul.msk.bf16.gmra.mxu2 %vm2563_vm2, %v2527_v46 }
 0x5b9   : > { %v2583_v42 = vpop.f32.mrf.mxu2 }
 0x5c1   : > { %v2585_v43 = vpop.f32.mrf.mxu2 }
 0x5c2   : > { %v2592_v21 = vpack.c.bf16 %v2585_v43, %v2583_v42 }
 0x5c4   : > { %3085 = vmatmul.msk.bf16.vlgmr.msrb.gmra.mxu2 %vm629_vm6, %v2592_v21 }
 0x5c9   : > { %v2588_v10 = vpop.f32.mrf.mxu2 }
 0x5ca   : > { %v2593_v1 = vpack.c.bf16 %v2588_v10, %v2588_v10 }
 0x5d1   : > { %v2590_v8 = vpop.f32.mrf.mxu2 }
 0x5d4   : > { %3086 = vmatmul.msk.bf16.gmra.mxu2 %vm629_vm6, %v2593_v1 }
 0x647   : > { %v2620_v34 = vpop.f32.mrf.mxu2 }
 0x648   : > { %v2621_v62 = vadd.f32 %v2620_v34, %v2598_v31 }
 0x64a   : > { %3468 = vtanh.f32 %v2621_v62 }
 0x64f   : > { %v2622_v47 = vpop.f32.mrf.mxu2 }
 0x650   : > { %v2623_v38 = vadd.f32 %v2622_v47, %v2598_v31  ;;  %v3469_v61 = vpop.eup %3468 }
 0x652   : > { %3470 = vtanh.f32 %v2623_v38 }
 0x657   : > { %v2625_v50 = vpop.f32.mrf.mxu2 }
 0x658   : > { %v3471_v39 = vpop.eup %3470  ;;  %v2626_v41 = vadd.f32 %v2625_v50, %v2598_v31 }
 0x659   : > { %v2632_v16 = vpack.c.bf16 %v3471_v39, %v3469_v61 }
 0x65a   : > { %3472 = vtanh.f32 %v2626_v41 }
 0x65b   : > { %3091 = vmatmul.msk.bf16.vlgmr.msra.gmra.mxu2 %vm629_vm6, %v2632_v16 }
 0x65f   : > { %v2627_v28 = vpop.f32.mrf.mxu2 }
 0x660   : > { %v4749_v18 = vpop.eup %3472 }
 0x661   : > { %v2633_v26 = vpack.c.bf16 %v4749_v18, %v4749_v18 }
 0x66b   : > { %3092 = vmatmul.msk.bf16.gmra.mxu2 %vm629_vm6, %v2633_v26 }
 0x6de   : > { %v2657_v52 = vpop.f32.mrf.mxu2 }
 0x6df   : > { %v2668_v0 = vadd.f32 %v2667_v49, %v2657_v52 }
 0x6e1   : > { %v2671_v17 = vsel %vm629_vm6, %v2668_v0, -inf }
 0x6e2   : > { %v2672_v58 = vrot.slane %v2671_v17, 4 }
 0x6e4   : > { %v2673_v53 = vmax.f32 %v2671_v17, %v2672_v58 }
 0x6e6   : > { %v2674_v36 = vrot.slane %v2673_v53, 2  ;;  %v2659_v40 = vpop.f32.mrf.mxu2 }
 0x6e7   : > { %v2669_v9 = vadd.f32 %v2667_v49, %v2659_v40 }
 0x6e8   : > { %v2675_v44 = vmax.f32 %v2673_v53, %v2674_v36 }
 0x6e9   : > { %v2678_v2 = vsel %vm629_vm6, %v2669_v9, -inf }
 0x6ea   : > { %v2676_v7 = vrot.slane %v2675_v44, 1  ;;  %v2679_v48 = vrot.slane %v2678_v2, 4 }
 0x6ec   : > { %v2677_v56 = vmax.f32 %v2675_v44, %v2676_v7  ;;  %v2680_v30 = vmax.f32 %v2678_v2, %v2679_v48 }
 0x6ee   : > { %v2692_v63 = vsub.f32 %v2668_v0, %v2677_v56  ;;  %v2681_v27 = vrot.slane %v2680_v30, 2  ;;  %v2662_v57 = vpop.f32.mrf.mxu2 }
 0x6ef   : > { %v2670_v25 = vadd.f32 %v2667_v49, %v2662_v57 }
 0x6f0   : > { %v2695_v37 = vmul.f32 1.442695, %v2692_v63  ;;  %v2682_v29 = vmax.f32 %v2680_v30, %v2681_v27 }
 0x6f1   : > { %v2685_v23 = vsel %vm629_vm6, %v2670_v25, -inf }
 0x6f2   : > { %3474 = vpow2.f32 %v2695_v37  ;;  %v2683_v14 = vrot.slane %v2682_v29, 1  ;;  %v2686_v59 = vrot.slane %v2685_v23, 4 }
 0x6f4   : > { %v2684_v45 = vmax.f32 %v2682_v29, %v2683_v14  ;;  %v2687_v35 = vmax.f32 %v2685_v23, %v2686_v59 }
 0x6f6   : > { %v2693_v51 = vsub.f32 %v2669_v9, %v2684_v45  ;;  %v2688_v20 = vrot.slane %v2687_v35, 2  ;;  %v2664_v33 = vpop.f32.mrf.mxu2 }
 0x6f8   : > { %v3475_v24 = vpop.eup %3474  ;;  %v2697_v3 = vmul.f32 1.442695, %v2693_v51  ;;  %v2689_v55 = vmax.f32 %v2687_v35, %v2688_v20 }
 0x6f9   : > { %v2725_v22 = vsel %vm629_vm6, %v3475_v24, 0.0  ;;  %v2701_v5 = vmul.f32 %v3475_v24, %v3469_v61 }
 0x6fa   : > { %v2726_v6 = vrot.slane %v2725_v22, 4  ;;  %3476 = vpow2.f32 %v2697_v3  ;;  %v2690_v13 = vrot.slane %v2689_v55, 1  ;;  %v3558_v3 = vmov 65535  }
 0x6fb   : > { %v2704_v46 = vsel %vm629_vm6, %v2701_v5, 0.0 }
 0x6fc   : > { %v2727_v11 = vadd.f32 %v2726_v6, %v2725_v22  ;;  %v2691_v15 = vmax.f32 %v2689_v55, %v2690_v13  ;;  %v2705_v1 = vrot.slane %v2704_v46, 4  ;;  %v2770_v55 = vsel %vm2769_vm4, 4294967295, %v3558_v3 }
 0x6fd   : > { %v2771_v5 = vsel %vm1967_vm15, %v2770_v55, 0 }
 0x6fe   : > { %v2694_v60 = vsub.f32 %v2670_v25, %v2691_v15  ;;  %v2728_v19 = vrot.slane %v2727_v11, 2  ;;  %v2706_v31 = vadd.f32 %v2705_v1, %v2704_v46  ;;  %v2752_v46 = vld [vmem:[%s4831_s1 + $0xac] sm:$0xf]  ;;  %v2791_v1 = vld [vmem:[%s4831_s1 + $0x58] sm:$0x1] }
 0x700   : > { %v3477_v42 = vpop.eup %3476  ;;  %v2699_v43 = vmul.f32 1.442695, %v2694_v60  ;;  %v2729_v54 = vadd.f32 %v2728_v19, %v2727_v11  ;;  %v2707_v28 = vrot.slane %v2706_v31, 2  ;;  %v3126_v19 = vld [vmem:[%s4831_s1 + $0x50] sm:$0xff] }
 0x701   : > { %v2702_v21 = vmul.f32 %v3477_v42, %v3471_v39  ;;  %v2732_v10 = vsel %vm629_vm6, %v3477_v42, 0.0  ;;  %2810 = vmatpush.bf16.msrb.mxu2 %v3126_v19 }
 0x702   : > { %v2733_v8 = vrot.slane %v2732_v10, 4  ;;  %3478 = vpow2.f32 %v2699_v43  ;;  %v2730_v38 = vrot.slane %v2729_v54, 1  ;;  %v2708_v40 = vadd.f32 %v2707_v28, %v2706_v31  ;;  %v3128_v28 = vld [vmem:[%s4831_s1 + $0x64] sm:$0xff] }
 0x703   : > { %v2711_v12 = vsel %vm629_vm6, %v2702_v21, 0.0 }
 0x704   : > { %v2712_v32 = vrot.slane %v2711_v12, 4  ;;  %v2734_v34 = vadd.f32 %v2733_v8, %v2732_v10  ;;  %v2731_v52 = vadd.f32 %v2730_v38, %v2729_v54  ;;  %v2709_v48 = vrot.slane %v2708_v40, 1  ;;  %v3127_v10 = vld [vmem:[%s4831_s1 + $0x5c] sm:$0xff] }
 0x705   : > { %v2792_v8 = vunpack.c.l.bf16 %v2791_v1  ;;  %2893 = vmatpush.bf16.msra.mxu2 %v3128_v28 }
 0x706   : > { %v2713_v62 = vadd.f32 %v2712_v32, %v2711_v12  ;;  %v2735_v47 = vrot.slane %v2734_v34, 2  ;;  %v2710_v37 = vadd.f32 %v2709_v48, %v2708_v40 }
 0x707   : > { %v2793_v54 = vperm.slane %v2792_v8, 0 }
 0x708   : > { %v3479_v61 = vpop.eup %3478  ;;  %v2714_v50 = vrot.slane %v2713_v62, 2  ;;  %v2736_v16 = vadd.f32 %v2735_v47, %v2734_v34  ;;  %v2843_v47 = vunpack.c.h.bf16 %v4757_v4 }
 0x709   : > { %v2703_v41 = vmul.f32 %v3479_v61, %v4749_v18  ;;  %v2739_v39 = vsel %vm629_vm6, %v3479_v61, 0.0 }
 0x70a   : > { %v2737_v26 = vrot.slane %v2736_v16, 1  ;;  %v2740_v49 = vrot.slane %v2739_v39, 4  ;;  %v2715_v17 = vadd.f32 %v2714_v50, %v2713_v62 }
 0x70b   : > { %v2718_v0 = vsel %vm629_vm6, %v2703_v41, 0.0 }
 0x70c   : > { %v2738_v58 = vadd.f32 %v2737_v26, %v2736_v16  ;;  %v2719_v53 = vrot.slane %v2718_v0, 4  ;;  %v2741_v36 = vadd.f32 %v2740_v49, %v2739_v39  ;;  %v2716_v2 = vrot.slane %v2715_v17, 1 }
 0x70e   : > { %3480 = vrcp.f32 %v2738_v58  ;;  %v2720_v9 = vadd.f32 %v2719_v53, %v2718_v0  ;;  %v2742_v44 = vrot.slane %v2741_v36, 2  ;;  %v2717_v27 = vadd.f32 %v2716_v2, %v2715_v17 }
 0x70f   : > { %3482 = vrcp.f32 %v2731_v52 }
 0x710   : > { %v2721_v7 = vrot.slane %v2720_v9, 2  ;;  %v2743_v18 = vadd.f32 %v2742_v44, %v2741_v36 }
 0x712   : > { %v2744_v56 = vrot.slane %v2743_v18, 1  ;;  %v2722_v30 = vadd.f32 %v2721_v7, %v2720_v9 }
 0x714   : > { %v3481_v63 = vpop.eup %3480  ;;  %v2745_v57 = vadd.f32 %v2744_v56, %v2743_v18  ;;  %v2723_v23 = vrot.slane %v2722_v30, 1 }
 0x715   : > { %v3483_v25 = vpop.eup %3482  ;;  %v2750_v29 = vmul.f32 %v3481_v63, %v2717_v27 }
 0x716   : > { %3484 = vrcp.f32 %v2745_v57  ;;  %v2749_v14 = vmul.f32 %v3483_v25, %v2710_v37  ;;  %v2724_v45 = vadd.f32 %v2723_v23, %v2722_v30 }
 0x717   : > { %v2754_v59 = vpack.c.bf16 %v2750_v29, %v2750_v29 }
 0x718   : > { %v2753_v51 = vpack.c.bf16 %v2749_v14, %v2749_v14  ;;  %v2875_v14 = vld [vmem:[%s4831_s1 + $0x6c] sm:$0x1] }
 0x719   : > { %v2760_v33 = vunpack.c.l.b16 %v2754_v59  ;;  %v2876_v59 = vunpack.c.l.bf16 %v2875_v14 }
 0x71a   : > { %v2759_v22 = vunpack.c.l.b16 %v2753_v51 }
 0x71c   : > { %v3485_v35 = vpop.eup %3484  ;;  %v2762_v13 = vsel %vm1905_vm3, %v2760_v33, %v2759_v22 }
 0x71d   : > { %v2751_v20 = vmul.f32 %v3485_v35, %v2724_v45 }
 0x71f   : > { %v2755_v24 = vpack.c.bf16 %v2751_v20, %v2751_v20 }
 0x721   : > { %v2761_v6 = vunpack.c.l.b16 %v2755_v24 }
 0x723   : > { %v2763_v11 = vsel %vm1907_vm9, %v2761_v6, %v2762_v13 }
 0x724   : > { %v2764_v15 = vpack.c.b16 %v2763_v11, %v2763_v11 }
 0x726   : > { %v2773_v60 = vand.u32 %v2771_v5, %v2764_v15 }
 0x728   : > { %2782 = vmatpush.bf16.msrb.mxu3 %v2773_v60 }
 0x72b   : > { %3093 = vmatmul.msk.bf16.vlgmr.msrb.gmra.mxu3 %vm2765_vm5, %v2752_v46 }
 0x72c   : > { %2836 = vmatpush.bf16.msra.mxu3 %v3127_v10 }
 0x7ae   : > { %v2784_v42 = vpop.f32.mrf.mxu3 }
 0x7af   : > { %v2788_v43 = vpack.c.bf16 %v2784_v42, %v2784_v42 }
 0x7b1   : > { %3098 = vmatmul.msk.bf16.vlgmr.msrb.gmra.mxu2 %vm629_vm6, %v2788_v43 }
 0x7b6   : > { %v2786_v21 = vpop.f32.mrf.mxu3 }
 0x834   : > { %v2812_v12 = vpop.f32.mrf.mxu2 }
 0x835   : > { %v2813_v32 = vadd.f32 %v2812_v12, %v2793_v54 }
 0x837   : > { %3486 = vtanh.f32 %v2813_v32 }
 0x83c   : > { %v2814_v34 = vpop.f32.mrf.mxu2 }
 0x83d   : > { %v3487_v31 = vpop.eup %3486 }
 0x83e   : > { %v2817_v62 = vpack.c.bf16 %v3487_v31, %v3487_v31 }
 0x840   : > { %3103 = vmatmul.msk.bf16.vlgmr.msra.gmra.mxu3 %vm629_vm6, %v2817_v62 }
 0x8c3   : > { %v2838_v38 = vpop.f32.mrf.mxu3 }
 0x8c4   : > { %v2844_v61 = vadd.f32 %v2843_v47, %v2838_v38 }
 0x8c6   : > { %v2845_v50 = vsel %vm629_vm6, %v2844_v61, -inf }
 0x8c7   : > { %v2846_v16 = vrot.slane %v2845_v50, 4 }
 0x8c9   : > { %v2847_v41 = vmax.f32 %v2845_v50, %v2846_v16 }
 0x8cb   : > { %v2848_v39 = vrot.slane %v2847_v41, 2  ;;  %v2840_v26 = vpop.f32.mrf.mxu3 }
 0x8cd   : > { %v2849_v49 = vmax.f32 %v2847_v41, %v2848_v39 }
 0x8cf   : > { %v2850_v52 = vrot.slane %v2849_v49, 1 }
 0x8d1   : > { %v2851_v0 = vmax.f32 %v2849_v49, %v2850_v52 }
 0x8d3   : > { %v2852_v17 = vsub.f32 %v2844_v61, %v2851_v0 }
 0x8d5   : > { %v2853_v58 = vmul.f32 1.442695, %v2852_v17 }
 0x8d7   : > { %3488 = vpow2.f32 %v2853_v58 }
 0x8dd   : > { %v3489_v4 = vpop.eup %3488 }
 0x8de   : > { %v2855_v53 = vmul.f32 %v3489_v4, %v3487_v31  ;;  %v2863_v36 = vsel %vm629_vm6, %v3489_v4, 0.0 }
 0x8df   : > { %v2864_v40 = vrot.slane %v2863_v36, 4 }
 0x8e0   : > { %v2856_v9 = vsel %vm629_vm6, %v2855_v53, 0.0 }
 0x8e1   : > { %v2857_v44 = vrot.slane %v2856_v9, 4  ;;  %v2865_v2 = vadd.f32 %v2864_v40, %v2863_v36 }
 0x8e3   : > { %v2858_v7 = vadd.f32 %v2857_v44, %v2856_v9  ;;  %v2866_v18 = vrot.slane %v2865_v2, 2 }
 0x8e5   : > { %v2859_v48 = vrot.slane %v2858_v7, 2  ;;  %v2867_v56 = vadd.f32 %v2866_v18, %v2865_v2 }
 0x8e7   : > { %v2868_v30 = vrot.slane %v2867_v56, 1  ;;  %v2860_v63 = vadd.f32 %v2859_v48, %v2858_v7 }
 0x8e9   : > { %v2869_v27 = vadd.f32 %v2868_v30, %v2867_v56  ;;  %v2861_v57 = vrot.slane %v2860_v63, 1 }
 0x8eb   : > { %3490 = vrcp.f32 %v2869_v27  ;;  %v2862_v25 = vadd.f32 %v2861_v57, %v2860_v63 }
 0x8f1   : > { %v3491_v37 = vpop.eup %3490 }
 0x8f2   : > { %v2871_v29 = vmul.f32 %v3491_v37, %v2862_v25 }
 0x8f4   : > { %v2872_v23 = vpack.c.bf16 %v2871_v29, %v2871_v29 }
 0x8f6   : > { %3108 = vmatmul.msk.bf16.vlgmr.msra.gmra.mxu2 %vm629_vm6, %v2872_v23 }
 0x979   : > { %v2895_v45 = vpop.f32.mrf.mxu2 }
 0x97a   : > { %v2896_v35 = vadd.f32 %v2895_v45, %v2876_v59 }
 0x97c   : > { %2899 = vst [vmem:[%s135_s29] sm:$0x1] %v2896_v35 }
 0x97d   : > { %3519 = shalt.err (!%p3516_p3)
}
 0x97e   : > { %3135 = dma.vmem_to_hbm [thread:$0]  (%p3612_p5), %s2912_s30, 16, %s2914_s3, %s2901_s4  }
 0x981   : > { %v2897_v51 = vpop.f32.mrf.mxu2 }
 0x982 PF: > { %p3141_p4 = scmp.ge.s32.totalorder %s3554_s12, 2  ;;  %s2925_s17 = sand.u32 1, %s3542_s9  }
 0x983   : > { %s2926_s21 = scalar_lea.sflag [#allocation3], %s2925_s17 }
 0x984   : > { %p3138_p7 = pnand %p3141_p4, %p3616_p6 }
 0x986   : > { %p3139_p8 = pneg %p3138_p7 }
 0x988   : > { %3537 = dma.done.wait (%p3139_p8), %s2926_s21, 16  }
 0x989   : > { %3539 = vsyncadd (%p3139_p8), %s2926_s21, 4294967280  ;;  %p12_p9 = scmp.ge.s32.totalorder %s3599_s15, 4   ;;  %s4876_s9 = smov %s3546_s10 }
 0x98a   : > { %s4877_s10 = smov %s3550_s11  ;;  %s4878_s11 = smov %s3610_s18 }
 0x98b   : > { %s4879_s12 = smov %s3599_s15  ;;  %14 = sbr.rel (!%p12_p9) target bundleno = 3 (0x3), region = 63 }
 0x990   :  { %2931 = vsyncpa [#allocation3], 1 }
 0x991   :  { %2933 = vsyncpa [#allocation3 + $0x1], 1 }

</bundles_post_ra>
